<compile_context>
chip_gen: v6e
topology: v6e:2x2x1
jax: 0.10.0
libtpu: 0.0.40
codegen_flags: <defaults>
</compile_context>

<pallas_src>
import functools

import numpy as np
import jax
import jax.numpy as jnp
from jax.experimental import pallas as pl
from jax.experimental.pallas import tpu as pltpu


# ----------------------------- in-kernel helpers ----------------------------

def _erf_approx(x):
    # Abramowitz & Stegun 7.1.26 (max abs err ~1.5e-7, i.e. float32-exact for
    # GELU); avoids relying on an erf lowering inside Mosaic while matching the
    # exact-erf nn.GELU default.
    p = 0.3275911
    a1, a2, a3, a4, a5 = (0.254829592, -0.284496736, 1.421413741,
                          -1.453152027, 1.061405429)
    ax = jnp.abs(x)
    t = 1.0 / (1.0 + p * ax)
    poly = ((((a5 * t + a4) * t + a3) * t + a2) * t + a1) * t
    y = 1.0 - poly * jnp.exp(-ax * ax)
    return jnp.where(x < 0.0, -y, y)


def _gelu(x):
    # exact-erf GELU (matches nn.GELU default) done in-kernel on the VPU/EUP.
    return 0.5 * x * (1.0 + _erf_approx(x * 0.7071067811865476))


# ----------------------------- Pallas kernels ------------------------------

def _matmul_bias_kernel(x_ref, w_ref, b_ref, o_ref):
    o_ref[...] = (jnp.dot(x_ref[...], w_ref[...],
                          preferred_element_type=jnp.float32) + b_ref[...])


def pallas_matmul_bias(x, w, b, block_m=256):
    """y = x @ w + b.  M (token) dimension tiled, weights broadcast over grid."""
    M, K = x.shape
    K2, Nout = w.shape
    assert K == K2
    bm = min(block_m, M)
    grid = (pl.cdiv(M, bm),)
    return pl.pallas_call(
        _matmul_bias_kernel,
        out_shape=jax.ShapeDtypeStruct((M, Nout), jnp.float32),
        grid=grid,
        in_specs=[pl.BlockSpec((bm, K), lambda i: (i, 0)),
                  pl.BlockSpec((K, Nout), lambda i: (0, 0)),
                  pl.BlockSpec((1, Nout), lambda i: (0, 0))],
        out_specs=pl.BlockSpec((bm, Nout), lambda i: (i, 0)),
        compiler_params=pltpu.CompilerParams(
            dimension_semantics=("parallel",),
            vmem_limit_bytes=32 * 1024 * 1024),
    )(x.astype(jnp.float32), w.astype(jnp.float32),
      b.reshape(1, Nout).astype(jnp.float32))


def _semmap_kernel(map_dim, patches_ref, w_ref, o_ref):
    # Fused SemanticMapGeneration per batch:
    #   one matmul over im2col patches with the concatenated (base|semantic)
    #   3x3x3 weights, softmax over the spatial axis, then code reduction.
    proj = jnp.dot(patches_ref[...], w_ref[...],
                   preferred_element_type=jnp.float32)      # (N, map_dim+code)
    base = proj[:, :map_dim]                                 # (N, map_dim)
    wmap = proj[:, map_dim:]                                 # (N, code)
    m = jnp.max(wmap, axis=0, keepdims=True)
    e = jnp.exp(wmap - m)
    p = e / jnp.sum(e, axis=0, keepdims=True)                # softmax over spatial
    # out[k, i] = sum_j p[j, k] * base[j, i]
    o_ref[...] = jax.lax.dot_general(
        p, base, (((0,), (0,)), ((), ())),
        preferred_element_type=jnp.float32)                  # (code, map_dim)


def semantic_map_gen(patches, w_combined, map_dim, code):
    """patches: (B, N, C*27), w_combined: (C*27, map_dim+code) -> (B, code, map_dim)."""
    B, N, K = patches.shape
    kernel = functools.partial(_semmap_kernel, map_dim)
    return pl.pallas_call(
        kernel,
        out_shape=jax.ShapeDtypeStruct((B, code, map_dim), jnp.float32),
        grid=(B,),
        in_specs=[pl.BlockSpec((None, N, K), lambda b: (b, 0, 0)),
                  pl.BlockSpec((K, map_dim + code), lambda b: (0, 0))],
        out_specs=pl.BlockSpec((None, code, map_dim), lambda b: (b, 0, 0)),
        compiler_params=pltpu.CompilerParams(
            dimension_semantics=("parallel",),
            vmem_limit_bytes=32 * 1024 * 1024),
    )(patches.astype(jnp.float32), w_combined.astype(jnp.float32))


def _attn_ffn_kernel(scale, heads, dim_head,
                     feat_ref, map_ref,
                     wfqv_ref, bfqv_ref, wmqv_ref, bmqv_ref,
                     wfo_ref, wmo_ref,
                     s3_ref, b3_ref, wff1_ref, s4_ref, b4_ref, wff2_ref,
                     out_feat_ref, out_map_ref):
    """Whole BidirectionAttentionBlock (norm1/norm2 already folded into the qv
    weights) + FusedMBConv feedforward, per batch element."""
    inner = heads * dim_head
    feat = feat_ref[...]                       # (N, C)      raw features (residual)
    mapt = map_ref[...]                        # (Nm, Cm)    raw semantic map (residual)

    # qv projections (eval-BatchNorm folded into weight + bias, head-permuted
    # columns so each head is a contiguous slice).
    fqv = jnp.dot(feat, wfqv_ref[...],
                  preferred_element_type=jnp.float32) + bfqv_ref[...]   # (N, 2*inner)
    mqv = jnp.dot(mapt, wmqv_ref[...],
                  preferred_element_type=jnp.float32) + bmqv_ref[...]   # (Nm, 2*inner)

    wfo = wfo_ref[...]                         # (inner, C)   head-permuted rows
    wmo = wmo_ref[...]                         # (inner, Cm)

    feat_o = jnp.zeros(feat.shape, jnp.float32)
    map_o = jnp.zeros(mapt.shape, jnp.float32)
    for h in range(heads):                     # static unrolled (heads is small)
        lo, hi = h * dim_head, (h + 1) * dim_head
        fq = fqv[:, lo:hi]                     # (N, dh)
        fv = fqv[:, inner + lo:inner + hi]     # (N, dh)
        mq = mqv[:, lo:hi]                     # (Nm, dh)
        mv = mqv[:, inner + lo:inner + hi]     # (Nm, dh)

        s = jax.lax.dot_general(fq, mq, (((1,), (1,)), ((), ())),
                                preferred_element_type=jnp.float32) * scale  # (N, Nm)
        # softmax over map tokens (last axis) -> feat_map_attn
        m1 = jnp.max(s, axis=1, keepdims=True)
        e1 = jnp.exp(s - m1)
        p1 = e1 / jnp.sum(e1, axis=1, keepdims=True)
        # softmax over feat tokens (axis -2)  -> map_feat_attn
        m2 = jnp.max(s, axis=0, keepdims=True)
        e2 = jnp.exp(s - m2)
        p2 = e2 / jnp.sum(e2, axis=0, keepdims=True)

        fo = jnp.dot(p1, mv, preferred_element_type=jnp.float32)             # (N, dh)
        mo = jax.lax.dot_general(p2, fv, (((0,), (0,)), ((), ())),
                                 preferred_element_type=jnp.float32)         # (Nm, dh)

        # out projections accumulated per head (rows of the permuted weights).
        feat_o = feat_o + jnp.dot(fo, wfo[lo:hi, :],
                                  preferred_element_type=jnp.float32)        # (N, C)
        map_o = map_o + jnp.dot(mo, wmo[lo:hi, :],
                                preferred_element_type=jnp.float32)          # (Nm, Cm)

    out_map_ref[...] = map_o + mapt            # mapp += semantic_map
    out2 = feat_o + feat                       # out  += shortcut(x)  (identity)

    # FusedMBConv feedforward (pre-act, kernel_size=1): (BN->GELU->1x1) x2 + res
    h1 = _gelu(out2 * s3_ref[...] + b3_ref[...])
    h1 = jnp.dot(h1, wff1_ref[...], preferred_element_type=jnp.float32)
    h2 = _gelu(h1 * s4_ref[...] + b4_ref[...])
    h2 = jnp.dot(h2, wff2_ref[...], preferred_element_type=jnp.float32)
    out_feat_ref[...] = h2 + out2


def attention_ffn(feat_tok, map_tok, p, heads, dim_head):
    """feat_tok: (B, N, C), map_tok: (B, Nm, Cm) -> (B, N, C), (B, Nm, Cm)."""
    B, N, C = feat_tok.shape
    _, Nm, Cm = map_tok.shape
    inner = heads * dim_head
    E = p['w_ff1'].shape[1]
    scale = dim_head ** (-0.5)
    kernel = functools.partial(_attn_ffn_kernel, scale, heads, dim_head)

    batch_feat = pl.BlockSpec((None, N, C), lambda b: (b, 0, 0))
    batch_map = pl.BlockSpec((None, Nm, Cm), lambda b: (b, 0, 0))

    def rep(shape):                            # weight broadcast over the B grid
        return pl.BlockSpec(shape, lambda b: (0,) * len(shape))

    out_feat, out_map = pl.pallas_call(
        kernel,
        out_shape=(jax.ShapeDtypeStruct((B, N, C), jnp.float32),
                   jax.ShapeDtypeStruct((B, Nm, Cm), jnp.float32)),
        grid=(B,),
        in_specs=[batch_feat, batch_map,
                  rep((C, 2 * inner)), rep((1, 2 * inner)),
                  rep((Cm, 2 * inner)), rep((1, 2 * inner)),
                  rep((inner, C)), rep((inner, Cm)),
                  rep((1, C)), rep((1, C)), rep((C, E)),
                  rep((1, E)), rep((1, E)), rep((E, C))],
        out_specs=(batch_feat, batch_map),
        compiler_params=pltpu.CompilerParams(
            dimension_semantics=("parallel",),
            vmem_limit_bytes=32 * 1024 * 1024),
    )(feat_tok.astype(jnp.float32), map_tok.astype(jnp.float32),
      p['w_feat_qv'], p['b_feat_qv'], p['w_map_qv'], p['b_map_qv'],
      p['w_feat_out'], p['w_map_out'],
      p['bn3_scale'], p['bn3_shift'], p['w_ff1'],
      p['bn4_scale'], p['bn4_shift'], p['w_ff2'])
    return out_feat, out_map


# ------------------------------- JAX glue -----------------------------------

def ncdhw_to_tokens(x):
    B, C = x.shape[0], x.shape[1]
    return jnp.transpose(x.reshape(B, C, -1), (0, 2, 1))   # (B, N, C)


def tokens_to_ncdhw(t, D, H, W):
    B, N, C = t.shape
    return jnp.transpose(t, (0, 2, 1)).reshape(B, C, D, H, W)


def im2col_3x3x3(x):
    """x: (B, C, D, H, W), padding=1 -> (B, D*H*W, C*27), matching PyTorch
    Conv3d weight flattening (Cin, kd, kh, kw)."""
    B, C, D, H, W = x.shape
    xp = jnp.pad(x, ((0, 0), (0, 0), (1, 1), (1, 1), (1, 1)))
    cols = []
    for i in range(3):
        for j in range(3):
            for k in range(3):
                cols.append(xp[:, :, i:i + D, j:j + H, k:k + W])
    patches = jnp.stack(cols, axis=2)                    # (B, C, 27, D, H, W)
    patches = patches.reshape(B, C * 27, D * H * W)
    return jnp.transpose(patches, (0, 2, 1))             # (B, N, C*27)


def down_block_forward(x, prep, cfg):
    B, Cin, D, H, W = x.shape
    ds = cfg['down_scale']
    heads, dim_head = cfg['heads'], cfg['dim_head']
    out_ch, map_dim = cfg['out_ch'], cfg['map_dim']
    map_size = cfg['map_size']
    code = map_size[0] * map_size[1] * map_size[2]

    # ---------------- PatchMerging (BN folded into the 1x1 reduction) --------
    merged = []
    for i in range(ds[0]):
        for j in range(ds[1]):
            for k in range(ds[2]):
                merged.append(x[:, :, i::ds[0], j::ds[1], k::ds[2]])
    xm = jnp.concatenate(merged, axis=1)                 # (B, 8*Cin, D/2, H/2, W/2)
    Dm, Hm, Wm = D // ds[0], H // ds[1], W // ds[2]
    N = Dm * Hm * Wm
    Cmerged = xm.shape[1]

    tok = ncdhw_to_tokens(xm).reshape(B * N, Cmerged)
    out_tok = pallas_matmul_bias(tok, prep['w_red'], prep['b_red'], block_m=64)
    feat_tok = out_tok.reshape(B, N, out_ch)

    # conv_blocks: conv_num = 0 -> identity

    # ---------------- SemanticMapGeneration (single fused kernel) ------------
    out_ncdhw = tokens_to_ncdhw(feat_tok, Dm, Hm, Wm)
    patches = im2col_3x3x3(out_ncdhw)                    # (B, N, out_ch*27)
    map_tok = semantic_map_gen(patches, prep['w_semmap'], map_dim, code)  # (B, code, map_dim)

    # --------- BidirectionAttentionBlock + FusedMBConv (single fused kernel) -
    out_feat, out_map = attention_ffn(feat_tok, map_tok, prep, heads, dim_head)

    out_final = tokens_to_ncdhw(out_feat, Dm, Hm, Wm)
    map_out = tokens_to_ncdhw(out_map, *map_size)
    return out_final, map_out


# ------------------------------ parameters ----------------------------------

def make_params(key, in_ch, out_ch, map_dim, map_size, heads, dim_head, expansion):
    ks = jax.random.split(key, 16)
    merged_dim = 8 * in_ch
    inner = heads * dim_head
    code = map_size[0] * map_size[1] * map_size[2]
    eps = 1e-5

    def bn(k, c):
        kg, kb = jax.random.split(k)
        gamma = 1.0 + 0.1 * jax.random.normal(kg, (c,), jnp.float32)
        beta = 0.05 * jax.random.normal(kb, (c,), jnp.float32)
        # eval-mode BatchNorm3d with running_mean=0, running_var=1 folded to affine
        return gamma / jnp.sqrt(1.0 + eps), beta

    def conv_w(k, shape):
        fan_in = 1
        for s in shape[1:]:
            fan_in *= s
        bound = 1.0 / (fan_in ** 0.5)
        return jax.random.uniform(k, shape, jnp.float32, -bound, bound)

    p = {}
    p['pm_scale'], p['pm_shift'] = bn(ks[0], merged_dim)
    p['w_red'] = conv_w(ks[1], (out_ch, merged_dim))
    p['w_base'] = conv_w(ks[2], (map_dim, out_ch, 3, 3, 3))
    p['w_sem'] = conv_w(ks[3], (code, out_ch, 3, 3, 3))
    p['bn1_scale'], p['bn1_shift'] = bn(ks[4], out_ch)
    p['bn2_scale'], p['bn2_shift'] = bn(ks[5], map_dim)
    p['w_feat_qv'] = conv_w(ks[6], (2 * inner, out_ch))
    p['w_map_qv'] = conv_w(ks[7], (2 * inner, map_dim))
    p['w_feat_out'] = conv_w(ks[8], (out_ch, inner))
    p['w_map_out'] = conv_w(ks[9], (map_dim, inner))
    expanded = out_ch * expansion
    p['bn3_scale'], p['bn3_shift'] = bn(ks[10], out_ch)
    p['w_ff1'] = conv_w(ks[11], (expanded, out_ch))
    p['bn4_scale'], p['bn4_shift'] = bn(ks[12], expanded)
    p['w_ff2'] = conv_w(ks[13], (out_ch, expanded))
    return p


def prepare_params(params, cfg):
    """One-time weight preparation (done once, outside the jitted forward):
    fold eval-mode BatchNorms into adjacent 1x1 convs, pre-transpose weights to
    (K, N), concatenate the two 3x3x3 SemanticMapGeneration projections, and
    pre-apply the '(d h)' head-split permutation so kernels slice contiguously."""
    heads, dim_head = cfg['heads'], cfg['dim_head']
    map_dim = cfg['map_dim']
    map_size = cfg['map_size']
    inner = heads * dim_head
    code = map_size[0] * map_size[1] * map_size[2]

    # new channel (h*dim_head + d) <- torch channel (d*heads + h)
    # (matches BidirectionAttention.rearrange1/rearrange2 channel layout)
    idx = np.arange(inner).reshape(dim_head, heads).T.reshape(-1)
    qv_idx = np.concatenate([idx, idx + inner])

    f32 = lambda a: jnp.asarray(a, jnp.float32)
    prep = {}

    # PatchMerging: (x*s + b) @ W^T == x @ (diag(s) W^T) + b @ W^T
    w_red_t = f32(params['w_red']).T                               # (merged, out_ch)
    prep['w_red'] = f32(params['pm_scale'])[:, None] * w_red_t
    prep['b_red'] = f32(params['pm_shift'])[None, :] @ w_red_t     # (1, out_ch)

    # SemanticMapGeneration: one (C*27, map_dim+code) weight (base | semantic)
    w_base = f32(params['w_base']).reshape(map_dim, -1)
    w_sem = f32(params['w_sem']).reshape(code, -1)
    prep['w_semmap'] = jnp.concatenate([w_base, w_sem], axis=0).T  # (C*27, map_dim+code)

    # Attention qv projections: fold norm1/norm2 and head-permute columns.
    w_fqv_t = f32(params['w_feat_qv']).T                           # (out_ch, 2*inner)
    prep['w_feat_qv'] = (f32(params['bn1_scale'])[:, None] * w_fqv_t)[:, qv_idx]
    prep['b_feat_qv'] = (f32(params['bn1_shift'])[None, :] @ w_fqv_t)[:, qv_idx]
    w_mqv_t = f32(params['w_map_qv']).T                            # (map_dim, 2*inner)
    prep['w_map_qv'] = (f32(params['bn2_scale'])[:, None] * w_mqv_t)[:, qv_idx]
    prep['b_map_qv'] = (f32(params['bn2_shift'])[None, :] @ w_mqv_t)[:, qv_idx]

    # Output projections: transpose + head-permute rows.
    prep['w_feat_out'] = f32(params['w_feat_out']).T[idx, :]       # (inner, out_ch)
    prep['w_map_out'] = f32(params['w_map_out']).T[idx, :]         # (inner, map_dim)

    # FusedMBConv feedforward: GELU sits between BN and conv -> keep affines.
    prep['bn3_scale'] = f32(params['bn3_scale'])[None, :]
    prep['bn3_shift'] = f32(params['bn3_shift'])[None, :]
    prep['w_ff1'] = f32(params['w_ff1']).T                         # (out_ch, expanded)
    prep['bn4_scale'] = f32(params['bn4_scale'])[None, :]
    prep['bn4_shift'] = f32(params['bn4_shift'])[None, :]
    prep['w_ff2'] = f32(params['w_ff2']).T                         # (expanded, out_ch)
    return prep


# --------------------------------- main --------------------------------------

if __name__ == "__main__":
    B, in_ch, D, H, W = 2, 4, 8, 8, 8
    out_ch = 8
    heads, dim_head = 2, 16
    expansion = 1
    map_size = (2, 2, 2)
    map_dim = out_ch
    cfg = dict(down_scale=(2, 2, 2), heads=heads, dim_head=dim_head,
               out_ch=out_ch, map_dim=map_dim, map_size=map_size)

    key = jax.random.PRNGKey(0)
    k_in, k_par = jax.random.split(key)
    x = jax.random.normal(k_in, (B, in_ch, D, H, W), jnp.float32)
    params = make_params(k_par, in_ch, out_ch, map_dim, map_size,
                         heads, dim_head, expansion)
    prep = prepare_params(params, cfg)   # BN folding / transposes done once

    fwd = jax.jit(lambda xx, pp: down_block_forward(xx, pp, cfg))
    out, semantic_map = fwd(x, prep)
    jax.block_until_ready(out)
    jax.block_until_ready(semantic_map)

    assert out.shape == (B, out_ch, D // 2, H // 2, W // 2)
    assert semantic_map.shape == (B, map_dim) + map_size
    print("KERNEL_OK")
</pallas_src>

<mosaic_0001>
module attributes {stable_mosaic.version = 11 : i64} {
  func.func @_matmul_bias_kernel(%arg0: i32, %arg1: memref<64x32xf32, #tpu.memory_space<vmem>>, %arg2: memref<32x8xf32, #tpu.memory_space<vmem>>, %arg3: memref<1x8xf32, #tpu.memory_space<vmem>>, %arg4: memref<64x8xf32, #tpu.memory_space<vmem>>) attributes {dimension_semantics = [#tpu.dimension_semantics<parallel>], iteration_bounds = array<i64: 2>, scalar_prefetch = 0 : i64, scratch_operands = 0 : i64, tpu.core_type = #tpu.core_type<tc>, window_params = [{transform_indices = @transform_0, window_bounds = array<i64: 64, 32>}, {pipeline_mode = #tpu.pipeline_mode<synchronous>, transform_indices = @transform_1, window_bounds = array<i64: 32, 8>}, {pipeline_mode = #tpu.pipeline_mode<synchronous>, transform_indices = @transform_2, window_bounds = array<i64: 1, 8>}, {transform_indices = @transform_3, window_bounds = array<i64: 64, 8>}]} {
    %c0 = arith.constant 0 : index
    %c0_0 = arith.constant 0 : index
    %0 = vector.load %arg1[%c0, %c0_0] : memref<64x32xf32, #tpu.memory_space<vmem>>, vector<64x32xf32>
    %c0_1 = arith.constant 0 : index
    %c0_2 = arith.constant 0 : index
    %1 = vector.load %arg2[%c0_1, %c0_2] : memref<32x8xf32, #tpu.memory_space<vmem>>, vector<32x8xf32>
    %cst = arith.constant dense<0.000000e+00> : vector<64x8xf32>
    %2 = tpu.matmul %0, %1, %cst {dimension_numbers = #tpu.dot_dimension_numbers<[1], [0], [0], [1], [0, 0, 1, 1], [], []>} : vector<64x32xf32>, vector<32x8xf32>, vector<64x8xf32> -> vector<64x8xf32>
    %c0_3 = arith.constant 0 : index
    %c0_4 = arith.constant 0 : index
    %3 = vector.load %arg3[%c0_3, %c0_4] : memref<1x8xf32, #tpu.memory_space<vmem>>, vector<1x8xf32>
    %4 = vector.broadcast %3 : vector<1x8xf32> to vector<64x8xf32>
    %5 = arith.addf %2, %4 : vector<64x8xf32>
    %c0_5 = arith.constant 0 : index
    %c0_6 = arith.constant 0 : index
    %6 = vector.load %arg4[%c0_5, %c0_6] : memref<64x8xf32, #tpu.memory_space<vmem>>, vector<64x8xf32>
    tpu.vector_store %arg4[%c0_5, %c0_6], %5 {strides = array<i32>} : memref<64x8xf32, #tpu.memory_space<vmem>>, vector<64x8xf32>,
    return
  }
  func.func @transform_0(%arg0: i32) -> (i32, i32) {
    %c0_i32 = arith.constant 0 : i32
    %c0_i32_0 = arith.constant 0 : i32
    return %arg0, %c0_i32 : i32, i32
  }
  func.func @transform_1(%arg0: i32) -> (i32, i32) {
    %c0_i32 = arith.constant 0 : i32
    %c0_i32_0 = arith.constant 0 : i32
    %c0_i32_1 = arith.constant 0 : i32
    return %c0_i32, %c0_i32_0 : i32, i32
  }
  func.func @transform_2(%arg0: i32) -> (i32, i32) {
    %c0_i32 = arith.constant 0 : i32
    %c0_i32_0 = arith.constant 0 : i32
    %c0_i32_1 = arith.constant 0 : i32
    return %c0_i32, %c0_i32_0 : i32, i32
  }
  func.func @transform_3(%arg0: i32) -> (i32, i32) {
    %c0_i32 = arith.constant 0 : i32
    %c0_i32_0 = arith.constant 0 : i32
    return %arg0, %c0_i32 : i32, i32
  }
}

module attributes {stable_mosaic.version = 11 : i64} {
  func.func @_semmap_kernel(%arg0: i32, %arg1: memref<1x64x216xf32, #tpu.memory_space<vmem>>, %arg2: memref<216x16xf32, #tpu.memory_space<vmem>>, %arg3: memref<1x8x8xf32, #tpu.memory_space<vmem>>) attributes {dimension_semantics = [#tpu.dimension_semantics<parallel>], iteration_bounds = array<i64: 2>, scalar_prefetch = 0 : i64, scratch_operands = 0 : i64, tpu.core_type = #tpu.core_type<tc>, window_params = [{transform_indices = @transform_0, window_bounds = array<i64: 1, 64, 216>}, {pipeline_mode = #tpu.pipeline_mode<synchronous>, transform_indices = @transform_1, window_bounds = array<i64: 216, 16>}, {transform_indices = @transform_2, window_bounds = array<i64: 1, 8, 8>}]} {
    %c0 = arith.constant 0 : index
    %c0_0 = arith.constant 0 : index
    %c0_1 = arith.constant 0 : index
    %0 = vector.load %arg1[%c0, %c0_0, %c0_1] : memref<1x64x216xf32, #tpu.memory_space<vmem>>, vector<1x64x216xf32>
    %1 = vector.shape_cast %0 : vector<1x64x216xf32> to vector<64x216xf32>
    %c0_2 = arith.constant 0 : index
    %c0_3 = arith.constant 0 : index
    %2 = vector.load %arg2[%c0_2, %c0_3] : memref<216x16xf32, #tpu.memory_space<vmem>>, vector<216x16xf32>
    %cst = arith.constant dense<0.000000e+00> : vector<64x16xf32>
    %3 = tpu.matmul %1, %2, %cst {dimension_numbers = #tpu.dot_dimension_numbers<[1], [0], [0], [1], [0, 0, 1, 1], [], []>} : vector<64x216xf32>, vector<216x16xf32>, vector<64x16xf32> -> vector<64x16xf32>
    %4 = vector.extract_strided_slice %3 {offsets = [0, 0], sizes = [64, 8], strides = [1, 1]} : vector<64x16xf32> to vector<64x8xf32>
    %5 = vector.extract_strided_slice %3 {offsets = [0, 8], sizes = [64, 8], strides = [1, 1]} : vector<64x16xf32> to vector<64x8xf32>
    %cst_4 = arith.constant dense<0xFF800000> : vector<8xf32>
    %6 = vector.multi_reduction <maximumf>, %5, %cst_4 [0] : vector<64x8xf32> to vector<8xf32>
    %7 = vector.shape_cast %6 : vector<8xf32> to vector<1x8xf32>
    %8 = vector.broadcast %7 : vector<1x8xf32> to vector<64x8xf32>
    %9 = arith.subf %5, %8 : vector<64x8xf32>
    %10 = math.exp %9 : vector<64x8xf32>
    %cst_5 = arith.constant dense<0.000000e+00> : vector<8xf32>
    %11 = vector.multi_reduction <add>, %10, %cst_5 [0] : vector<64x8xf32> to vector<8xf32>
    %12 = vector.shape_cast %11 : vector<8xf32> to vector<1x8xf32>
    %13 = vector.broadcast %12 : vector<1x8xf32> to vector<64x8xf32>
    %14 = arith.divf %10, %13 : vector<64x8xf32>
    %cst_6 = arith.constant dense<0.000000e+00> : vector<8x8xf32>
    %15 = tpu.matmul %14, %4, %cst_6 {dimension_numbers = #tpu.dot_dimension_numbers<[0], [0], [1], [1], [0, 1, 1, 1], [], []>} : vector<64x8xf32>, vector<64x8xf32>, vector<8x8xf32> -> vector<8x8xf32>
    %c0_7 = arith.constant 0 : index
    %c0_8 = arith.constant 0 : index
    %c0_9 = arith.constant 0 : index
    %16 = vector.load %arg3[%c0_7, %c0_8, %c0_9] : memref<1x8x8xf32, #tpu.memory_space<vmem>>, vector<1x8x8xf32>
    %17 = vector.shape_cast %16 : vector<1x8x8xf32> to vector<8x8xf32>
    %18 = vector.shape_cast %15 : vector<8x8xf32> to vector<1x8x8xf32>
    tpu.vector_store %arg3[%c0_7, %c0_8, %c0_9], %18 {strides = array<i32>} : memref<1x8x8xf32, #tpu.memory_space<vmem>>, vector<1x8x8xf32>,
    return
  }
  func.func @transform_0(%arg0: i32) -> (i32, i32, i32) {
    %c0_i32 = arith.constant 0 : i32
    %c0_i32_0 = arith.constant 0 : i32
    %c0_i32_1 = arith.constant 0 : i32
    return %arg0, %c0_i32, %c0_i32_0 : i32, i32, i32
  }
  func.func @transform_1(%arg0: i32) -> (i32, i32) {
    %c0_i32 = arith.constant 0 : i32
    %c0_i32_0 = arith.constant 0 : i32
    %c0_i32_1 = arith.constant 0 : i32
    return %c0_i32, %c0_i32_0 : i32, i32
  }
  func.func @transform_2(%arg0: i32) -> (i32, i32, i32) {
    %c0_i32 = arith.constant 0 : i32
    %c0_i32_0 = arith.constant 0 : i32
    %c0_i32_1 = arith.constant 0 : i32
    return %arg0, %c0_i32, %c0_i32_0 : i32, i32, i32
  }
}

module attributes {stable_mosaic.version = 11 : i64} {
  func.func @_attn_ffn_kernel(%arg0: i32, %arg1: memref<1x64x8xf32, #tpu.memory_space<vmem>>, %arg2: memref<1x8x8xf32, #tpu.memory_space<vmem>>, %arg3: memref<8x64xf32, #tpu.memory_space<vmem>>, %arg4: memref<1x64xf32, #tpu.memory_space<vmem>>, %arg5: memref<8x64xf32, #tpu.memory_space<vmem>>, %arg6: memref<1x64xf32, #tpu.memory_space<vmem>>, %arg7: memref<32x8xf32, #tpu.memory_space<vmem>>, %arg8: memref<32x8xf32, #tpu.memory_space<vmem>>, %arg9: memref<1x8xf32, #tpu.memory_space<vmem>>, %arg10: memref<1x8xf32, #tpu.memory_space<vmem>>, %arg11: memref<8x8xf32, #tpu.memory_space<vmem>>, %arg12: memref<1x8xf32, #tpu.memory_space<vmem>>, %arg13: memref<1x8xf32, #tpu.memory_space<vmem>>, %arg14: memref<8x8xf32, #tpu.memory_space<vmem>>, %arg15: memref<1x64x8xf32, #tpu.memory_space<vmem>>, %arg16: memref<1x8x8xf32, #tpu.memory_space<vmem>>) attributes {dimension_semantics = [#tpu.dimension_semantics<parallel>], iteration_bounds = array<i64: 2>, scalar_prefetch = 0 : i64, scratch_operands = 0 : i64, tpu.core_type = #tpu.core_type<tc>, window_params = [{transform_indices = @transform_0, window_bounds = array<i64: 1, 64, 8>}, {transform_indices = @transform_1, window_bounds = array<i64: 1, 8, 8>}, {pipeline_mode = #tpu.pipeline_mode<synchronous>, transform_indices = @transform_2, window_bounds = array<i64: 8, 64>}, {pipeline_mode = #tpu.pipeline_mode<synchronous>, transform_indices = @transform_3, window_bounds = array<i64: 1, 64>}, {pipeline_mode = #tpu.pipeline_mode<synchronous>, transform_indices = @transform_4, window_bounds = array<i64: 8, 64>}, {pipeline_mode = #tpu.pipeline_mode<synchronous>, transform_indices = @transform_5, window_bounds = array<i64: 1, 64>}, {pipeline_mode = #tpu.pipeline_mode<synchronous>, transform_indices = @transform_6, window_bounds = array<i64: 32, 8>}, {pipeline_mode = #tpu.pipeline_mode<synchronous>, transform_indices = @transform_7, window_bounds = array<i64: 32, 8>}, {pipeline_mode = #tpu.pipeline_mode<synchronous>, transform_indices = @transform_8, window_bounds = array<i64: 1, 8>}, {pipeline_mode = #tpu.pipeline_mode<synchronous>, transform_indices = @transform_9, window_bounds = array<i64: 1, 8>}, {pipeline_mode = #tpu.pipeline_mode<synchronous>, transform_indices = @transform_10, window_bounds = array<i64: 8, 8>}, {pipeline_mode = #tpu.pipeline_mode<synchronous>, transform_indices = @transform_11, window_bounds = array<i64: 1, 8>}, {pipeline_mode = #tpu.pipeline_mode<synchronous>, transform_indices = @transform_12, window_bounds = array<i64: 1, 8>}, {pipeline_mode = #tpu.pipeline_mode<synchronous>, transform_indices = @transform_13, window_bounds = array<i64: 8, 8>}, {transform_indices = @transform_14, window_bounds = array<i64: 1, 64, 8>}, {transform_indices = @transform_15, window_bounds = array<i64: 1, 8, 8>}]} {
    %c0 = arith.constant 0 : index
    %c0_0 = arith.constant 0 : index
    %c0_1 = arith.constant 0 : index
    %0 = vector.load %arg1[%c0, %c0_0, %c0_1] : memref<1x64x8xf32, #tpu.memory_space<vmem>>, vector<1x64x8xf32>
    %1 = vector.shape_cast %0 : vector<1x64x8xf32> to vector<64x8xf32>
    %c0_2 = arith.constant 0 : index
    %c0_3 = arith.constant 0 : index
    %c0_4 = arith.constant 0 : index
    %2 = vector.load %arg2[%c0_2, %c0_3, %c0_4] : memref<1x8x8xf32, #tpu.memory_space<vmem>>, vector<1x8x8xf32>
    %3 = vector.shape_cast %2 : vector<1x8x8xf32> to vector<8x8xf32>
    %c0_5 = arith.constant 0 : index
    %c0_6 = arith.constant 0 : index
    %4 = vector.load %arg3[%c0_5, %c0_6] : memref<8x64xf32, #tpu.memory_space<vmem>>, vector<8x64xf32>
    %cst = arith.constant dense<0.000000e+00> : vector<64x64xf32>
    %5 = tpu.matmul %1, %4, %cst {dimension_numbers = #tpu.dot_dimension_numbers<[1], [0], [0], [1], [0, 0, 1, 1], [], []>} : vector<64x8xf32>, vector<8x64xf32>, vector<64x64xf32> -> vector<64x64xf32>
    %c0_7 = arith.constant 0 : index
    %c0_8 = arith.constant 0 : index
    %6 = vector.load %arg4[%c0_7, %c0_8] : memref<1x64xf32, #tpu.memory_space<vmem>>, vector<1x64xf32>
    %7 = vector.broadcast %6 : vector<1x64xf32> to vector<64x64xf32>
    %8 = arith.addf %5, %7 : vector<64x64xf32>
    %c0_9 = arith.constant 0 : index
    %c0_10 = arith.constant 0 : index
    %9 = vector.load %arg5[%c0_9, %c0_10] : memref<8x64xf32, #tpu.memory_space<vmem>>, vector<8x64xf32>
    %cst_11 = arith.constant dense<0.000000e+00> : vector<8x64xf32>
    %10 = tpu.matmul %3, %9, %cst_11 {dimension_numbers = #tpu.dot_dimension_numbers<[1], [0], [0], [1], [0, 0, 1, 1], [], []>} : vector<8x8xf32>, vector<8x64xf32>, vector<8x64xf32> -> vector<8x64xf32>
    %c0_12 = arith.constant 0 : index
    %c0_13 = arith.constant 0 : index
    %11 = vector.load %arg6[%c0_12, %c0_13] : memref<1x64xf32, #tpu.memory_space<vmem>>, vector<1x64xf32>
    %12 = vector.broadcast %11 : vector<1x64xf32> to vector<8x64xf32>
    %13 = arith.addf %10, %12 : vector<8x64xf32>
    %c0_14 = arith.constant 0 : index
    %c0_15 = arith.constant 0 : index
    %14 = vector.load %arg7[%c0_14, %c0_15] : memref<32x8xf32, #tpu.memory_space<vmem>>, vector<32x8xf32>
    %c0_16 = arith.constant 0 : index
    %c0_17 = arith.constant 0 : index
    %15 = vector.load %arg8[%c0_16, %c0_17] : memref<32x8xf32, #tpu.memory_space<vmem>>, vector<32x8xf32>
    %cst_18 = arith.constant 0.000000e+00 : f32
    %16 = vector.broadcast %cst_18 : f32 to vector<64x8xf32>
    %cst_19 = arith.constant 0.000000e+00 : f32
    %17 = vector.broadcast %cst_19 : f32 to vector<8x8xf32>
    %18 = vector.extract_strided_slice %8 {offsets = [0, 0], sizes = [64, 16], strides = [1, 1]} : vector<64x64xf32> to vector<64x16xf32>
    %19 = vector.extract_strided_slice %8 {offsets = [0, 32], sizes = [64, 16], strides = [1, 1]} : vector<64x64xf32> to vector<64x16xf32>
    %20 = vector.extract_strided_slice %13 {offsets = [0, 0], sizes = [8, 16], strides = [1, 1]} : vector<8x64xf32> to vector<8x16xf32>
    %21 = vector.extract_strided_slice %13 {offsets = [0, 32], sizes = [8, 16], strides = [1, 1]} : vector<8x64xf32> to vector<8x16xf32>
    %cst_20 = arith.constant dense<0.000000e+00> : vector<64x8xf32>
    %22 = tpu.matmul %18, %20, %cst_20 {dimension_numbers = #tpu.dot_dimension_numbers<[1], [1], [0], [0], [0, 0, 1, 0], [], []>} : vector<64x16xf32>, vector<8x16xf32>, vector<64x8xf32> -> vector<64x8xf32>
    %cst_21 = arith.constant 2.500000e-01 : f32
    %23 = vector.broadcast %cst_21 : f32 to vector<64x8xf32>
    %24 = arith.mulf %22, %23 : vector<64x8xf32>
    %cst_22 = arith.constant dense<0xFF800000> : vector<64xf32>
    %25 = vector.multi_reduction <maximumf>, %24, %cst_22 [1] : vector<64x8xf32> to vector<64xf32>
    %26 = vector.shape_cast %25 : vector<64xf32> to vector<64x1xf32>
    %27 = vector.broadcast %26 : vector<64x1xf32> to vector<64x8xf32>
    %28 = arith.subf %24, %27 : vector<64x8xf32>
    %29 = math.exp %28 : vector<64x8xf32>
    %cst_23 = arith.constant dense<0.000000e+00> : vector<64xf32>
    %30 = vector.multi_reduction <add>, %29, %cst_23 [1] : vector<64x8xf32> to vector<64xf32>
    %31 = vector.shape_cast %30 : vector<64xf32> to vector<64x1xf32>
    %32 = vector.broadcast %31 : vector<64x1xf32> to vector<64x8xf32>
    %33 = arith.divf %29, %32 : vector<64x8xf32>
    %cst_24 = arith.constant dense<0xFF800000> : vector<8xf32>
    %34 = vector.multi_reduction <maximumf>, %24, %cst_24 [0] : vector<64x8xf32> to vector<8xf32>
    %35 = vector.shape_cast %34 : vector<8xf32> to vector<1x8xf32>
    %36 = vector.broadcast %35 : vector<1x8xf32> to vector<64x8xf32>
    %37 = arith.subf %24, %36 : vector<64x8xf32>
    %38 = math.exp %37 : vector<64x8xf32>
    %cst_25 = arith.constant dense<0.000000e+00> : vector<8xf32>
    %39 = vector.multi_reduction <add>, %38, %cst_25 [0] : vector<64x8xf32> to vector<8xf32>
    %40 = vector.shape_cast %39 : vector<8xf32> to vector<1x8xf32>
    %41 = vector.broadcast %40 : vector<1x8xf32> to vector<64x8xf32>
    %42 = arith.divf %38, %41 : vector<64x8xf32>
    %cst_26 = arith.constant dense<0.000000e+00> : vector<64x16xf32>
    %43 = tpu.matmul %33, %21, %cst_26 {dimension_numbers = #tpu.dot_dimension_numbers<[1], [0], [0], [1], [0, 0, 1, 1], [], []>} : vector<64x8xf32>, vector<8x16xf32>, vector<64x16xf32> -> vector<64x16xf32>
    %cst_27 = arith.constant dense<0.000000e+00> : vector<8x16xf32>
    %44 = tpu.matmul %42, %19, %cst_27 {dimension_numbers = #tpu.dot_dimension_numbers<[0], [0], [1], [1], [0, 1, 1, 1], [], []>} : vector<64x8xf32>, vector<64x16xf32>, vector<8x16xf32> -> vector<8x16xf32>
    %45 = vector.extract_strided_slice %14 {offsets = [0, 0], sizes = [16, 8], strides = [1, 1]} : vector<32x8xf32> to vector<16x8xf32>
    %cst_28 = arith.constant dense<0.000000e+00> : vector<64x8xf32>
    %46 = tpu.matmul %43, %45, %cst_28 {dimension_numbers = #tpu.dot_dimension_numbers<[1], [0], [0], [1], [0, 0, 1, 1], [], []>} : vector<64x16xf32>, vector<16x8xf32>, vector<64x8xf32> -> vector<64x8xf32>
    %47 = arith.addf %16, %46 : vector<64x8xf32>
    %48 = vector.extract_strided_slice %15 {offsets = [0, 0], sizes = [16, 8], strides = [1, 1]} : vector<32x8xf32> to vector<16x8xf32>
    %cst_29 = arith.constant dense<0.000000e+00> : vector<8x8xf32>
    %49 = tpu.matmul %44, %48, %cst_29 {dimension_numbers = #tpu.dot_dimension_numbers<[1], [0], [0], [1], [0, 0, 1, 1], [], []>} : vector<8x16xf32>, vector<16x8xf32>, vector<8x8xf32> -> vector<8x8xf32>
    %50 = arith.addf %17, %49 : vector<8x8xf32>
    %51 = vector.extract_strided_slice %8 {offsets = [0, 16], sizes = [64, 16], strides = [1, 1]} : vector<64x64xf32> to vector<64x16xf32>
    %52 = vector.extract_strided_slice %8 {offsets = [0, 48], sizes = [64, 16], strides = [1, 1]} : vector<64x64xf32> to vector<64x16xf32>
    %53 = vector.extract_strided_slice %13 {offsets = [0, 16], sizes = [8, 16], strides = [1, 1]} : vector<8x64xf32> to vector<8x16xf32>
    %54 = vector.extract_strided_slice %13 {offsets = [0, 48], sizes = [8, 16], strides = [1, 1]} : vector<8x64xf32> to vector<8x16xf32>
    %cst_30 = arith.constant dense<0.000000e+00> : vector<64x8xf32>
    %55 = tpu.matmul %51, %53, %cst_30 {dimension_numbers = #tpu.dot_dimension_numbers<[1], [1], [0], [0], [0, 0, 1, 0], [], []>} : vector<64x16xf32>, vector<8x16xf32>, vector<64x8xf32> -> vector<64x8xf32>
    %cst_31 = arith.constant 2.500000e-01 : f32
    %56 = vector.broadcast %cst_31 : f32 to vector<64x8xf32>
    %57 = arith.mulf %55, %56 : vector<64x8xf32>
    %cst_32 = arith.constant dense<0xFF800000> : vector<64xf32>
    %58 = vector.multi_reduction <maximumf>, %57, %cst_32 [1] : vector<64x8xf32> to vector<64xf32>
    %59 = vector.shape_cast %58 : vector<64xf32> to vector<64x1xf32>
    %60 = vector.broadcast %59 : vector<64x1xf32> to vector<64x8xf32>
    %61 = arith.subf %57, %60 : vector<64x8xf32>
    %62 = math.exp %61 : vector<64x8xf32>
    %cst_33 = arith.constant dense<0.000000e+00> : vector<64xf32>
    %63 = vector.multi_reduction <add>, %62, %cst_33 [1] : vector<64x8xf32> to vector<64xf32>
    %64 = vector.shape_cast %63 : vector<64xf32> to vector<64x1xf32>
    %65 = vector.broadcast %64 : vector<64x1xf32> to vector<64x8xf32>
    %66 = arith.divf %62, %65 : vector<64x8xf32>
    %cst_34 = arith.constant dense<0xFF800000> : vector<8xf32>
    %67 = vector.multi_reduction <maximumf>, %57, %cst_34 [0] : vector<64x8xf32> to vector<8xf32>
    %68 = vector.shape_cast %67 : vector<8xf32> to vector<1x8xf32>
    %69 = vector.broadcast %68 : vector<1x8xf32> to vector<64x8xf32>
    %70 = arith.subf %57, %69 : vector<64x8xf32>
    %71 = math.exp %70 : vector<64x8xf32>
    %cst_35 = arith.constant dense<0.000000e+00> : vector<8xf32>
    %72 = vector.multi_reduction <add>, %71, %cst_35 [0] : vector<64x8xf32> to vector<8xf32>
    %73 = vector.shape_cast %72 : vector<8xf32> to vector<1x8xf32>
    %74 = vector.broadcast %73 : vector<1x8xf32> to vector<64x8xf32>
    %75 = arith.divf %71, %74 : vector<64x8xf32>
    %cst_36 = arith.constant dense<0.000000e+00> : vector<64x16xf32>
    %76 = tpu.matmul %66, %54, %cst_36 {dimension_numbers = #tpu.dot_dimension_numbers<[1], [0], [0], [1], [0, 0, 1, 1], [], []>} : vector<64x8xf32>, vector<8x16xf32>, vector<64x16xf32> -> vector<64x16xf32>
    %cst_37 = arith.constant dense<0.000000e+00> : vector<8x16xf32>
    %77 = tpu.matmul %75, %52, %cst_37 {dimension_numbers = #tpu.dot_dimension_numbers<[0], [0], [1], [1], [0, 1, 1, 1], [], []>} : vector<64x8xf32>, vector<64x16xf32>, vector<8x16xf32> -> vector<8x16xf32>
    %78 = vector.extract_strided_slice %14 {offsets = [16, 0], sizes = [16, 8], strides = [1, 1]} : vector<32x8xf32> to vector<16x8xf32>
    %cst_38 = arith.constant dense<0.000000e+00> : vector<64x8xf32>
    %79 = tpu.matmul %76, %78, %cst_38 {dimension_numbers = #tpu.dot_dimension_numbers<[1], [0], [0], [1], [0, 0, 1, 1], [], []>} : vector<64x16xf32>, vector<16x8xf32>, vector<64x8xf32> -> vector<64x8xf32>
    %80 = arith.addf %47, %79 : vector<64x8xf32>
    %81 = vector.extract_strided_slice %15 {offsets = [16, 0], sizes = [16, 8], strides = [1, 1]} : vector<32x8xf32> to vector<16x8xf32>
    %cst_39 = arith.constant dense<0.000000e+00> : vector<8x8xf32>
    %82 = tpu.matmul %77, %81, %cst_39 {dimension_numbers = #tpu.dot_dimension_numbers<[1], [0], [0], [1], [0, 0, 1, 1], [], []>} : vector<8x16xf32>, vector<16x8xf32>, vector<8x8xf32> -> vector<8x8xf32>
    %83 = arith.addf %50, %82 : vector<8x8xf32>
    %84 = arith.addf %83, %3 : vector<8x8xf32>
    %c0_40 = arith.constant 0 : index
    %c0_41 = arith.constant 0 : index
    %c0_42 = arith.constant 0 : index
    %85 = vector.load %arg16[%c0_40, %c0_41, %c0_42] : memref<1x8x8xf32, #tpu.memory_space<vmem>>, vector<1x8x8xf32>
    %86 = vector.shape_cast %85 : vector<1x8x8xf32> to vector<8x8xf32>
    %87 = vector.shape_cast %84 : vector<8x8xf32> to vector<1x8x8xf32>
    tpu.vector_store %arg16[%c0_40, %c0_41, %c0_42], %87 {strides = array<i32>} : memref<1x8x8xf32, #tpu.memory_space<vmem>>, vector<1x8x8xf32>,
    %88 = arith.addf %80, %1 : vector<64x8xf32>
    %c0_43 = arith.constant 0 : index
    %c0_44 = arith.constant 0 : index
    %89 = vector.load %arg9[%c0_43, %c0_44] : memref<1x8xf32, #tpu.memory_space<vmem>>, vector<1x8xf32>
    %90 = vector.broadcast %89 : vector<1x8xf32> to vector<64x8xf32>
    %91 = arith.mulf %88, %90 : vector<64x8xf32>
    %c0_45 = arith.constant 0 : index
    %c0_46 = arith.constant 0 : index
    %92 = vector.load %arg10[%c0_45, %c0_46] : memref<1x8xf32, #tpu.memory_space<vmem>>, vector<1x8xf32>
    %93 = vector.broadcast %92 : vector<1x8xf32> to vector<64x8xf32>
    %94 = arith.addf %91, %93 : vector<64x8xf32>
    %cst_47 = arith.constant 5.000000e-01 : f32
    %95 = vector.broadcast %cst_47 : f32 to vector<64x8xf32>
    %96 = arith.mulf %95, %94 : vector<64x8xf32>
    %cst_48 = arith.constant 0.707106769 : f32
    %97 = vector.broadcast %cst_48 : f32 to vector<64x8xf32>
    %98 = arith.mulf %94, %97 : vector<64x8xf32>
    %99 = math.absf %98 : vector<64x8xf32>
    %cst_49 = arith.constant 0.327591091 : f32
    %100 = vector.broadcast %cst_49 : f32 to vector<64x8xf32>
    %101 = arith.mulf %100, %99 : vector<64x8xf32>
    %cst_50 = arith.constant 1.000000e+00 : f32
    %102 = vector.broadcast %cst_50 : f32 to vector<64x8xf32>
    %103 = arith.addf %102, %101 : vector<64x8xf32>
    %cst_51 = arith.constant 1.000000e+00 : f32
    %104 = vector.broadcast %cst_51 : f32 to vector<64x8xf32>
    %105 = arith.divf %104, %103 : vector<64x8xf32>
    %cst_52 = arith.constant 1.06140542 : f32
    %106 = vector.broadcast %cst_52 : f32 to vector<64x8xf32>
    %107 = arith.mulf %106, %105 : vector<64x8xf32>
    %cst_53 = arith.constant -1.45315206 : f32
    %108 = vector.broadcast %cst_53 : f32 to vector<64x8xf32>
    %109 = arith.addf %107, %108 : vector<64x8xf32>
    %110 = arith.mulf %109, %105 : vector<64x8xf32>
    %cst_54 = arith.constant 1.42141378 : f32
    %111 = vector.broadcast %cst_54 : f32 to vector<64x8xf32>
    %112 = arith.addf %110, %111 : vector<64x8xf32>
    %113 = arith.mulf %112, %105 : vector<64x8xf32>
    %cst_55 = arith.constant -0.284496725 : f32
    %114 = vector.broadcast %cst_55 : f32 to vector<64x8xf32>
    %115 = arith.addf %113, %114 : vector<64x8xf32>
    %116 = arith.mulf %115, %105 : vector<64x8xf32>
    %cst_56 = arith.constant 0.254829586 : f32
    %117 = vector.broadcast %cst_56 : f32 to vector<64x8xf32>
    %118 = arith.addf %116, %117 : vector<64x8xf32>
    %119 = arith.mulf %118, %105 : vector<64x8xf32>
    %cst_57 = arith.constant 0.000000e+00 : f32
    %120 = vector.broadcast %cst_57 : f32 to vector<64x8xf32>
    %121 = arith.subf %120, %99 : vector<64x8xf32>
    %122 = arith.mulf %121, %99 : vector<64x8xf32>
    %123 = math.exp %122 : vector<64x8xf32>
    %124 = arith.mulf %119, %123 : vector<64x8xf32>
    %cst_58 = arith.constant 1.000000e+00 : f32
    %125 = vector.broadcast %cst_58 : f32 to vector<64x8xf32>
    %126 = arith.subf %125, %124 : vector<64x8xf32>
    %cst_59 = arith.constant 0.000000e+00 : f32
    %127 = vector.broadcast %cst_59 : f32 to vector<64x8xf32>
    %128 = arith.cmpf olt, %98, %127 : vector<64x8xf32>
    %cst_60 = arith.constant 0.000000e+00 : f32
    %129 = vector.broadcast %cst_60 : f32 to vector<64x8xf32>
    %130 = arith.subf %129, %126 : vector<64x8xf32>
    %131 = arith.select %128, %130, %126 : vector<64x8xi1>, vector<64x8xf32>
    %cst_61 = arith.constant 1.000000e+00 : f32
    %132 = vector.broadcast %cst_61 : f32 to vector<64x8xf32>
    %133 = arith.addf %132, %131 : vector<64x8xf32>
    %134 = arith.mulf %96, %133 : vector<64x8xf32>
    %c0_62 = arith.constant 0 : index
    %c0_63 = arith.constant 0 : index
    %135 = vector.load %arg11[%c0_62, %c0_63] : memref<8x8xf32, #tpu.memory_space<vmem>>, vector<8x8xf32>
    %cst_64 = arith.constant dense<0.000000e+00> : vector<64x8xf32>
    %136 = tpu.matmul %134, %135, %cst_64 {dimension_numbers = #tpu.dot_dimension_numbers<[1], [0], [0], [1], [0, 0, 1, 1], [], []>} : vector<64x8xf32>, vector<8x8xf32>, vector<64x8xf32> -> vector<64x8xf32>
    %c0_65 = arith.constant 0 : index
    %c0_66 = arith.constant 0 : index
    %137 = vector.load %arg12[%c0_65, %c0_66] : memref<1x8xf32, #tpu.memory_space<vmem>>, vector<1x8xf32>
    %138 = vector.broadcast %137 : vector<1x8xf32> to vector<64x8xf32>
    %139 = arith.mulf %136, %138 : vector<64x8xf32>
    %c0_67 = arith.constant 0 : index
    %c0_68 = arith.constant 0 : index
    %140 = vector.load %arg13[%c0_67, %c0_68] : memref<1x8xf32, #tpu.memory_space<vmem>>, vector<1x8xf32>
    %141 = vector.broadcast %140 : vector<1x8xf32> to vector<64x8xf32>
    %142 = arith.addf %139, %141 : vector<64x8xf32>
    %cst_69 = arith.constant 5.000000e-01 : f32
    %143 = vector.broadcast %cst_69 : f32 to vector<64x8xf32>
    %144 = arith.mulf %143, %142 : vector<64x8xf32>
    %cst_70 = arith.constant 0.707106769 : f32
    %145 = vector.broadcast %cst_70 : f32 to vector<64x8xf32>
    %146 = arith.mulf %142, %145 : vector<64x8xf32>
    %147 = math.absf %146 : vector<64x8xf32>
    %cst_71 = arith.constant 0.327591091 : f32
    %148 = vector.broadcast %cst_71 : f32 to vector<64x8xf32>
    %149 = arith.mulf %148, %147 : vector<64x8xf32>
    %cst_72 = arith.constant 1.000000e+00 : f32
    %150 = vector.broadcast %cst_72 : f32 to vector<64x8xf32>
    %151 = arith.addf %150, %149 : vector<64x8xf32>
    %cst_73 = arith.constant 1.000000e+00 : f32
    %152 = vector.broadcast %cst_73 : f32 to vector<64x8xf32>
    %153 = arith.divf %152, %151 : vector<64x8xf32>
    %cst_74 = arith.constant 1.06140542 : f32
    %154 = vector.broadcast %cst_74 : f32 to vector<64x8xf32>
    %155 = arith.mulf %154, %153 : vector<64x8xf32>
    %cst_75 = arith.constant -1.45315206 : f32
    %156 = vector.broadcast %cst_75 : f32 to vector<64x8xf32>
    %157 = arith.addf %155, %156 : vector<64x8xf32>
    %158 = arith.mulf %157, %153 : vector<64x8xf32>
    %cst_76 = arith.constant 1.42141378 : f32
    %159 = vector.broadcast %cst_76 : f32 to vector<64x8xf32>
    %160 = arith.addf %158, %159 : vector<64x8xf32>
    %161 = arith.mulf %160, %153 : vector<64x8xf32>
    %cst_77 = arith.constant -0.284496725 : f32
    %162 = vector.broadcast %cst_77 : f32 to vector<64x8xf32>
    %163 = arith.addf %161, %162 : vector<64x8xf32>
    %164 = arith.mulf %163, %153 : vector<64x8xf32>
    %cst_78 = arith.constant 0.254829586 : f32
    %165 = vector.broadcast %cst_78 : f32 to vector<64x8xf32>
    %166 = arith.addf %164, %165 : vector<64x8xf32>
    %167 = arith.mulf %166, %153 : vector<64x8xf32>
    %cst_79 = arith.constant 0.000000e+00 : f32
    %168 = vector.broadcast %cst_79 : f32 to vector<64x8xf32>
    %169 = arith.subf %168, %147 : vector<64x8xf32>
    %170 = arith.mulf %169, %147 : vector<64x8xf32>
    %171 = math.exp %170 : vector<64x8xf32>
    %172 = arith.mulf %167, %171 : vector<64x8xf32>
    %cst_80 = arith.constant 1.000000e+00 : f32
    %173 = vector.broadcast %cst_80 : f32 to vector<64x8xf32>
    %174 = arith.subf %173, %172 : vector<64x8xf32>
    %cst_81 = arith.constant 0.000000e+00 : f32
    %175 = vector.broadcast %cst_81 : f32 to vector<64x8xf32>
    %176 = arith.cmpf olt, %146, %175 : vector<64x8xf32>
    %cst_82 = arith.constant 0.000000e+00 : f32
    %177 = vector.broadcast %cst_82 : f32 to vector<64x8xf32>
    %178 = arith.subf %177, %174 : vector<64x8xf32>
    %179 = arith.select %176, %178, %174 : vector<64x8xi1>, vector<64x8xf32>
    %cst_83 = arith.constant 1.000000e+00 : f32
    %180 = vector.broadcast %cst_83 : f32 to vector<64x8xf32>
    %181 = arith.addf %180, %179 : vector<64x8xf32>
    %182 = arith.mulf %144, %181 : vector<64x8xf32>
    %c0_84 = arith.constant 0 : index
    %c0_85 = arith.constant 0 : index
    %183 = vector.load %arg14[%c0_84, %c0_85] : memref<8x8xf32, #tpu.memory_space<vmem>>, vector<8x8xf32>
    %cst_86 = arith.constant dense<0.000000e+00> : vector<64x8xf32>
    %184 = tpu.matmul %182, %183, %cst_86 {dimension_numbers = #tpu.dot_dimension_numbers<[1], [0], [0], [1], [0, 0, 1, 1], [], []>} : vector<64x8xf32>, vector<8x8xf32>, vector<64x8xf32> -> vector<64x8xf32>
    %185 = arith.addf %184, %88 : vector<64x8xf32>
    %c0_87 = arith.constant 0 : index
    %c0_88 = arith.constant 0 : index
    %c0_89 = arith.constant 0 : index
    %186 = vector.load %arg15[%c0_87, %c0_88, %c0_89] : memref<1x64x8xf32, #tpu.memory_space<vmem>>, vector<1x64x8xf32>
    %187 = vector.shape_cast %186 : vector<1x64x8xf32> to vector<64x8xf32>
    %188 = vector.shape_cast %185 : vector<64x8xf32> to vector<1x64x8xf32>
    tpu.vector_store %arg15[%c0_87, %c0_88, %c0_89], %188 {strides = array<i32>} : memref<1x64x8xf32, #tpu.memory_space<vmem>>, vector<1x64x8xf32>,
    return
  }
  func.func @transform_0(%arg0: i32) -> (i32, i32, i32) {
    %c0_i32 = arith.constant 0 : i32
    %c0_i32_0 = arith.constant 0 : i32
    %c0_i32_1 = arith.constant 0 : i32
    return %arg0, %c0_i32, %c0_i32_0 : i32, i32, i32
  }
  func.func @transform_1(%arg0: i32) -> (i32, i32, i32) {
    %c0_i32 = arith.constant 0 : i32
    %c0_i32_0 = arith.constant 0 : i32
    %c0_i32_1 = arith.constant 0 : i32
    return %arg0, %c0_i32, %c0_i32_0 : i32, i32, i32
  }
  func.func @transform_2(%arg0: i32) -> (i32, i32) {
    %c0_i32 = arith.constant 0 : i32
    %c0_i32_0 = arith.constant 0 : i32
    %c0_i32_1 = arith.constant 0 : i32
    return %c0_i32, %c0_i32_0 : i32, i32
  }
  func.func @transform_3(%arg0: i32) -> (i32, i32) {
    %c0_i32 = arith.constant 0 : i32
    %c0_i32_0 = arith.constant 0 : i32
    %c0_i32_1 = arith.constant 0 : i32
    return %c0_i32, %c0_i32_0 : i32, i32
  }
  func.func @transform_4(%arg0: i32) -> (i32, i32) {
    %c0_i32 = arith.constant 0 : i32
    %c0_i32_0 = arith.constant 0 : i32
    %c0_i32_1 = arith.constant 0 : i32
    return %c0_i32, %c0_i32_0 : i32, i32
  }
  func.func @transform_5(%arg0: i32) -> (i32, i32) {
    %c0_i32 = arith.constant 0 : i32
    %c0_i32_0 = arith.constant 0 : i32
    %c0_i32_1 = arith.constant 0 : i32
    return %c0_i32, %c0_i32_0 : i32, i32
  }
  func.func @transform_6(%arg0: i32) -> (i32, i32) {
    %c0_i32 = arith.constant 0 : i32
    %c0_i32_0 = arith.constant 0 : i32
    %c0_i32_1 = arith.constant 0 : i32
    return %c0_i32, %c0_i32_0 : i32, i32
  }
  func.func @transform_7(%arg0: i32) -> (i32, i32) {
    %c0_i32 = arith.constant 0 : i32
    %c0_i32_0 = arith.constant 0 : i32
    %c0_i32_1 = arith.constant 0 : i32
    return %c0_i32, %c0_i32_0 : i32, i32
  }
  func.func @transform_8(%arg0: i32) -> (i32, i32) {
    %c0_i32 = arith.constant 0 : i32
    %c0_i32_0 = arith.constant 0 : i32
    %c0_i32_1 = arith.constant 0 : i32
    return %c0_i32, %c0_i32_0 : i32, i32
  }
  func.func @transform_9(%arg0: i32) -> (i32, i32) {
    %c0_i32 = arith.constant 0 : i32
    %c0_i32_0 = arith.constant 0 : i32
    %c0_i32_1 = arith.constant 0 : i32
    return %c0_i32, %c0_i32_0 : i32, i32
  }
  func.func @transform_10(%arg0: i32) -> (i32, i32) {
    %c0_i32 = arith.constant 0 : i32
    %c0_i32_0 = arith.constant 0 : i32
    %c0_i32_1 = arith.constant 0 : i32
    return %c0_i32, %c0_i32_0 : i32, i32
  }
  func.func @transform_11(%arg0: i32) -> (i32, i32) {
    %c0_i32 = arith.constant 0 : i32
    %c0_i32_0 = arith.constant 0 : i32
    %c0_i32_1 = arith.constant 0 : i32
    return %c0_i32, %c0_i32_0 : i32, i32
  }
  func.func @transform_12(%arg0: i32) -> (i32, i32) {
    %c0_i32 = arith.constant 0 : i32
    %c0_i32_0 = arith.constant 0 : i32
    %c0_i32_1 = arith.constant 0 : i32
    return %c0_i32, %c0_i32_0 : i32, i32
  }
  func.func @transform_13(%arg0: i32) -> (i32, i32) {
    %c0_i32 = arith.constant 0 : i32
    %c0_i32_0 = arith.constant 0 : i32
    %c0_i32_1 = arith.constant 0 : i32
    return %c0_i32, %c0_i32_0 : i32, i32
  }
  func.func @transform_14(%arg0: i32) -> (i32, i32, i32) {
    %c0_i32 = arith.constant 0 : i32
    %c0_i32_0 = arith.constant 0 : i32
    %c0_i32_1 = arith.constant 0 : i32
    return %arg0, %c0_i32, %c0_i32_0 : i32, i32, i32
  }
  func.func @transform_15(%arg0: i32) -> (i32, i32, i32) {
    %c0_i32 = arith.constant 0 : i32
    %c0_i32_0 = arith.constant 0 : i32
    %c0_i32_1 = arith.constant 0 : i32
    return %arg0, %c0_i32, %c0_i32_0 : i32, i32, i32
  }
}

</mosaic_0001>

<bundles_post_ra>
// kernel: _lambda_.3
= control target key start
LH: loop header
LB: loop body
LE: loop exit
PB: predicated region body
PF: predicated region fallthrough
CT: control target
= control target key end

     0   :  { %s484_s12 = smov 0   ;;  %s535_s0 = inlined_call_operand.vmem [shape: f32[128,32], index: 0, kind: input, shape index: {}]   ;;  %s536_s1 = inlined_call_operand.vmem [shape: f32[32,8], index: 1, kind: input, shape index: {}]   ;;  %s537_s2 = inlined_call_operand.vmem [shape: f32[1,8], index: 2, kind: input, shape index: {}]   ;;  %s538_s3 = inlined_call_operand.vmem [shape: f32[128,8], index: 3, kind: output, shape index: {}]  }
   0x1 LB: > { %s388_s13 = sadd.s32 4294967295, %s462_s12   ;;  %p392_p0 = scmp.ge.s32.totalorder %s462_s12, 1  ;;  %s462_s12 = sphi %s484_s12, %s13_s12  }
   0x2   : > { %p138_p1 = scmp.lt.s32.totalorder %s462_s12, 3 }
   0x4   : > { %p139_p2 = pnand %p392_p0, %p138_p1 }
   0x5   : > { %s393_s18 = sshll.u32 (!%p139_p2), %s388_s13, 3 }
   0x6   : > { %142 = sbr.rel (%p139_p2) target bundleno = 223 (0xdf), region = 32  ;;  %p163_p3 = scmp.lt.s32.totalorder (!%p139_p2), %s393_s18, 15 }
   0xb   : > { %v185_v0 = vld [vmem:[%s536_s1 + $0x18] sm:$0xff]  ;;  %v184_v1 = vld [vmem:[%s536_s1 + $0x10] sm:$0xff]  ;;  %v183_v2 = vld [vmem:[%s536_s1 + $0x8] sm:$0xff]  ;;  %s540_s18 = smov (!%p163_p3, %s393_s18), 15  ;;  %vm193_vm0 = vcmask 261120   ;;  %vm323_vm1 = vcmask 64512  }
   0xc   : > { %420 = vmatprep.subr.mxu0 %v185_v0  ;;  %440 = vmatprep.subr.mxu1 %v185_v0  ;;  %v182_v3 = vld [vmem:[%s536_s1] sm:$0xff]  ;;  %s394_s23 = sshll.u32 %s540_s18, 3 }
   0xd   : > { %421 = vmatpush3.msra.mxu0 %v185_v0  ;;  %444 = vmatpush3.msra.mxu1 %v185_v0  ;;  %s166_s26 = scalar_lea.vmem %s535_s0, %s394_s23  ;;  %v397_v12 = vld [vmem:[%s537_s2] ss:$0 sm:$0xff]  ;;  %s172_s4 = scalar_lea.vmem %s538_s3, %s394_s23 }
   0xe   : > { %422 = vmatprep.subr.mxu0 %v184_v1  ;;  %441 = vmatprep.subr.mxu1 %v184_v1  ;;  %v174_v4 = vld [vmem:[%s166_s26] sm:$0xff]  ;;  %v175_v6 = vld [vmem:[%s166_s26 + $0x8] sm:$0xff]  ;;  %v176_v8 = vld [vmem:[%s166_s26 + $0x10] sm:$0xff] }
   0xf   : > { %423 = vmatpush3.msra.mxu0 %v184_v1  ;;  %445 = vmatpush3.msra.mxu1 %v184_v1  ;;  %v178_v5 = vld [vmem:[%s166_s26 + $0x20] sm:$0xff]  ;;  %v179_v7 = vld [vmem:[%s166_s26 + $0x28] sm:$0xff]  ;;  %v180_v9 = vld [vmem:[%s166_s26 + $0x30] sm:$0xff] }
  0x10   : > { %424 = vmatprep.subr.mxu0 %v183_v2  ;;  %442 = vmatprep.subr.mxu1 %v183_v2  ;;  %v177_v10 = vld [vmem:[%s166_s26 + $0x18] sm:$0xff] }
  0x11   : > { %425 = vmatpush3.msra.mxu0 %v183_v2  ;;  %446 = vmatpush3.msra.mxu1 %v183_v2  ;;  %v181_v11 = vld [vmem:[%s166_s26 + $0x38] sm:$0xff] }
  0x12   : > { %426 = vmatprep.subr.mxu0 %v182_v3  ;;  %443 = vmatprep.subr.mxu1 %v182_v3 }
  0x13   : > { %427 = vmatpush3.msra.mxu0 %v182_v3  ;;  %447 = vmatpush3.msra.mxu1 %v182_v3 }
  0x14   : > { %428 = vmatprep.mubr.msk.f32.mxu0 %vm193_vm0, %v174_v4  ;;  %434 = vmatprep.mubr.msk.f32.mxu1 %vm193_vm0, %v178_v5 }
  0x15   : > { %429 = vmatmul.mubr.msk.f32.vlgmr.msra.gmra.mxu0 %vm193_vm0, %v175_v6  ;;  %435 = vmatmul.mubr.msk.f32.vlgmr.msra.gmra.mxu1 %vm193_vm0, %v179_v7 }
  0x16   : > { %431 = vmatprep.mubr.msk.f32.mxu0 %vm193_vm0, %v176_v8  ;;  %437 = vmatprep.mubr.msk.f32.mxu1 %vm193_vm0, %v180_v9 }
  0x19   : > { %432 = vmatmul.mubr.msk.f32.gmra.mxu0 %vm193_vm0, %v177_v10  ;;  %438 = vmatmul.mubr.msk.f32.gmra.mxu1 %vm193_vm0, %v181_v11 }
  0xd5   : > { %v430_v13 = vpop.f32.mrf.mxu0  ;;  %v436_v14 = vpop.f32.mrf.mxu1 }
  0xd6   : > { %v290_v15 = vadd.f32 %v430_v13, %v397_v12  ;;  %v310_v16 = vadd.f32 %v436_v14, %v397_v12 }
  0xd7   : > { %v284_v17 = vpop.f32.mrf.mxu0  ;;  %v304_v18 = vpop.f32.mrf.mxu1 }
  0xd8   : > { %325 = vst.msk [vmem:[%s172_s4 + $0x8] sm:$0xff] %vm323_vm1, %v290_v15  ;;  %329 = vst.msk [vmem:[%s172_s4 + $0x28] sm:$0xff] %vm323_vm1, %v310_v16  ;;  %v285_v19 = vadd.f32 %v397_v12, %v284_v17  ;;  %v305_v20 = vadd.f32 %v397_v12, %v304_v18 }
  0xd9   : > { %v433_v21 = vpop.f32.mrf.mxu0  ;;  %v439_v22 = vpop.f32.mrf.mxu1 }
  0xda   : > { %324 = vst.msk [vmem:[%s172_s4] sm:$0xff] %vm323_vm1, %v285_v19  ;;  %328 = vst.msk [vmem:[%s172_s4 + $0x20] sm:$0xff] %vm323_vm1, %v305_v20  ;;  %v300_v23 = vadd.f32 %v433_v21, %v397_v12  ;;  %v320_v24 = vadd.f32 %v439_v22, %v397_v12 }
  0xdb   : > { %v294_v25 = vpop.f32.mrf.mxu0  ;;  %v314_v26 = vpop.f32.mrf.mxu1 }
  0xdc   : > { %327 = vst.msk [vmem:[%s172_s4 + $0x18] sm:$0xff] %vm323_vm1, %v300_v23  ;;  %331 = vst.msk [vmem:[%s172_s4 + $0x38] sm:$0xff] %vm323_vm1, %v320_v24  ;;  %v295_v27 = vadd.f32 %v397_v12, %v294_v25  ;;  %v315_v28 = vadd.f32 %v397_v12, %v314_v26 }
  0xde   : > { %326 = vst.msk [vmem:[%s172_s4 + $0x10] sm:$0xff] %vm323_vm1, %v295_v27  ;;  %330 = vst.msk [vmem:[%s172_s4 + $0x30] sm:$0xff] %vm323_vm1, %v315_v28 }
  0xdf PF: > { %s13_s12 = sadd.s32 1, %s462_s12  }
  0xe0   : > { %p10_p4 = scmp.ge.s32.totalorder %s13_s12, 4  }
  0xe2   :  { %12 = sbr.rel (!%p10_p4) target bundleno = 1 (0x1), region = 62 }

// kernel: _lambda_.4
= control target key start
LH: loop header
LB: loop body
LE: loop exit
PB: predicated region body
PF: predicated region fallthrough
CT: control target
= control target key end

     0   :  { %s687_s9 = smov 0   ;;  %s867_s0 = inlined_call_operand.vmem [shape: f32[2,64,216], index: 0, kind: input, shape index: {}]   ;;  %s868_s1 = inlined_call_operand.vmem [shape: f32[216,16], index: 1, kind: input, shape index: {}]   ;;  %s869_s2 = inlined_call_operand.vmem [shape: f32[2,8,8], index: 2, kind: output, shape index: {}]  }
   0x1 LB: > { %s584_s10 = sadd.s32 4294967295, %s667_s9   ;;  %p588_p0 = scmp.ge.s32.totalorder %s667_s9, 1  ;;  %s667_s9 = sphi %s687_s9, %s12_s9  }
   0x2   : > { %p112_p1 = scmp.lt.s32.totalorder %s667_s9, 3 }
   0x4   : > { %p113_p2 = pnand %p588_p0, %p112_p1 }
   0x5   : > { %p133_p3 = scmp.lt.s32.totalorder (!%p113_p2), %s584_s10, 1 }
   0x6   : > { %116 = sbr.rel (%p113_p2) target bundleno = 803 (0x323), region = 28 }
   0xb   : > { %v173_v0 = vld [vmem:[%s868_s1 + $0x78] sm:$0xff]  ;;  %v669_v1 = vmov 0.0   ;;  %v172_v2 = vld [vmem:[%s868_s1 + $0x70] sm:$0xff]  ;;  %s871_s10 = smov (!%p133_p3, %s584_s10), 1  ;;  %v171_v3 = vld [vmem:[%s868_s1 + $0x68] sm:$0xff]  ;;  %vm185_vm0 = vcmask 719872  }
   0xc   : > { %210 = vmatprep.subr.mxu0 %v669_v1  ;;  %613 = vmatprep.subr.mxu1 %v669_v1  ;;  %s603_s17 = sshll.u32 %s871_s10, 7  ;;  %v170_v4 = vld [vmem:[%s868_s1 + $0x60] sm:$0xff]  ;;  %v169_v5 = vld [vmem:[%s868_s1 + $0x58] sm:$0xff]  ;;  %v168_v6 = vld [vmem:[%s868_s1 + $0x50] sm:$0xff]  ;;  %vm315_vm1 = vcmask 130112   ;;  %vm671_vm2 = vmmov 0  }
   0xd   : > { %211 = vmatpush1.msra.mxu0 %v173_v0  ;;  %s717_s22 = scalar_lea.vmem %s867_s0, %s603_s17  ;;  %v167_v8 = vld [vmem:[%s868_s1 + $0x48] sm:$0xff]  ;;  %v166_v9 = vld [vmem:[%s868_s1 + $0x40] sm:$0xff]  ;;  %v165_v10 = vld [vmem:[%s868_s1 + $0x38] sm:$0xff]  ;;  %629 = vmatprep.mubr.msk.f32.mxu1 %vm671_vm2, %v669_v1  ;;  %vm455_vm3 = vcmask 523264   ;;  %s591_s18 = sshll.u32 %s871_s10, 3  ;;  %vm529_vm4 = vcmask 64512  }
   0xe   : > { %212 = vmatprep.subr.mxu0 %v669_v1  ;;  %v143_v7 = vld [vmem:[%s717_s22 + $0x8] sm:$0xff]  ;;  %v164_v11 = vld [vmem:[%s868_s1 + $0x30] sm:$0xff]  ;;  %v162_v13 = vld [vmem:[%s868_s1 + $0x20] sm:$0xff]  ;;  %s141_s21 = scalar_lea.vmem %s869_s2, %s591_s18 }
   0xf   : > { %213 = vmatpush1.msra.mxu0 %v172_v2  ;;  %592 = vmatprep.mubr.msk.f32.mxu0 %vm185_vm0, %v143_v7  ;;  %v163_v12 = vld [vmem:[%s868_s1 + $0x28] sm:$0xff]  ;;  %v161_v14 = vld [vmem:[%s868_s1 + $0x18] sm:$0xff]  ;;  %v160_v15 = vld [vmem:[%s868_s1 + $0x10] sm:$0xff] }
  0x10   : > { %214 = vmatprep.subr.mxu0 %v669_v1  ;;  %v159_v16 = vld [vmem:[%s868_s1 + $0x8] sm:$0xff]  ;;  %v158_v17 = vld [vmem:[%s868_s1] sm:$0xff]  ;;  %v184_v18 = vld [vmem:[%s868_s1 + $0xd0] sm:$0xff] }
  0x11   : > { %215 = vmatpush1.msra.mxu0 %v171_v3  ;;  %v183_v19 = vld [vmem:[%s868_s1 + $0xc8] sm:$0xff]  ;;  %v182_v20 = vld [vmem:[%s868_s1 + $0xc0] sm:$0xff]  ;;  %v181_v21 = vld [vmem:[%s868_s1 + $0xb8] sm:$0xff] }
  0x12   : > { %216 = vmatprep.subr.mxu0 %v669_v1  ;;  %v180_v22 = vld [vmem:[%s868_s1 + $0xb0] sm:$0xff]  ;;  %v179_v23 = vld [vmem:[%s868_s1 + $0xa8] sm:$0xff]  ;;  %v178_v24 = vld [vmem:[%s868_s1 + $0xa0] sm:$0xff] }
  0x13   : > { %217 = vmatpush1.msra.mxu0 %v170_v4  ;;  %v177_v25 = vld [vmem:[%s868_s1 + $0x98] sm:$0xff]  ;;  %v176_v26 = vld [vmem:[%s868_s1 + $0x90] sm:$0xff]  ;;  %v175_v27 = vld [vmem:[%s868_s1 + $0x88] sm:$0xff] }
  0x14   : > { %218 = vmatprep.subr.mxu0 %v669_v1  ;;  %v174_v28 = vld [vmem:[%s868_s1 + $0x80] sm:$0xff]  ;;  %v145_v30 = vld [vmem:[%s717_s22 + $0x18] sm:$0xff]  ;;  %v144_v31 = vld [vmem:[%s717_s22 + $0x10] sm:$0xff] }
  0x15   : > { %219 = vmatpush1.msra.mxu0 %v169_v5  ;;  %v142_v29 = vld [vmem:[%s717_s22] sm:$0xff]  ;;  %v147_v32 = vld [vmem:[%s717_s22 + $0x28] sm:$0xff]  ;;  %v149_v34 = vld [vmem:[%s717_s22 + $0x38] sm:$0xff] }
  0x16   : > { %220 = vmatprep.subr.mxu0 %v669_v1  ;;  %v146_v33 = vld [vmem:[%s717_s22 + $0x20] sm:$0xff]  ;;  %v148_v35 = vld [vmem:[%s717_s22 + $0x30] sm:$0xff]  ;;  %v151_v36 = vld [vmem:[%s717_s22 + $0x48] sm:$0xff] }
  0x17   : > { %221 = vmatpush1.msra.mxu0 %v168_v6  ;;  %v150_v37 = vld [vmem:[%s717_s22 + $0x40] sm:$0xff]  ;;  %v153_v38 = vld [vmem:[%s717_s22 + $0x58] sm:$0xff]  ;;  %v152_v39 = vld [vmem:[%s717_s22 + $0x50] sm:$0xff] }
  0x18   : > { %222 = vmatprep.subr.mxu0 %v669_v1  ;;  %v155_v40 = vld [vmem:[%s717_s22 + $0x68] sm:$0xff]  ;;  %v154_v41 = vld [vmem:[%s717_s22 + $0x60] sm:$0xff]  ;;  %v157_v42 = vld [vmem:[%s717_s22 + $0x78] sm:$0xff] }
  0x19   : > { %223 = vmatpush1.msra.mxu0 %v167_v8  ;;  %v156_v43 = vld [vmem:[%s717_s22 + $0x70] sm:$0xff]  ;;  %s670_s22 = smov 120  }
  0x1a   : > { %224 = vmatprep.subr.mxu0 %v669_v1 }
  0x1b   : > { %225 = vmatpush1.msra.mxu0 %v166_v9 }
  0x1c   : > { %226 = vmatprep.subr.mxu0 %v669_v1 }
  0x1d   : > { %227 = vmatpush1.msra.mxu0 %v165_v10 }
  0x1e   : > { %228 = vmatprep.subr.mxu0 %v669_v1 }
  0x1f   : > { %229 = vmatpush1.msra.mxu0 %v164_v11 }
  0x20   : > { %230 = vmatprep.subr.mxu0 %v669_v1 }
  0x21   : > { %231 = vmatpush1.msra.mxu0 %v163_v12 }
  0x22   : > { %232 = vmatprep.subr.mxu0 %v669_v1 }
  0x23   : > { %233 = vmatpush1.msra.mxu0 %v162_v13 }
  0x24   : > { %234 = vmatprep.subr.mxu0 %v669_v1 }
  0x25   : > { %235 = vmatpush1.msra.mxu0 %v161_v14 }
  0x26   : > { %236 = vmatprep.subr.mxu0 %v669_v1 }
  0x27   : > { %237 = vmatpush1.msra.mxu0 %v160_v15 }
  0x28   : > { %238 = vmatprep.subr.mxu0 %v669_v1 }
  0x29   : > { %239 = vmatpush1.msra.mxu0 %v159_v16 }
  0x2a   : > { %240 = vmatprep.subr.mxu0 %v669_v1 }
  0x2b   : > { %241 = vmatpush1.msra.mxu0 %v158_v17 }
  0x2c   : > { %252 = vmatprep.subr.mxu0 %v669_v1 }
  0x2d   : > { %253 = vmatpush2.msra.mxu0 %v184_v18 }
  0x2e   : > { %254 = vmatprep.subr.mxu0 %v669_v1 }
  0x2f   : > { %255 = vmatpush2.msra.mxu0 %v183_v19 }
  0x30   : > { %256 = vmatprep.subr.mxu0 %v669_v1 }
  0x31   : > { %257 = vmatpush2.msra.mxu0 %v182_v20 }
  0x32   : > { %258 = vmatprep.subr.mxu0 %v669_v1 }
  0x33   : > { %259 = vmatpush2.msra.mxu0 %v181_v21 }
  0x34   : > { %260 = vmatprep.subr.mxu0 %v669_v1 }
  0x35   : > { %261 = vmatpush2.msra.mxu0 %v180_v22 }
  0x36   : > { %262 = vmatprep.subr.mxu0 %v669_v1 }
  0x37   : > { %263 = vmatpush2.msra.mxu0 %v179_v23 }
  0x38   : > { %264 = vmatprep.subr.mxu0 %v669_v1 }
  0x39   : > { %265 = vmatpush2.msra.mxu0 %v178_v24 }
  0x3a   : > { %266 = vmatprep.subr.mxu0 %v669_v1 }
  0x3b   : > { %267 = vmatpush2.msra.mxu0 %v177_v25 }
  0x3c   : > { %268 = vmatprep.subr.mxu0 %v669_v1 }
  0x3d   : > { %269 = vmatpush2.msra.mxu0 %v176_v26 }
  0x3e   : > { %270 = vmatprep.subr.mxu0 %v669_v1 }
  0x3f   : > { %271 = vmatpush2.msra.mxu0 %v175_v27 }
  0x40   : > { %272 = vmatprep.subr.mxu0 %v669_v1 }
  0x41   : > { %273 = vmatpush2.msra.mxu0 %v174_v28 }
  0x42   : > { %275 = vmatmul.mubr.f32.vlgmr.msra.gmra.mxu0 %v142_v29 }
  0x43   : > { %593 = vmatprep.mubr.msk.f32.mxu0 %vm185_vm0, %v145_v30 }
  0x46   : > { %280 = vmatmul.mubr.f32.gmra.mxu0 %v144_v31 }
  0x47   : > { %594 = vmatprep.mubr.msk.f32.mxu0 %vm185_vm0, %v147_v32 }
  0x4a   : > { %285 = vmatmul.mubr.f32.gmra.mxu0 %v146_v33 }
  0x4b   : > { %595 = vmatprep.mubr.msk.f32.mxu0 %vm185_vm0, %v149_v34 }
  0x4e   : > { %290 = vmatmul.mubr.f32.gmra.mxu0 %v148_v35 }
  0x4f   : > { %596 = vmatprep.mubr.msk.f32.mxu0 %vm185_vm0, %v151_v36 }
  0x52   : > { %295 = vmatmul.mubr.f32.gmra.mxu0 %v150_v37 }
  0x53   : > { %597 = vmatprep.mubr.msk.f32.mxu0 %vm185_vm0, %v153_v38 }
  0x56   : > { %300 = vmatmul.mubr.f32.gmra.mxu0 %v152_v39 }
  0x57   : > { %598 = vmatprep.mubr.msk.f32.mxu0 %vm185_vm0, %v155_v40 }
  0x5a   : > { %305 = vmatmul.mubr.f32.gmra.mxu0 %v154_v41 }
  0x5b   : > { %599 = vmatprep.mubr.msk.f32.mxu0 %vm185_vm0, %v157_v42 }
  0x5e   : > { %310 = vmatmul.mubr.f32.gmra.mxu0 %v156_v43 }
 0x102   : > { %v276_v44 = vpop.f32.mrf.mxu0 }
 0x103   : > { %v316_v0 = vsel %vm315_vm1, %v276_v44, -inf }
 0x104   : > { %v278_v45 = vpop.f32.mrf.mxu0 }
 0x106   : > { %v281_v46 = vpop.f32.mrf.mxu0 }
 0x107   : > { %v317_v59 = vsel %vm315_vm1, %v281_v46, -inf }
 0x108   : > { %v283_v47 = vpop.f32.mrf.mxu0 }
 0x10a   : > { %v286_v48 = vpop.f32.mrf.mxu0 }
 0x10b   : > { %v318_v2 = vsel %vm315_vm1, %v286_v48, -inf }
 0x10c   : > { %v288_v49 = vpop.f32.mrf.mxu0 }
 0x10e   : > { %v291_v50 = vpop.f32.mrf.mxu0 }
 0x10f   : > { %v319_v3 = vsel %vm315_vm1, %v291_v50, -inf }
 0x110   : > { %v293_v51 = vpop.f32.mrf.mxu0 }
 0x112   : > { %v296_v52 = vpop.f32.mrf.mxu0 }
 0x113   : > { %v320_v60 = vsel %vm315_vm1, %v296_v52, -inf }
 0x114   : > { %v298_v53 = vpop.f32.mrf.mxu0  ;;  %v321_v5 = vmax.f32 %v316_v0, %v320_v60 }
 0x116   : > { %v301_v54 = vpop.f32.mrf.mxu0 }
 0x117   : > { %v322_v57 = vsel %vm315_vm1, %v301_v54, -inf }
 0x118   : > { %v303_v55 = vpop.f32.mrf.mxu0  ;;  %v323_v62 = vmax.f32 %v317_v59, %v322_v57 }
 0x11a   : > { %v306_v56 = vpop.f32.mrf.mxu0  ;;  %v328_v9 = vmax.f32 %v321_v5, %v323_v62 }
 0x11b   : > { %v324_v61 = vsel %vm315_vm1, %v306_v56, -inf }
 0x11c   : > { %v308_v58 = vpop.f32.mrf.mxu0  ;;  %v325_v6 = vmax.f32 %v318_v2, %v324_v61 }
 0x11e   : > { %v311_v63 = vpop.f32.mrf.mxu0 }
 0x11f   : > { %v326_v4 = vsel %vm315_vm1, %v311_v63, -inf  ;;  %614 = vmatpush3.msra.mxu1 %v311_v63 }
 0x120   : > { %v327_v7 = vmax.f32 %v319_v3, %v326_v4  ;;  %v313_v8 = vpop.f32.mrf.mxu0  ;;  %615 = vmatprep.subr.mxu1 %v669_v1 }
 0x121   : > { %616 = vmatpush3.msra.mxu1 %v306_v56 }
 0x122   : > { %v329_v10 = vmax.f32 %v325_v6, %v327_v7  ;;  %617 = vmatprep.subr.mxu1 %v669_v1 }
 0x123   : > { %618 = vmatpush3.msra.mxu1 %v301_v54 }
 0x124   : > { %v330_v11 = vmax.f32 %v328_v9, %v329_v10  ;;  %619 = vmatprep.subr.mxu1 %v669_v1 }
 0x125   : > { %620 = vmatpush3.msra.mxu1 %v296_v52 }
 0x126   : > { %v331_v12 = vrot.slane %v330_v11, 4  ;;  %621 = vmatprep.subr.mxu1 %v669_v1 }
 0x127   : > { %622 = vmatpush3.msra.mxu1 %v291_v50 }
 0x128   : > { %v332_v13 = vmax.f32 %v330_v11, %v331_v12  ;;  %623 = vmatprep.subr.mxu1 %v669_v1 }
 0x129   : > { %624 = vmatpush3.msra.mxu1 %v286_v48 }
 0x12a   : > { %v333_v14 = vrot.slane %v332_v13, 2  ;;  %625 = vmatprep.subr.mxu1 %v669_v1 }
 0x12b   : > { %626 = vmatpush3.msra.mxu1 %v281_v46 }
 0x12c   : > { %v334_v15 = vmax.f32 %v332_v13, %v333_v14  ;;  %627 = vmatprep.subr.mxu1 %v669_v1 }
 0x12d   : > { %628 = vmatpush3.msra.mxu1 %v276_v44 }
 0x12e   : > { %v335_v16 = vrot.slane %v334_v15, 1 }
 0x130   : > { %v336_v17 = vmax.f32 %v334_v15, %v335_v16 }
 0x132   : > { %v337_v18 = vsub.f32 %v276_v44, %v336_v17  ;;  %v338_v19 = vsub.f32 %v281_v46, %v336_v17  ;;  %v339_v21 = vsub.f32 %v286_v48, %v336_v17  ;;  %v340_v22 = vsub.f32 %v291_v50, %v336_v17 }
 0x133   : > { %v341_v23 = vsub.f32 %v296_v52, %v336_v17  ;;  %v342_v26 = vsub.f32 %v301_v54, %v336_v17  ;;  %v343_v28 = vsub.f32 %v306_v56, %v336_v17  ;;  %v344_v30 = vsub.f32 %v311_v63, %v336_v17 }
 0x134   : > { %v345_v20 = vmul.f32 1.442695, %v337_v18  ;;  %v347_v24 = vmul.f32 1.442695, %v338_v19  ;;  %v349_v25 = vmul.f32 1.442695, %v339_v21 }
 0x135   : > { %v351_v27 = vmul.f32 1.442695, %v340_v22  ;;  %v353_v29 = vmul.f32 1.442695, %v341_v23  ;;  %v355_v31 = vmul.f32 1.442695, %v342_v26 }
 0x136   : > { %643 = vpow2.f32 %v345_v20  ;;  %v357_v32 = vmul.f32 1.442695, %v343_v28  ;;  %v359_v33 = vmul.f32 1.442695, %v344_v30 }
 0x137   : > { %645 = vpow2.f32 %v347_v24 }
 0x138   : > { %647 = vpow2.f32 %v349_v25 }
 0x139   : > { %649 = vpow2.f32 %v351_v27 }
 0x13a   : > { %651 = vpow2.f32 %v353_v29 }
 0x13b   : > { %653 = vpow2.f32 %v355_v31 }
 0x13c   : > { %655 = vpow2.f32 %v357_v32 }
 0x13d   : > { %657 = vpow2.f32 %v359_v33 }
 0x143   : > { %v644_v34 = vpop.eup %643 }
 0x144   : > { %v361_v35 = vsel %vm315_vm1, %v644_v34, 0.0  ;;  %v646_v36 = vpop.eup %645 }
 0x145   : > { %v648_v37 = vpop.eup %647  ;;  %v362_v38 = vsel %vm315_vm1, %v646_v36, 0.0 }
 0x146   : > { %v650_v39 = vpop.eup %649  ;;  %v363_v40 = vadd.f32 %v362_v38, %v361_v35  ;;  %v364_v41 = vsel %vm315_vm1, %v648_v37, 0.0 }
 0x147   : > { %v652_v42 = vpop.eup %651  ;;  %v366_v44 = vsel %vm315_vm1, %v650_v39, 0.0 }
 0x148   : > { %v365_v43 = vadd.f32 %v364_v41, %v363_v40  ;;  %v654_v45 = vpop.eup %653  ;;  %v368_v47 = vsel %vm315_vm1, %v652_v42, 0.0 }
 0x149   : > { %v656_v48 = vpop.eup %655  ;;  %v370_v50 = vsel %vm315_vm1, %v654_v45, 0.0 }
 0x14a   : > { %v367_v46 = vadd.f32 %v366_v44, %v365_v43  ;;  %v658_v51 = vpop.eup %657  ;;  %v372_v53 = vsel %vm315_vm1, %v656_v48, 0.0 }
 0x14b   : > { %v374_v55 = vsel %vm315_vm1, %v658_v51, 0.0 }
 0x14c   : > { %v369_v49 = vadd.f32 %v368_v47, %v367_v46 }
 0x14e   : > { %v371_v52 = vadd.f32 %v370_v50, %v369_v49 }
 0x150   : > { %v373_v54 = vadd.f32 %v372_v53, %v371_v52 }
 0x152   : > { %v375_v56 = vadd.f32 %v374_v55, %v373_v54 }
 0x154   : > { %v376_v57 = vrot.slane %v375_v56, 4 }
 0x156   : > { %v377_v58 = vadd.f32 %v376_v57, %v375_v56 }
 0x158   : > { %v378_v59 = vrot.slane %v377_v58, 2 }
 0x15a   : > { %v379_v60 = vadd.f32 %v378_v59, %v377_v58 }
 0x15c   : > { %v380_v61 = vrot.slane %v379_v60, 1 }
 0x15e   : > { %v381_v62 = vadd.f32 %v380_v61, %v379_v60 }
 0x160   : > { %659 = vrcp.f32 %v381_v62 }
 0x16d   : > { %v660_v63 = vpop.eup %659 }
 0x16e   : > { %v385_v0 = vmul.f32 %v660_v63, %v648_v37  ;;  %v383_v2 = vmul.f32 %v660_v63, %v644_v34  ;;  %v386_v3 = vmul.f32 %v660_v63, %v650_v39  ;;  %v384_v4 = vmul.f32 %v660_v63, %v646_v36 }
 0x16f   : > { %v388_v5 = vmul.f32 %v660_v63, %v654_v45  ;;  %v387_v6 = vmul.f32 %v660_v63, %v652_v42  ;;  %v390_v7 = vmul.f32 %v660_v63, %v658_v51  ;;  %v389_v8 = vmul.f32 %v660_v63, %v656_v48 }
 0x170   : > { %403 = vrot.lane.b32.xlu1 %v385_v0, %s670_s22  ;;  %399 = vrot.lane.b32.xlu0 %v383_v2, %s670_s22 }
 0x174   : > { %405 = vrot.lane.b32.xlu1 %v386_v3, %s670_s22  ;;  %401 = vrot.lane.b32.xlu0 %v384_v4, %s670_s22 }
 0x178   : > { %409 = vrot.lane.b32.xlu1 %v388_v5, %s670_s22  ;;  %407 = vrot.lane.b32.xlu0 %v387_v6, %s670_s22 }
 0x17c   : > { %413 = vrot.lane.b32.xlu1 %v390_v7, %s670_s22  ;;  %411 = vrot.lane.b32.xlu0 %v389_v8, %s670_s22 }
 0x1e2   : > { %v400_v9 = vpop.permute.xlu0 %399  ;;  %v404_v11 = vpop.permute.xlu1 %403 }
 0x1e3   : > { %423 = vxpose.xlu0.b32.start [1/8] (short) (narrow) %v400_v9, 8 }
 0x1e6   : > { %v402_v10 = vpop.permute.xlu0 %401  ;;  %v406_v12 = vpop.permute.xlu1 %405 }
 0x1e7   : > { %424 = vxpose.xlu0.b32.cont [2/8] (short) (narrow) %v402_v10, 8 }
 0x1ea   : > { %v408_v13 = vpop.permute.xlu0 %407  ;;  %v410_v14 = vpop.permute.xlu1 %409 }
 0x1eb   : > { %425 = vxpose.xlu0.b32.cont [3/8] (short) (narrow) %v404_v11, 8 }
 0x1ee   : > { %v412_v15 = vpop.permute.xlu0 %411  ;;  %v414_v16 = vpop.permute.xlu1 %413 }
 0x1ef   : > { %426 = vxpose.xlu0.b32.cont [4/8] (short) (narrow) %v406_v12, 8 }
 0x1f3   : > { %427 = vxpose.xlu0.b32.cont [5/8] (short) (narrow) %v408_v13, 8 }
 0x1f7   : > { %428 = vxpose.xlu0.b32.cont [6/8] (short) (narrow) %v410_v14, 8 }
 0x1fb   : > { %429 = vxpose.xlu0.b32.cont [7/8] (short) (narrow) %v412_v15, 8 }
 0x1ff   : > { %430 = vxpose.xlu0.b32.end [8/8] (short) (narrow) %v414_v16, 8 }
 0x25f   : > { %v439_v17 = vpop.trf.xlu0 }
 0x260   : > { %630 = vmatmul.mubr.msk.f32.vlgmr.msra.gmra.mxu1 %vm455_vm3, %v439_v17 }
 0x320   : > { %v525_v1 = vpop.f32.mrf.mxu1 }
 0x321   : > { %530 = vst.msk [vmem:[%s141_s21] sm:$0xff] %vm529_vm4, %v525_v1 }
 0x322   : > { %v631_v18 = vpop.f32.mrf.mxu1 }
 0x323 PF: > { %s12_s9 = sadd.s32 1, %s667_s9  }
 0x324   : > { %p9_p4 = scmp.ge.s32.totalorder %s12_s9, 4  }
 0x326   :  { %11 = sbr.rel (!%p9_p4) target bundleno = 1 (0x1), region = 58 }

// kernel: _lambda_.5
= control target key start
LH: loop header
LB: loop body
LE: loop exit
PB: predicated region body
PF: predicated region fallthrough
CT: control target
= control target key end

     0   :  { %s4965_s0 = inlined_call_operand.vmem [shape: f32[2,64,8], index: 0, kind: input, shape index: {}]   ;;  %s4966_s1 = inlined_call_operand.vmem [shape: f32[2,8,8], index: 1, kind: input, shape index: {}]   ;;  %s4967_s2 = inlined_call_operand.vmem [shape: f32[8,64], index: 2, kind: input, shape index: {}]   ;;  %s4968_s3 = inlined_call_operand.vmem [shape: f32[1,64], index: 3, kind: input, shape index: {}]   ;;  %s4969_s4 = inlined_call_operand.vmem [shape: f32[8,64], index: 4, kind: input, shape index: {}]   ;;  %s4970_s5 = inlined_call_operand.vmem [shape: f32[1,64], index: 5, kind: input, shape index: {}]   ;;  %s4971_s6 = inlined_call_operand.vmem [shape: f32[32,8], index: 6, kind: input, shape index: {}]   ;;  %s4972_s7 = inlined_call_operand.vmem [shape: f32[32,8], index: 7, kind: input, shape index: {}]   ;;  %s4973_s8 = inlined_call_operand.vmem [shape: f32[1,8], index: 8, kind: input, shape index: {}]   ;;  %s4974_s9 = inlined_call_operand.vmem [shape: f32[1,8], index: 9, kind: input, shape index: {}]   ;;  %s4975_s10 = inlined_call_operand.vmem [shape: f32[8,8], index: 10, kind: input, shape index: {}]   ;;  %s4976_s11 = inlined_call_operand.vmem [shape: f32[1,8], index: 11, kind: input, shape index: {}]   ;;  %s4977_s12 = inlined_call_operand.vmem [shape: f32[1,8], index: 12, kind: input, shape index: {}]   ;;  %s4978_s13 = inlined_call_operand.vmem [shape: f32[8,8], index: 13, kind: input, shape index: {}]   ;;  %s4979_s14 = inlined_call_operand.hbm [shape: f32[2,64,8], index: 14, kind: output, shape index: {0}]   ;;  %s4980_s15 = inlined_call_operand.hbm [shape: f32[2,8,8], index: 15, kind: output, shape index: {1}]  }
   0x1   :  { %4981 = sst [smem:[#allocation9_spill]] %s4965_s0 }
   0x2   :  { %4982 = sst [smem:[#allocation10_spill]] %s4966_s1 }
   0x3   :  { %4983 = sst [smem:[#allocation11_spill]] %s4967_s2 }
   0x4   :  { %4984 = sst [smem:[#allocation12_spill]] %s4968_s3 }
   0x5   :  { %4985 = sst [smem:[#allocation13_spill]] %s4969_s4 }
   0x6   :  { %4986 = sst [smem:[#allocation14_spill]] %s4970_s5 }
   0x7   :  { %4987 = sst [smem:[#allocation15_spill]] %s4971_s6 }
   0x8   :  { %21 = vsyncpa [#allocation3], 0 }
   0x9   :  { %23 = vsyncpa [#allocation3 + $0x1], 0 }
   0xa   :  { %24 = vsyncpa [#allocation5], 0 }
   0xb   :  { %26 = vsyncpa [#allocation5 + $0x1], 0  ;;  %s3996_s18 = smov 0   ;;  %s3998_s19 = smov 0  }
   0xc   :  { %s4000_s20 = smov 0   ;;  %s4002_s21 = smov 0  }
   0xd LB: > { %s4017_s22 = sadd.s32 4294967295, %s3905_s21   ;;  %s3192_s23 = sadd.s32 4294967294, %s3905_s21   ;;  %s3905_s21 = sphi %s4002_s21, %s5002_s21   ;;  %s3901_s20 = sphi %s4000_s20, %s5001_s20   ;;  %s3897_s19 = sphi %s3998_s19, %s5000_s19   ;;  %s3893_s18 = sphi %s3996_s18, %s4999_s18  }
   0xe   : > { %s4021_s24 = sadd.s32 1, %s3905_s21   ;;  %s343_s25 = sadd.s32 1, %s3901_s20 }
   0xf   : > { %s340_s26 = ssub.s32 %s3905_s21, %s4021_s24  ;;  %p353_p0 = scmp.ne.s32.totalorder %s3901_s20, %s3897_s19 }
  0x10   : > { %p341_p1 = scmp.eq.s32.totalorder %s340_s26, 0  ;;  %p354_p2 = scmp.eq.s32.totalorder %s4017_s22, 1 }
  0x11   : > { %p359_p3 = scmp.ne.s32.totalorder %s3897_s19, %s3893_s18  ;;  %p360_p4 = scmp.eq.s32.totalorder %s3192_s23, 1 }
  0x12   : > { %s4032_s27 = scalar_select %p341_p1, %s3901_s20, %s343_s25  }
  0x13   : > { %p4034_p5 = por %p354_p2, %p353_p0  ;;  %p4038_p6 = por %p360_p4, %p359_p3 }
  0x14   : > { %4988 = sst [smem:[#allocation8_spill]] %s4032_s27  ;;  %p3195_p7 = scmp.ge.s32.totalorder %s3905_s21, 1 }
  0x15   : > { %p455_p8 = scmp.lt.s32.totalorder %s3905_s21, 3 }
  0x17   : > { %p456_p9 = pnand %p3195_p7, %p455_p8 }
  0x18   : > { %s4991_s2 = sld [smem:[#allocation11_spill]] (!%p456_p9)  ;;  %p512_p10 = scmp.lt.s32.totalorder (!%p456_p9), %s4017_s22, 1 }
  0x19   : > { %459 = sbr.rel (%p456_p9) target bundleno = 2119 (0x847), region = 76  ;;  %s4992_s4 = sld [smem:[#allocation13_spill]] (!%p456_p9) }
  0x1a   : > { %s4993_s0 = sld [smem:[#allocation9_spill]] (!%p456_p9)  ;;  %s3910_s16 = smov (!%p456_p9), 112  }
  0x1b   : > { %s4994_s1 = sld [smem:[#allocation10_spill]] (!%p456_p9)  ;;  %s3911_s23 = smov (!%p456_p9), 80  }
  0x1c   : > { %s4995_s5 = sld [smem:[#allocation14_spill]] (!%p456_p9) }
  0x1d   : > { %s4996_s3 = sld [smem:[#allocation12_spill]] (!%p456_p9) }
  0x1e   : > { %v530_v0 = vld [vmem:[%s4991_s2] sm:$0xff]  ;;  %v3907_v2 = vmov 0.0   ;;  %vm3908_vm0 = vmmov 0   ;;  %s513_s25 = scalar_select %p512_p10, %s4017_s22, 1  ;;  %vm538_vm1 = vcmask 64512   ;;  %vm757_vm2 = vcmask 130048  }
  0x1f   : > { %v668_v1 = vld [vmem:[%s4992_s4] sm:$0xff]  ;;  %3418 = vmatprep.subr.mxu1 %v3907_v2  ;;  %3404 = vmatprep.subr.mxu0 %v530_v0  ;;  %vm1241_vm3 = vcmask 523264   ;;  %s4997_s6 = sld [smem:[#allocation15_spill]] }
  0x20   : > { %3419 = vmatpush3.msra.mxu1 %v668_v1  ;;  %3420 = vmatprep.mubr.msk.f32.mxu1 %vm3908_vm0, %v3907_v2  ;;  %s3293_s26 = sshll.u32 %s513_s25, 6  ;;  %s3200_s30 = sshll.u32 %s513_s25, 3 }
  0x21   : > { %3405 = vmatpush3.msra.mxu0 %v530_v0  ;;  %s4058_s17 = scalar_lea.vmem %s4993_s0, %s3293_s26  ;;  %s4063_s27 = scalar_lea.vmem %s4994_s1, %s3200_s30 }
  0x22   : > { %v521_v3 = vld [vmem:[%s4058_s17] sm:$0xff]  ;;  %v522_v5 = vld [vmem:[%s4058_s17 + $0x8] sm:$0xff]  ;;  %v523_v6 = vld [vmem:[%s4058_s17 + $0x10] sm:$0xff]  ;;  %s3909_s30 = smov 96   ;;  %s3912_s0 = smov [#allocation4]  }
  0x23   : > { %v529_v4 = vld [vmem:[%s4063_s27] sm:$0xff]  ;;  %3406 = vmatprep.mubr.msk.f32.mxu0 %vm538_vm1, %v521_v3  ;;  %v524_v7 = vld [vmem:[%s4058_s17 + $0x18] sm:$0xff]  ;;  %v526_v9 = vld [vmem:[%s4058_s17 + $0x28] sm:$0xff]  ;;  %s3819_s1 = sshll.u32 %s3912_s0, 4  ;;  %s3820_s1 = int_to_ptr.vmem [resolvable:$false] %s3819_s1 }
  0x24   : > { %3421 = vmatmul.mubr.msk.f32.vlgmr.msra.gmra.mxu1 %vm538_vm1, %v529_v4  ;;  %3407 = vmatmul.mubr.msk.f32.vlgmr.msra.gmra.mxu0 %vm538_vm1, %v522_v5  ;;  %v525_v8 = vld [vmem:[%s4058_s17 + $0x20] sm:$0xff]  ;;  %v527_v10 = vld [vmem:[%s4058_s17 + $0x30] sm:$0xff]  ;;  %v528_v11 = vld [vmem:[%s4058_s17 + $0x38] sm:$0xff] }
  0x25   : > { %3409 = vmatprep.mubr.msk.f32.mxu0 %vm538_vm1, %v523_v6  ;;  %v3210_v12 = vld [vmem:[%s4995_s5] ss:$0 sm:$0xff] }
  0x26   : > { %v3201_v16 = vld [vmem:[%s4996_s3] ss:$0 sm:$0xff]  ;;  %s3821_s3 = scalar_lea.vmem %s3820_s1, 256 }
  0x28   : > { %3410 = vmatmul.mubr.msk.f32.gmra.mxu0 %vm538_vm1, %v524_v7 }
  0x29   : > { %3412 = vmatprep.mubr.msk.f32.mxu0 %vm538_vm1, %v525_v8 }
  0x2c   : > { %3413 = vmatmul.mubr.msk.f32.gmra.mxu0 %vm538_vm1, %v526_v9 }
  0x2d   : > { %3415 = vmatprep.mubr.msk.f32.mxu0 %vm538_vm1, %v527_v10 }
  0x30   : > { %3416 = vmatmul.mubr.msk.f32.gmra.mxu0 %vm538_vm1, %v528_v11 }
  0xe4   : > { %v745_v13 = vpop.f32.mrf.mxu1  ;;  %v3408_v15 = vpop.f32.mrf.mxu0 }
  0xe5   : > { %v4086_v14 = vadd.f32 %v3210_v12, %v745_v13  ;;  %v4097_v20 = vadd.f32 %v3408_v15, %v3201_v16 }
  0xe6   : > { %v3422_v17 = vpop.f32.mrf.mxu1  ;;  %v629_v18 = vpop.f32.mrf.mxu0 }
  0xe7   : > { %3423 = vmatprep.subr.msk.mxu1 %vm757_vm2, %v4086_v14  ;;  %v4093_v19 = vadd.f32 %v3201_v16, %v629_v18 }
  0xe8   : > { %3424 = vmatpush3.xpose.msk.msra.mxu1 %vm757_vm2, %v4086_v14  ;;  %v3411_v21 = vpop.f32.mrf.mxu0 }
  0xe9   : > { %3451 = vmatprep.subr.mxu1 %v3907_v2  ;;  %3425 = vmatprep.mubr.msk.f32.mxu1 %vm757_vm2, %v4093_v19  ;;  %v4106_v24 = vadd.f32 %v3411_v21, %v3201_v16 }
  0xea   : > { %v639_v22 = vpop.f32.mrf.mxu0 }
  0xeb   : > { %3426 = vmatmul.mubr.msk.f32.vlgmr.msra.gmra.mxu1 %vm757_vm2, %v4097_v20  ;;  %v4104_v23 = vadd.f32 %v3201_v16, %v639_v22 }
  0xec   : > { %v3414_v25 = vpop.f32.mrf.mxu0 }
  0xed   : > { %v4108_v26 = vadd.f32 %v3414_v25, %v3201_v16  ;;  %3428 = vmatprep.mubr.msk.f32.mxu1 %vm757_vm2, %v4104_v23 }
  0xee   : > { %v649_v27 = vpop.f32.mrf.mxu0 }
  0xef   : > { %3429 = vmatmul.mubr.msk.f32.gmra.mxu1 %vm757_vm2, %v4106_v24  ;;  %v4114_v28 = vadd.f32 %v3201_v16, %v649_v27  ;;  %1227 = vrot.lane.b32.xlu1 %v4108_v26, %s3909_s30 }
  0xf0   : > { %v3417_v29 = vpop.f32.mrf.mxu0 }
  0xf1   : > { %v4118_v30 = vadd.f32 %v3417_v29, %v3201_v16  ;;  %3431 = vmatprep.mubr.msk.f32.mxu1 %vm757_vm2, %v4114_v28 }
  0xf2   : > { %v659_v31 = vpop.f32.mrf.mxu0 }
  0xf3   : > { %3432 = vmatmul.mubr.msk.f32.gmra.mxu1 %vm757_vm2, %v4108_v26  ;;  %v4124_v32 = vadd.f32 %v3201_v16, %v659_v31  ;;  %1231 = vrot.lane.b32.xlu0 %v4118_v30, %s3909_s30 }
  0xf4   : > { %1225 = vrot.lane.b32.xlu1 %v4114_v28, %s3909_s30 }
  0xf5   : > { %3434 = vmatprep.mubr.msk.f32.mxu1 %vm757_vm2, %v4124_v32 }
  0xf7   : > { %3435 = vmatmul.mubr.msk.f32.gmra.mxu1 %vm757_vm2, %v4118_v30  ;;  %1229 = vrot.lane.b32.xlu0 %v4124_v32, %s3909_s30 }
  0xf8   : > { %1221 = vrot.lane.b32.xlu1 %v4104_v23, %s3909_s30  ;;  %3467 = vmatprep.mubr.msk.f32.mxu1 %vm3908_vm0, %v3907_v2 }
  0xfb   : > { %1223 = vrot.lane.b32.xlu0 %v4106_v24, %s3909_s30 }
  0xfc   : > { %1217 = vrot.lane.b32.xlu1 %v4093_v19, %s3909_s30 }
  0xff   : > { %1219 = vrot.lane.b32.xlu0 %v4097_v20, %s3909_s30 }
 0x100   : > { %1315 = vrot.lane.b32.xlu1 %v4093_v19, %s3910_s16 }
 0x103   : > { %1331 = vrot.lane.b32.xlu0 %v4086_v14, %s3910_s16 }
 0x104   : > { %1319 = vrot.lane.b32.xlu1 %v4104_v23, %s3910_s16 }
 0x107   : > { %1317 = vrot.lane.b32.xlu0 %v4097_v20, %s3910_s16 }
 0x108   : > { %1323 = vrot.lane.b32.xlu1 %v4114_v28, %s3910_s16 }
 0x10b   : > { %1321 = vrot.lane.b32.xlu0 %v4106_v24, %s3910_s16 }
 0x10c   : > { %1327 = vrot.lane.b32.xlu1 %v4124_v32, %s3910_s16 }
 0x10f   : > { %1325 = vrot.lane.b32.xlu0 %v4108_v26, %s3910_s16 }
 0x113   : > { %1329 = vrot.lane.b32.xlu0 %v4118_v30, %s3910_s16 }
 0x161   : > { %v1228_v33 = vpop.permute.xlu1 %1227 }
 0x165   : > { %v1232_v34 = vpop.permute.xlu0 %1231 }
 0x166   : > { %3452 = vmatpush3.msra.mxu1 %v1232_v34  ;;  %v1226_v35 = vpop.permute.xlu1 %1225 }
 0x167   : > { %3453 = vmatprep.subr.mxu1 %v3907_v2 }
 0x169   : > { %v1230_v36 = vpop.permute.xlu0 %1229 }
 0x16a   : > { %3454 = vmatpush3.msra.mxu1 %v1230_v36  ;;  %v1222_v38 = vpop.permute.xlu1 %1221 }
 0x16b   : > { %3455 = vmatprep.subr.mxu1 %v3907_v2 }
 0x16c   : > { %3456 = vmatpush3.msra.mxu1 %v1228_v33 }
 0x16d   : > { %v1224_v37 = vpop.permute.xlu0 %1223  ;;  %3457 = vmatprep.subr.mxu1 %v3907_v2 }
 0x16e   : > { %3458 = vmatpush3.msra.mxu1 %v1226_v35  ;;  %v1218_v40 = vpop.permute.xlu1 %1217 }
 0x16f   : > { %3459 = vmatprep.subr.mxu1 %v3907_v2 }
 0x170   : > { %3460 = vmatpush3.msra.mxu1 %v1224_v37 }
 0x171   : > { %v1220_v39 = vpop.permute.xlu0 %1219  ;;  %3461 = vmatprep.subr.mxu1 %v3907_v2 }
 0x172   : > { %3462 = vmatpush3.msra.mxu1 %v1222_v38 }
 0x173   : > { %3463 = vmatprep.subr.mxu1 %v3907_v2 }
 0x174   : > { %3464 = vmatpush3.msra.mxu1 %v1220_v39 }
 0x175   : > { %v4161_v41 = vpop.permute.xlu0 %1331  ;;  %3465 = vmatprep.subr.mxu1 %v3907_v2 }
 0x176   : > { %3466 = vmatpush3.msra.mxu1 %v1218_v40 }
 0x177   : > { %3470 = vmatprep.subr.msk.mxu1 %vm757_vm2, %v4161_v41 }
 0x1ab   : > { %v3427_v42 = vpop.f32.mrf.mxu1 }
 0x1ac   : > { %v4168_v46 = vmul.f32 0.25, %v3427_v42 }
 0x1ad   : > { %v851_v43 = vpop.f32.mrf.mxu1 }
 0x1ae   : > { %v4166_v44 = vmul.f32 0.25, %v851_v43  ;;  %v901_v51 = vsel %vm538_vm1, %v4168_v46, -inf }
 0x1af   : > { %v3430_v45 = vpop.f32.mrf.mxu1 }
 0x1b0   : > { %v898_v47 = vsel %vm538_vm1, %v4166_v44, -inf  ;;  %v4180_v56 = vmul.f32 0.25, %v3430_v45 }
 0x1b1   : > { %899 = vmax.xlane.f32.xlu0 %v898_v47  ;;  %v861_v48 = vpop.f32.mrf.mxu1 }
 0x1b2   : > { %v4172_v50 = vmul.f32 0.25, %v861_v48  ;;  %v907_v1 = vsel %vm538_vm1, %v4180_v56, -inf }
 0x1b3   : > { %v3433_v49 = vpop.f32.mrf.mxu1 }
 0x1b4   : > { %v4176_v53 = vmul.f32 0.25, %v3433_v49  ;;  %v904_v58 = vsel %vm538_vm1, %v4172_v50, -inf }
 0x1b5   : > { %902 = vmax.xlane.f32.xlu0 %v901_v51  ;;  %v871_v52 = vpop.f32.mrf.mxu1 }
 0x1b6   : > { %v4178_v54 = vmul.f32 0.25, %v871_v52  ;;  %v913_v62 = vsel %vm538_vm1, %v4176_v53, -inf }
 0x1b7   : > { %v3436_v55 = vpop.f32.mrf.mxu1  ;;  %v987_v4 = vmax.f32 %v901_v51, %v913_v62 }
 0x1b8   : > { %v4182_v57 = vmul.f32 0.25, %v3436_v55  ;;  %v910_v59 = vsel %vm538_vm1, %v4178_v54, -inf }
 0x1b9   : > { %905 = vmax.xlane.f32.xlu0 %v904_v58  ;;  %v881_v60 = vpop.f32.mrf.mxu1  ;;  %v986_v0 = vmax.f32 %v898_v47, %v910_v59 }
 0x1ba   : > { %v4188_v61 = vmul.f32 0.25, %v881_v60  ;;  %v919_v63 = vsel %vm538_vm1, %v4182_v57, -inf }
 0x1bb   : > { %v989_v6 = vmax.f32 %v907_v1, %v919_v63  ;;  %v990_v7 = vmax.f32 %v986_v0, %v987_v4 }
 0x1bc   : > { %v916_v3 = vsel %vm538_vm1, %v4188_v61, -inf }
 0x1bd   : > { %908 = vmax.xlane.f32.xlu0 %v907_v1  ;;  %v988_v5 = vmax.f32 %v904_v58, %v916_v3 }
 0x1bf   : > { %v991_v8 = vmax.f32 %v988_v5, %v989_v6 }
 0x1c1   : > { %911 = vmax.xlane.f32.xlu0 %v910_v59  ;;  %v992_v9 = vmax.f32 %v990_v7, %v991_v8 }
 0x1c3   : > { %v993_v10 = vrot.slane %v992_v9, 4 }
 0x1c5   : > { %914 = vmax.xlane.f32.xlu0 %v913_v62  ;;  %v994_v11 = vmax.f32 %v992_v9, %v993_v10 }
 0x1c7   : > { %v995_v12 = vrot.slane %v994_v11, 2 }
 0x1c9   : > { %917 = vmax.xlane.f32.xlu0 %v916_v3  ;;  %v996_v13 = vmax.f32 %v994_v11, %v995_v12 }
 0x1cb   : > { %v997_v15 = vrot.slane %v996_v13, 1 }
 0x1cd   : > { %920 = vmax.xlane.f32.xlu0 %v919_v63  ;;  %v998_v16 = vmax.f32 %v996_v13, %v997_v15 }
 0x1cf   : > { %v1000_v17 = vsub.f32 %v4168_v46, %v998_v16  ;;  %v1001_v18 = vsub.f32 %v4172_v50, %v998_v16  ;;  %v999_v22 = vsub.f32 %v4166_v44, %v998_v16  ;;  %v1002_v25 = vsub.f32 %v4180_v56, %v998_v16 }
 0x1d0   : > { %v1003_v29 = vsub.f32 %v4178_v54, %v998_v16  ;;  %v1004_v33 = vsub.f32 %v4176_v53, %v998_v16  ;;  %v1005_v35 = vsub.f32 %v4188_v61, %v998_v16  ;;  %v1006_v37 = vsub.f32 %v4182_v57, %v998_v16 }
 0x1d1   : > { %v1009_v21 = vmul.f32 1.442695, %v1000_v17  ;;  %v1011_v27 = vmul.f32 1.442695, %v1001_v18  ;;  %v1007_v31 = vmul.f32 1.442695, %v999_v22 }
 0x1d2   : > { %v1013_v34 = vmul.f32 1.442695, %v1002_v25  ;;  %v1015_v36 = vmul.f32 1.442695, %v1003_v29  ;;  %v1017_v38 = vmul.f32 1.442695, %v1004_v33 }
 0x1d3   : > { %3642 = vpow2.f32 %v1009_v21  ;;  %v1019_v39 = vmul.f32 1.442695, %v1005_v35  ;;  %v1021_v40 = vmul.f32 1.442695, %v1006_v37 }
 0x1d4   : > { %3644 = vpow2.f32 %v1011_v27 }
 0x1d5   : > { %3646 = vpow2.f32 %v1007_v31 }
 0x1d6   : > { %3648 = vpow2.f32 %v1013_v34  ;;  %v1316_v34 = vpop.permute.xlu1 %1315 }
 0x1d7   : > { %3650 = vpow2.f32 %v1015_v36 }
 0x1d8   : > { %3652 = vpow2.f32 %v1017_v38  ;;  %v1318_v38 = vpop.permute.xlu0 %1317 }
 0x1d9   : > { %3654 = vpow2.f32 %v1019_v39 }
 0x1da   : > { %3656 = vpow2.f32 %v1021_v40  ;;  %v1320_v35 = vpop.permute.xlu1 %1319 }
 0x1dc   : > { %v1322_v40 = vpop.permute.xlu0 %1321 }
 0x1de   : > { %v1324_v36 = vpop.permute.xlu1 %1323 }
 0x1e0   : > { %v3643_v42 = vpop.eup %3642 }
 0x1e1   : > { %v3645_v43 = vpop.eup %3644  ;;  %v1024_v45 = vsel %vm538_vm1, %v3643_v42, 0.0 }
 0x1e2   : > { %v3647_v47 = vpop.eup %3646  ;;  %v1026_v52 = vsel %vm538_vm1, %v3645_v43, 0.0  ;;  %v1328_v37 = vpop.permute.xlu1 %1327 }
 0x1e3   : > { %v1023_v48 = vsel %vm538_vm1, %v3647_v47, 0.0  ;;  %v3649_v49 = vpop.eup %3648 }
 0x1e4   : > { %v1025_v51 = vadd.f32 %v1024_v45, %v1023_v48  ;;  %v3651_v55 = vpop.eup %3650  ;;  %v1028_v59 = vsel %vm538_vm1, %v3649_v49, 0.0 }
 0x1e5   : > { %v3653_v60 = vpop.eup %3652  ;;  %v1030_v63 = vsel %vm538_vm1, %v3651_v55, 0.0 }
 0x1e6   : > { %v1027_v58 = vadd.f32 %v1026_v52, %v1025_v51  ;;  %v3655_v0 = vpop.eup %3654  ;;  %v1032_v3 = vsel %vm538_vm1, %v3653_v60, 0.0 }
 0x1e7   : > { %v3657_v4 = vpop.eup %3656  ;;  %v1034_v6 = vsel %vm538_vm1, %v3655_v0, 0.0 }
 0x1e8   : > { %v1029_v62 = vadd.f32 %v1028_v59, %v1027_v58  ;;  %v1036_v8 = vsel %vm538_vm1, %v3657_v4, 0.0 }
 0x1ea   : > { %v1031_v1 = vadd.f32 %v1030_v63, %v1029_v62 }
 0x1ec   : > { %v1033_v5 = vadd.f32 %v1032_v3, %v1031_v1 }
 0x1ee   : > { %v1035_v7 = vadd.f32 %v1034_v6, %v1033_v5 }
 0x1f0   : > { %v1037_v9 = vadd.f32 %v1036_v8, %v1035_v7 }
 0x1f2   : > { %v1038_v10 = vrot.slane %v1037_v9, 4 }
 0x1f4   : > { %v1039_v11 = vadd.f32 %v1038_v10, %v1037_v9 }
 0x1f6   : > { %v1040_v12 = vrot.slane %v1039_v11, 2 }
 0x1f8   : > { %v1041_v13 = vadd.f32 %v1040_v12, %v1039_v11 }
 0x1fa   : > { %v1042_v15 = vrot.slane %v1041_v13, 1 }
 0x1fc   : > { %v1043_v16 = vadd.f32 %v1042_v15, %v1041_v13 }
 0x1fe   : > { %3658 = vrcp.f32 %v1043_v16 }
 0x20b   : > { %v3659_v17 = vpop.eup %3658 }
 0x20c   : > { %v1045_v18 = vmul.f32 %v3659_v17, %v3647_v47  ;;  %v1046_v21 = vmul.f32 %v3659_v17, %v3643_v42  ;;  %v1047_v22 = vmul.f32 %v3659_v17, %v3645_v43  ;;  %v1048_v25 = vmul.f32 %v3659_v17, %v3649_v49  ;;  %v1326_v42 = vpop.permute.xlu0 %1325 }
 0x20d   : > { %v1049_v27 = vmul.f32 %v3659_v17, %v3651_v55  ;;  %v1050_v29 = vmul.f32 %v3659_v17, %v3653_v60  ;;  %v1051_v31 = vmul.f32 %v3659_v17, %v3655_v0  ;;  %v1052_v33 = vmul.f32 %v3659_v17, %v3657_v4 }
 0x20e   : > { %1185 = vxpose.xlu1.b32.start [1/8] (short) (narrow) %v1045_v18, 8 }
 0x210   : > { %v1330_v43 = vpop.permute.xlu0 %1329 }
 0x212   : > { %1186 = vxpose.xlu1.b32.cont [2/8] (short) (narrow) %v1046_v21, 8 }
 0x216   : > { %1187 = vxpose.xlu1.b32.cont [3/8] (short) (narrow) %v1047_v22, 8 }
 0x21a   : > { %1188 = vxpose.xlu1.b32.cont [4/8] (short) (narrow) %v1048_v25, 8 }
 0x21e   : > { %1189 = vxpose.xlu1.b32.cont [5/8] (short) (narrow) %v1049_v27, 8 }
 0x222   : > { %1190 = vxpose.xlu1.b32.cont [6/8] (short) (narrow) %v1050_v29, 8 }
 0x226   : > { %1191 = vxpose.xlu1.b32.cont [7/8] (short) (narrow) %v1051_v31, 8 }
 0x22a   : > { %1192 = vxpose.xlu1.b32.end [8/8] (short) (narrow) %v1052_v33, 8 }
 0x28a   : > { %v1201_v39 = vpop.trf.xlu1 }
 0x28b   : > { %3468 = vmatmul.mubr.msk.f32.vlgmr.msra.gmra.mxu1 %vm1241_vm3, %v1201_v39 }
 0x28c   : > { %3471 = vmatpush3.xpose.msk.msra.mxu1 %vm757_vm2, %v4161_v41  ;;  %3472 = vmatprep.mubr.msk.f32.mxu1 %vm757_vm2, %v1316_v34  ;;  %v900_v41 = vpop.xlane.xlu0 %899 }
 0x28d   : > { %3498 = vmatprep.subr.mxu1 %v3907_v2  ;;  %v922_v7 = vsub.f32 %v4166_v44, %v900_v41 }
 0x28f   : > { %3473 = vmatmul.mubr.msk.f32.vlgmr.msra.gmra.mxu1 %vm757_vm2, %v1318_v38  ;;  %v930_v16 = vmul.f32 1.442695, %v922_v7 }
 0x290   : > { %3475 = vmatprep.mubr.msk.f32.mxu1 %vm757_vm2, %v1320_v35  ;;  %v903_v45 = vpop.xlane.xlu0 %902 }
 0x291   : > { %v923_v17 = vsub.f32 %v4168_v46, %v903_v45 }
 0x293   : > { %3476 = vmatmul.mubr.msk.f32.gmra.mxu1 %vm757_vm2, %v1322_v40 }
 0x294   : > { %3478 = vmatprep.mubr.msk.f32.mxu1 %vm757_vm2, %v1324_v36  ;;  %v906_v47 = vpop.xlane.xlu0 %905  ;;  %v932_v36 = vmul.f32 1.442695, %v923_v17 }
 0x297   : > { %3479 = vmatmul.mubr.msk.f32.gmra.mxu1 %vm757_vm2, %v1326_v42 }
 0x298   : > { %3481 = vmatprep.mubr.msk.f32.mxu1 %vm757_vm2, %v1328_v37  ;;  %v4228_v48 = vpop.xlane.xlu0 %908  ;;  %v924_v37 = vsub.f32 %v4172_v50, %v906_v47 }
 0x299   : > { %v925_v50 = vsub.f32 %v4180_v56, %v4228_v48 }
 0x29b   : > { %3482 = vmatmul.mubr.msk.f32.gmra.mxu1 %vm757_vm2, %v1330_v43 }
 0x29c   : > { %3514 = vmatprep.mubr.msk.f32.mxu1 %vm3908_vm0, %v3907_v2  ;;  %v4230_v49 = vpop.xlane.xlu0 %911 }
 0x2a0   : > { %v915_v51 = vpop.xlane.xlu0 %914 }
 0x2a1   : > { %v927_v55 = vsub.f32 %v4176_v53, %v915_v51  ;;  %v934_v51 = vmul.f32 1.442695, %v924_v37 }
 0x2a3   : > { %v940_v59 = vmul.f32 1.442695, %v927_v55 }
 0x2a4   : > { %v4232_v52 = vpop.xlane.xlu0 %917 }
 0x2a5   : > { %3660 = vpow2.f32 %v940_v59  ;;  %v926_v59 = vsub.f32 %v4178_v54, %v4230_v49 }
 0x2a8   : > { %v921_v58 = vpop.xlane.xlu0 %920 }
 0x2a9   : > { %v929_v60 = vsub.f32 %v4182_v57, %v921_v58  ;;  %v936_v58 = vmul.f32 1.442695, %v925_v50 }
 0x2ab   : > { %v944_v63 = vmul.f32 1.442695, %v929_v60 }
 0x2ad   : > { %3662 = vpow2.f32 %v944_v63 }
 0x2ae   : > { %3664 = vpow2.f32 %v930_v16 }
 0x2af   : > { %3666 = vpow2.f32 %v932_v36 }
 0x2b0   : > { %3668 = vpow2.f32 %v934_v51 }
 0x2b1   : > { %3670 = vpow2.f32 %v936_v58 }
 0x2b2   : > { %v4255_v15 = vpop.eup %3660 }
 0x2b3   : > { %v961_v31 = vsel %vm538_vm1, %v4255_v15, 0.0 }
 0x2ba   : > { %v4270_v46 = vpop.eup %3662 }
 0x2bb   : > { %v967_v43 = vsel %vm538_vm1, %v4270_v46, 0.0 }
 0x34b   : > { %v4236_v62 = vpop.f32.mrf.mxu1 }
 0x34d   : > { %v3469_v0 = vpop.f32.mrf.mxu1 }
 0x34e   : > { %v4285_v0 = vpop.eup %3664 }
 0x34f   : > { %v3474_v1 = vpop.f32.mrf.mxu1  ;;  %v4291_v7 = vpop.eup %3666 }
 0x350   : > { %v4238_v3 = vmul.f32 0.25, %v3474_v1  ;;  %v938_v1 = vmul.f32 1.442695, %v926_v59 }
 0x351   : > { %v1417_v4 = vpop.f32.mrf.mxu1 }
 0x352   : > { %v4240_v5 = vmul.f32 0.25, %v1417_v4  ;;  %v1467_v6 = vsel %vm538_vm1, %v4238_v3, -inf  ;;  %v928_v4 = vsub.f32 %v4188_v61, %v4232_v52  ;;  %3672 = vpow2.f32 %v938_v1 }
 0x353   : > { %1468 = vmax.xlane.f32.xlu0 %v1467_v6  ;;  %v3477_v53 = vpop.f32.mrf.mxu1 }
 0x354   : > { %v4245_v8 = vmul.f32 0.25, %v3477_v53  ;;  %v1464_v10 = vsel %vm538_vm1, %v4240_v5, -inf  ;;  %v946_v53 = vsel %vm538_vm1, %v4285_v0, 0.0 }
 0x355   : > { %v1427_v57 = vpop.f32.mrf.mxu1 }
 0x356   : > { %v4247_v9 = vmul.f32 0.25, %v1427_v57  ;;  %v1473_v21 = vsel %vm538_vm1, %v4245_v8, -inf  ;;  %v949_v57 = vsel %vm538_vm1, %v4291_v7, 0.0 }
 0x357   : > { %1465 = vmax.xlane.f32.xlu0 %v1464_v10  ;;  %v3480_v11 = vpop.f32.mrf.mxu1 }
 0x358   : > { %v4251_v12 = vmul.f32 0.25, %v3480_v11  ;;  %v1470_v13 = vsel %vm538_vm1, %v4247_v9, -inf }
 0x359   : > { %1471 = vmax.xlane.f32.xlu1 %v1470_v13  ;;  %v1437_v44 = vpop.f32.mrf.mxu1 }
 0x35a   : > { %v4258_v18 = vmul.f32 0.25, %v1437_v44  ;;  %v1479_v22 = vsel %vm538_vm1, %v4251_v12, -inf }
 0x35b   : > { %1474 = vmax.xlane.f32.xlu0 %v1473_v21  ;;  %v3483_v25 = vpop.f32.mrf.mxu1  ;;  %v1553_v27 = vmax.f32 %v1467_v6, %v1479_v22  ;;  %v942_v6 = vmul.f32 1.442695, %v928_v4 }
 0x35c   : > { %v4264_v29 = vmul.f32 0.25, %v3483_v25  ;;  %v1476_v33 = vsel %vm538_vm1, %v4258_v18, -inf }
 0x35d   : > { %962 = vadd.xlane.f32.xlu1 %v961_v31  ;;  %v1447_v34 = vpop.f32.mrf.mxu1  ;;  %v1552_v35 = vmax.f32 %v1464_v10, %v1476_v33  ;;  %3674 = vpow2.f32 %v942_v6  ;;  %v4295_v10 = vpop.eup %3668 }
 0x35e   : > { %v4273_v38 = vmul.f32 0.25, %v1447_v34  ;;  %v1485_v39 = vsel %vm538_vm1, %v4264_v29, -inf  ;;  %v4302_v44 = vpop.eup %3670 }
 0x35f   : > { %1480 = vmax.xlane.f32.xlu0 %v1479_v22  ;;  %v1556_v40 = vmax.f32 %v1552_v35, %v1553_v27  ;;  %v1555_v42 = vmax.f32 %v1473_v21, %v1485_v39  ;;  %v955_v25 = vsel %vm538_vm1, %v4302_v44, 0.0  ;;  %v4308_v31 = vpop.eup %3672 }
 0x360   : > { %v1482_v41 = vsel %vm538_vm1, %v4273_v38, -inf  ;;  %v958_v37 = vsel %vm538_vm1, %v4308_v31, 0.0 }
 0x361   : > { %968 = vadd.xlane.f32.xlu1 %v967_v43  ;;  %v1554_v45 = vmax.f32 %v1470_v13, %v1482_v41  ;;  %v952_v13 = vsel %vm538_vm1, %v4295_v10, 0.0 }
 0x363   : > { %1477 = vmax.xlane.f32.xlu0 %v1476_v33  ;;  %v1557_v47 = vmax.f32 %v1554_v45, %v1555_v42 }
 0x365   : > { %v1558_v55 = vmax.f32 %v1556_v40, %v1557_v47 }
 0x367   : > { %1483 = vmax.xlane.f32.xlu0 %v1482_v41  ;;  %v1559_v60 = vrot.slane %v1558_v55, 4 }
 0x369   : > { %v1560_v63 = vmax.f32 %v1558_v55, %v1559_v60 }
 0x36b   : > { %1486 = vmax.xlane.f32.xlu0 %v1485_v39  ;;  %v1561_v56 = vrot.slane %v1560_v63, 2  ;;  %v4314_v39 = vpop.eup %3674 }
 0x36c   : > { %v964_v41 = vsel %vm538_vm1, %v4314_v39, 0.0 }
 0x36d   : > { %v1562_v48 = vmax.f32 %v1560_v63, %v1561_v56 }
 0x36f   : > { %v1563_v54 = vrot.slane %v1562_v48, 1  ;;  %947 = vadd.xlane.f32.xlu0 %v946_v53 }
 0x371   : > { %v1564_v49 = vmax.f32 %v1562_v48, %v1563_v54 }
 0x373   : > { %v1566_v61 = vsub.f32 %v4238_v3, %v1564_v49  ;;  %950 = vadd.xlane.f32.xlu0 %v949_v57  ;;  %v1567_v52 = vsub.f32 %v4247_v9, %v1564_v49  ;;  %v1565_v16 = vsub.f32 %v4240_v5, %v1564_v49  ;;  %v1568_v17 = vsub.f32 %v4245_v8, %v1564_v49 }
 0x374   : > { %v1569_v22 = vsub.f32 %v4258_v18, %v1564_v49  ;;  %v1570_v33 = vsub.f32 %v4251_v12, %v1564_v49  ;;  %v1571_v35 = vsub.f32 %v4273_v38, %v1564_v49  ;;  %v1572_v40 = vsub.f32 %v4264_v29, %v1564_v49 }
 0x375   : > { %v1575_v11 = vmul.f32 1.442695, %v1566_v61  ;;  %v1577_v21 = vmul.f32 1.442695, %v1567_v52  ;;  %v1573_v27 = vmul.f32 1.442695, %v1565_v16 }
 0x376   : > { %v1579_v34 = vmul.f32 1.442695, %v1568_v17  ;;  %v1581_v36 = vmul.f32 1.442695, %v1569_v22  ;;  %v1583_v42 = vmul.f32 1.442695, %v1570_v33 }
 0x377   : > { %953 = vadd.xlane.f32.xlu0 %v952_v13  ;;  %3676 = vpow2.f32 %v1575_v11  ;;  %v1585_v43 = vmul.f32 1.442695, %v1571_v35  ;;  %v1587_v45 = vmul.f32 1.442695, %v1572_v40 }
 0x378   : > { %3678 = vpow2.f32 %v1577_v21 }
 0x379   : > { %3680 = vpow2.f32 %v1573_v27 }
 0x37a   : > { %3682 = vpow2.f32 %v1579_v34 }
 0x37b   : > { %956 = vadd.xlane.f32.xlu0 %v955_v25  ;;  %3684 = vpow2.f32 %v1581_v36 }
 0x37c   : > { %3686 = vpow2.f32 %v1583_v42 }
 0x37d   : > { %3688 = vpow2.f32 %v1585_v43 }
 0x37e   : > { %3690 = vpow2.f32 %v1587_v45 }
 0x37f   : > { %959 = vadd.xlane.f32.xlu0 %v958_v37 }
 0x383   : > { %965 = vadd.xlane.f32.xlu0 %v964_v41 }
 0x384   : > { %v4319_v51 = vpop.eup %3676 }
 0x385   : > { %v4321_v50 = vpop.eup %3678  ;;  %v1590_v47 = vsel %vm538_vm1, %v4319_v51, 0.0 }
 0x386   : > { %v4325_v55 = vpop.eup %3680  ;;  %v1592_v63 = vsel %vm538_vm1, %v4321_v50, 0.0 }
 0x387   : > { %v1589_v58 = vsel %vm538_vm1, %v4325_v55, 0.0  ;;  %v4329_v59 = vpop.eup %3682 }
 0x388   : > { %v1591_v60 = vadd.f32 %v1590_v47, %v1589_v58  ;;  %v3685_v1 = vpop.eup %3684  ;;  %v1594_v56 = vsel %vm538_vm1, %v4329_v59, 0.0 }
 0x389   : > { %v3687_v48 = vpop.eup %3686  ;;  %v1596_v53 = vsel %vm538_vm1, %v3685_v1, 0.0 }
 0x38a   : > { %v1593_v4 = vadd.f32 %v1592_v63, %v1591_v60  ;;  %v3689_v54 = vpop.eup %3688  ;;  %v1598_v57 = vsel %vm538_vm1, %v3687_v48, 0.0 }
 0x38b   : > { %v3691_v61 = vpop.eup %3690  ;;  %v1600_v11 = vsel %vm538_vm1, %v3689_v54, 0.0 }
 0x38c   : > { %v1595_v6 = vadd.f32 %v1594_v56, %v1593_v4  ;;  %v1602_v16 = vsel %vm538_vm1, %v3691_v61, 0.0 }
 0x38e   : > { %v1597_v49 = vadd.f32 %v1596_v53, %v1595_v6 }
 0x390   : > { %v1599_v52 = vadd.f32 %v1598_v57, %v1597_v49 }
 0x392   : > { %v1601_v13 = vadd.f32 %v1600_v11, %v1599_v52 }
 0x394   : > { %v1603_v17 = vadd.f32 %v1602_v16, %v1601_v13 }
 0x396   : > { %v1604_v21 = vrot.slane %v1603_v17, 4 }
 0x398   : > { %v1605_v22 = vadd.f32 %v1604_v21, %v1603_v17 }
 0x39a   : > { %v1606_v25 = vrot.slane %v1605_v22, 2 }
 0x39c   : > { %v1607_v27 = vadd.f32 %v1606_v25, %v1605_v22 }
 0x39e   : > { %v1608_v33 = vrot.slane %v1607_v27, 1 }
 0x3a0   : > { %v1609_v34 = vadd.f32 %v1608_v33, %v1607_v27 }
 0x3a2   : > { %3692 = vrcp.f32 %v1609_v34 }
 0x3af   : > { %v4339_v35 = vpop.eup %3692 }
 0x3b0   : > { %v4342_v36 = vmul.f32 %v4339_v35, %v3685_v1  ;;  %v4345_v37 = vmul.f32 %v4339_v35, %v3687_v48  ;;  %v4348_v40 = vmul.f32 %v4339_v35, %v3689_v54  ;;  %v4351_v42 = vmul.f32 %v4339_v35, %v3691_v61 }
 0x3dc   : > { %v1469_v43 = vpop.xlane.xlu0 %1468 }
 0x3dd   : > { %v1489_v41 = vsub.f32 %v4238_v3, %v1469_v43 }
 0x3df   : > { %v1498_v45 = vmul.f32 1.442695, %v1489_v41 }
 0x3e0   : > { %v1466_v47 = vpop.xlane.xlu0 %1465 }
 0x3e1   : > { %3694 = vpow2.f32 %v1498_v45  ;;  %v1488_v58 = vsub.f32 %v4240_v5, %v1466_v47 }
 0x3e2   : > { %v1472_v60 = vpop.xlane.xlu1 %1471 }
 0x3e3   : > { %v1496_v63 = vmul.f32 1.442695, %v1488_v58  ;;  %v1490_v1 = vsub.f32 %v4247_v9, %v1472_v60 }
 0x3e4   : > { %v1475_v4 = vpop.xlane.xlu0 %1474 }
 0x3e5   : > { %3696 = vpow2.f32 %v1496_v63  ;;  %v1500_v56 = vmul.f32 1.442695, %v1490_v1  ;;  %v1491_v48 = vsub.f32 %v4245_v8, %v1475_v4 }
 0x3e7   : > { %3698 = vpow2.f32 %v1500_v56  ;;  %v1502_v6 = vmul.f32 1.442695, %v1491_v48 }
 0x3e8   : > { %v1481_v53 = vpop.xlane.xlu0 %1480 }
 0x3e9   : > { %3700 = vpow2.f32 %v1502_v6  ;;  %v1493_v3 = vsub.f32 %v4251_v12, %v1481_v53 }
 0x3eb   : > { %v1506_v54 = vmul.f32 1.442695, %v1493_v3 }
 0x3ec   : > { %v1478_v49 = vpop.xlane.xlu0 %1477 }
 0x3ed   : > { %3702 = vpow2.f32 %v1506_v54  ;;  %v1492_v5 = vsub.f32 %v4258_v18, %v1478_v49 }
 0x3ee   : > { %v4359_v57 = vpop.eup %3694 }
 0x3ef   : > { %v1504_v61 = vmul.f32 1.442695, %v1492_v5  ;;  %v1515_v9 = vsel %vm538_vm1, %v4359_v57, 0.0 }
 0x3f0   : > { %1516 = vadd.xlane.f32.xlu1 %v1515_v9  ;;  %v1484_v52 = vpop.xlane.xlu0 %1483 }
 0x3f1   : > { %3704 = vpow2.f32 %v1504_v61  ;;  %v1494_v11 = vsub.f32 %v4273_v38, %v1484_v52 }
 0x3f2   : > { %v4363_v8 = vpop.eup %3696 }
 0x3f3   : > { %v1512_v12 = vsel %vm538_vm1, %v4363_v8, 0.0  ;;  %v1508_v21 = vmul.f32 1.442695, %v1494_v11 }
 0x3f4   : > { %v4368_v13 = vpop.eup %3698  ;;  %1513 = vadd.xlane.f32.xlu0 %v1512_v12  ;;  %v1487_v18 = vpop.xlane.xlu0 %1486 }
 0x3f5   : > { %v1495_v16 = vsub.f32 %v4264_v29, %v1487_v18  ;;  %v1518_v27 = vsel %vm538_vm1, %v4368_v13, 0.0 }
 0x3f6   : > { %v4371_v17 = vpop.eup %3700 }
 0x3f7   : > { %v1510_v22 = vmul.f32 1.442695, %v1495_v16  ;;  %v1521_v25 = vsel %vm538_vm1, %v4371_v17, 0.0 }
 0x3f8   : > { %1522 = vadd.xlane.f32.xlu1 %v1521_v25  ;;  %1519 = vadd.xlane.f32.xlu0 %v1518_v27  ;;  %v948_v38 = vpop.xlane.xlu0 %947 }
 0x3f9   : > { %3706 = vpow2.f32 %v1510_v22 }
 0x3fa   : > { %v4377_v33 = vpop.eup %3702  ;;  %3708 = vrcp.f32 %v948_v38 }
 0x3fb   : > { %3710 = vpow2.f32 %v1508_v21  ;;  %v1527_v29 = vsel %vm538_vm1, %v4377_v33, 0.0 }
 0x3fc   : > { %1528 = vadd.xlane.f32.xlu1 %v1527_v29 }
 0x3fe   : > { %v4381_v34 = vpop.eup %3704 }
 0x3ff   : > { %v1524_v43 = vsel %vm538_vm1, %v4381_v34, 0.0 }
 0x400   : > { %1525 = vadd.xlane.f32.xlu0 %v1524_v43 }
 0x406   : > { %v4385_v41 = vpop.eup %3706 }
 0x407   : > { %v3709_v45 = vpop.eup %3708  ;;  %v1533_v47 = vsel %vm538_vm1, %v4385_v41, 0.0 }
 0x408   : > { %v4389_v58 = vpop.eup %3710  ;;  %1534 = vadd.xlane.f32.xlu1 %v1533_v47  ;;  %v971_v60 = vmul.f32 %v3709_v45, %v4285_v0  ;;  %v1611_v0 = vmul.f32 %v4339_v35, %v4325_v55 }
 0x409   : > { %v1530_v63 = vsel %vm538_vm1, %v4389_v58, 0.0 }
 0x40a   : > { %3439 = vmatprep.mubr.msk.f32.mxu0 %vm538_vm1, %v971_v60 }
 0x40c   : > { %1531 = vadd.xlane.f32.xlu1 %v1530_v63 }
 0x416   : > { %1053 = vrot.lane.b32.xlu0 %v4086_v14, %s3909_s30  ;;  %s3290_s30 = sshll.u32 %s4017_s22, 7 }
 0x417   : > { %s3087_s2 = scalar_lea.hbm %s4980_s15, %s3290_s30 }
 0x41a   : > { %1797 = vrot.lane.b32.xlu0 %v4118_v30, %s3911_s23  ;;  %v963_v30 = vpop.xlane.xlu1 %962 }
 0x41d   : > { %1619 = vrot.lane.b32.xlu1 %v4086_v14, %s3911_s23  ;;  %v1612_v14 = vmul.f32 %v4339_v35, %v4319_v51 }
 0x41e   : > { %1795 = vrot.lane.b32.xlu0 %v4124_v32, %s3911_s23  ;;  %v969_v51 = vpop.xlane.xlu1 %968 }
 0x421   : > { %1793 = vrot.lane.b32.xlu1 %v4108_v26, %s3911_s23  ;;  %v1613_v26 = vmul.f32 %v4339_v35, %v4321_v50 }
 0x422   : > { %1791 = vrot.lane.b32.xlu0 %v4114_v28, %s3911_s23 }
 0x425   : > { %1789 = vrot.lane.b32.xlu1 %v4106_v24, %s3911_s23  ;;  %v1614_v24 = vmul.f32 %v4339_v35, %v4329_v59 }
 0x426   : > { %1787 = vrot.lane.b32.xlu0 %v4104_v23, %s3911_s23 }
 0x429   : > { %1785 = vrot.lane.b32.xlu1 %v4097_v20, %s3911_s23  ;;  %v951_v20 = vpop.xlane.xlu0 %950 }
 0x42a   : > { %1783 = vrot.lane.b32.xlu0 %v4093_v19, %s3911_s23  ;;  %3712 = vrcp.f32 %v951_v20  ;;  %v754_v20 = vld [vmem:[%s4972_s7 + $0x8] sm:$0xff] }
 0x42d   : > { %v954_v19 = vpop.xlane.xlu0 %953 }
 0x42e   : > { %3714 = vrcp.f32 %v954_v19 }
 0x431   : > { %v957_v23 = vpop.xlane.xlu0 %956 }
 0x432   : > { %3716 = vrcp.f32 %v957_v23  ;;  %v753_v23 = vld [vmem:[%s4972_s7] sm:$0xff] }
 0x435   : > { %v960_v28 = vpop.xlane.xlu0 %959 }
 0x436   : > { %3718 = vrcp.f32 %v960_v28 }
 0x437   : > { %3720 = vrcp.f32 %v963_v30 }
 0x439   : > { %v966_v32 = vpop.xlane.xlu0 %965 }
 0x43a   : > { %3722 = vrcp.f32 %v966_v32 }
 0x43b   : > { %3724 = vrcp.f32 %v969_v51 }
 0x452   : > { %1751 = vxpose.xlu1.b32.start [1/8] (short) (narrow) %v1611_v0, 8 }
 0x456   : > { %1752 = vxpose.xlu1.b32.cont [2/8] (short) (narrow) %v1612_v14, 8  ;;  %v751_v14 = vld [vmem:[%s4997_s6 + $0x10] sm:$0xff] }
 0x45a   : > { %1753 = vxpose.xlu1.b32.cont [3/8] (short) (narrow) %v1613_v26, 8 }
 0x45e   : > { %1754 = vxpose.xlu1.b32.cont [4/8] (short) (narrow) %v1614_v24, 8 }
 0x462   : > { %1755 = vxpose.xlu1.b32.cont [5/8] (short) (narrow) %v4342_v36, 8 }
 0x466   : > { %1756 = vxpose.xlu1.b32.cont [6/8] (short) (narrow) %v4345_v37, 8  ;;  %v3713_v37 = vpop.eup %3712 }
 0x467   : > { %v973_v4 = vmul.f32 %v3713_v37, %v4291_v7  ;;  %v755_v37 = vld [vmem:[%s4972_s7 + $0x10] sm:$0xff] }
 0x46a   : > { %1757 = vxpose.xlu1.b32.cont [7/8] (short) (narrow) %v4348_v40, 8  ;;  %v3715_v40 = vpop.eup %3714 }
 0x46b   : > { %v3717_v56 = vpop.eup %3716  ;;  %v975_v48 = vmul.f32 %v3715_v40, %v4295_v10 }
 0x46c   : > { %v3719_v6 = vpop.eup %3718  ;;  %v977_v54 = vmul.f32 %v3717_v56, %v4302_v44 }
 0x46d   : > { %v3721_v49 = vpop.eup %3720  ;;  %v979_v7 = vmul.f32 %v3719_v6, %v4308_v31  ;;  %v2540_v6 = vld [vmem:[%s4975_s10] sm:$0xff] }
 0x46e   : > { %1758 = vxpose.xlu1.b32.end [8/8] (short) (narrow) %v4351_v42, 8  ;;  %v3723_v5 = vpop.eup %3722  ;;  %v981_v9 = vmul.f32 %v3721_v49, %v4255_v15 }
 0x46f   : > { %v3725_v52 = vpop.eup %3724  ;;  %v983_v44 = vmul.f32 %v3723_v5, %v4314_v39 }
 0x470   : > { %v985_v12 = vmul.f32 %v3725_v52, %v4270_v46 }
 0x479   : > { %v1517_v55 = vpop.xlane.xlu1 %1516 }
 0x47d   : > { %v1514_v50 = vpop.xlane.xlu0 %1513 }
 0x47e   : > { %3726 = vrcp.f32 %v1514_v50 }
 0x47f   : > { %3728 = vrcp.f32 %v1517_v55 }
 0x481   : > { %v1520_v59 = vpop.xlane.xlu0 %1519  ;;  %v1523_v35 = vpop.xlane.xlu1 %1522 }
 0x482   : > { %3730 = vrcp.f32 %v1520_v59 }
 0x483   : > { %3732 = vrcp.f32 %v1523_v35  ;;  %v756_v35 = vld [vmem:[%s4972_s7 + $0x18] sm:$0xff] }
 0x485   : > { %v1529_v42 = vpop.xlane.xlu1 %1528 }
 0x489   : > { %v1526_v36 = vpop.xlane.xlu0 %1525 }
 0x48a   : > { %3734 = vrcp.f32 %v1526_v36 }
 0x48b   : > { %3736 = vrcp.f32 %v1529_v42  ;;  %v3727_v31 = vpop.eup %3726 }
 0x48c   : > { %v3729_v18 = vpop.eup %3728  ;;  %v1537_v15 = vmul.f32 %v3727_v31, %v4363_v8 }
 0x48d   : > { %v1054_v1 = vpop.permute.xlu0 %1053  ;;  %v1539_v22 = vmul.f32 %v3729_v18, %v4359_v57 }
 0x48e   : > { %3437 = vmatprep.subr.mxu0 %v1054_v1 }
 0x48f   : > { %3438 = vmatpush3.msra.mxu0 %v1054_v1  ;;  %v3731_v21 = vpop.eup %3730 }
 0x490   : > { %3440 = vmatmul.mubr.msk.f32.vlgmr.msra.gmra.mxu0 %vm538_vm1, %v973_v4  ;;  %v3733_v25 = vpop.eup %3732  ;;  %v1541_v27 = vmul.f32 %v3731_v21, %v4368_v13 }
 0x491   : > { %v1535_v53 = vpop.xlane.xlu1 %1534  ;;  %3442 = vmatprep.mubr.msk.f32.mxu0 %vm538_vm1, %v975_v48  ;;  %v1798_v3 = vpop.permute.xlu0 %1797  ;;  %v1543_v29 = vmul.f32 %v3733_v25, %v4371_v17 }
 0x492   : > { %3499 = vmatpush3.msra.mxu1 %v1798_v3 }
 0x493   : > { %3500 = vmatprep.subr.mxu1 %v3907_v2 }
 0x494   : > { %3443 = vmatmul.mubr.msk.f32.gmra.mxu0 %vm538_vm1, %v977_v54 }
 0x495   : > { %v1532_v10 = vpop.xlane.xlu1 %1531  ;;  %3445 = vmatprep.mubr.msk.f32.mxu0 %vm538_vm1, %v979_v7  ;;  %v1796_v61 = vpop.permute.xlu0 %1795 }
 0x496   : > { %3501 = vmatpush3.msra.mxu1 %v1796_v61  ;;  %3738 = vrcp.f32 %v1532_v10 }
 0x497   : > { %3502 = vmatprep.subr.mxu1 %v3907_v2  ;;  %3740 = vrcp.f32 %v1535_v53  ;;  %v3735_v46 = vpop.eup %3734 }
 0x498   : > { %3446 = vmatmul.mubr.msk.f32.gmra.mxu0 %vm538_vm1, %v981_v9  ;;  %v3737_v57 = vpop.eup %3736  ;;  %v1545_v43 = vmul.f32 %v3735_v46, %v4381_v34 }
 0x499   : > { %v1620_v11 = vpop.permute.xlu1 %1619  ;;  %3448 = vmatprep.mubr.msk.f32.mxu0 %vm538_vm1, %v983_v44  ;;  %v1792_v16 = vpop.permute.xlu0 %1791  ;;  %v1547_v47 = vmul.f32 %v3737_v57, %v4377_v33  ;;  %v750_v33 = vld [vmem:[%s4997_s6 + $0x8] sm:$0xff]  ;;  %v4519_v44 = vld [vmem:[%s4973_s8] ss:$0 sm:$0xff] }
 0x49a   : > { %3484 = vmatprep.subr.mxu0 %v1620_v11 }
 0x49b   : > { %3485 = vmatpush3.msra.mxu0 %v1620_v11 }
 0x49c   : > { %3449 = vmatmul.mubr.msk.f32.gmra.mxu0 %vm538_vm1, %v985_v12  ;;  %3533 = vmatprep.subr.mxu0 %v750_v33  ;;  %v3806_v12 = vld [vmem:[%s4058_s17 + $0x8] sm:$0xff] }
 0x49d   : > { %v1794_v39 = vpop.permute.xlu1 %1793  ;;  %3486 = vmatprep.mubr.msk.f32.mxu0 %vm538_vm1, %v1537_v15  ;;  %v1788_v38 = vpop.permute.xlu0 %1787  ;;  %v4527_v15 = vld [vmem:[%s4974_s9] ss:$0 sm:$0xff] }
 0x49e   : > { %3503 = vmatpush3.msra.mxu1 %v1794_v39 }
 0x49f   : > { %3504 = vmatprep.subr.mxu1 %v3907_v2 }
 0x4a0   : > { %3487 = vmatmul.mubr.msk.f32.vlgmr.msra.gmra.mxu0 %vm538_vm1, %v1539_v22  ;;  %3505 = vmatpush3.msra.mxu1 %v1792_v16  ;;  %v3807_v22 = vld [vmem:[%s4058_s17] sm:$0xff] }
 0x4a1   : > { %v1790_v8 = vpop.permute.xlu1 %1789  ;;  %3489 = vmatprep.mubr.msk.f32.mxu0 %vm538_vm1, %v1541_v27  ;;  %3506 = vmatprep.subr.mxu1 %v3907_v2  ;;  %v1784_v63 = vpop.permute.xlu0 %1783 }
 0x4a2   : > { %3507 = vmatpush3.msra.mxu1 %v1790_v8  ;;  %3534 = vmatpush3.msra.mxu0 %v750_v33 }
 0x4a3   : > { %3508 = vmatprep.subr.mxu1 %v3907_v2  ;;  %v3739_v45 = vpop.eup %3738 }
 0x4a4   : > { %3490 = vmatmul.mubr.msk.f32.gmra.mxu0 %vm538_vm1, %v1543_v29  ;;  %3509 = vmatpush3.msra.mxu1 %v1788_v38  ;;  %v3741_v60 = vpop.eup %3740  ;;  %v1549_v17 = vmul.f32 %v3739_v45, %v4389_v58  ;;  %v749_v58 = vld [vmem:[%s4997_s6] sm:$0xff]  ;;  %v3808_v29 = vld [vmem:[%s4058_s17 + $0x18] sm:$0xff] }
 0x4a5   : > { %v1786_v13 = vpop.permute.xlu1 %1785  ;;  %3492 = vmatprep.mubr.msk.f32.mxu0 %vm538_vm1, %v1545_v43  ;;  %3510 = vmatprep.subr.mxu1 %v3907_v2  ;;  %v1551_v34 = vmul.f32 %v3741_v60, %v4385_v41  ;;  %v752_v41 = vld [vmem:[%s4997_s6 + $0x18] sm:$0xff] }
 0x4a6   : > { %3511 = vmatpush3.msra.mxu1 %v1786_v13  ;;  %3535 = vmatprep.subr.mxu0 %v749_v58 }
 0x4a7   : > { %3512 = vmatprep.subr.mxu1 %v3907_v2  ;;  %3536 = vmatpush3.msra.mxu0 %v749_v58 }
 0x4a8   : > { %3493 = vmatmul.mubr.msk.f32.gmra.mxu0 %vm538_vm1, %v1547_v47  ;;  %3513 = vmatpush3.msra.mxu1 %v1784_v63  ;;  %v3809_v63 = vld [vmem:[%s4058_s17 + $0x10] sm:$0xff] }
 0x4a9   : > { %3495 = vmatprep.mubr.msk.f32.mxu0 %vm538_vm1, %v1549_v17  ;;  %3556 = vmatprep.subr.mxu0 %v3907_v2 }
 0x4aa   : > { %3517 = vmatprep.subr.mxu1 %v752_v41 }
 0x4ac   : > { %3496 = vmatmul.mubr.msk.f32.gmra.mxu0 %vm538_vm1, %v1551_v34 }
 0x4ce   : > { %v1767_v0 = vpop.trf.xlu1 }
 0x4cf   : > { %3515 = vmatmul.mubr.msk.f32.vlgmr.msra.gmra.mxu1 %vm1241_vm3, %v1767_v0 }
 0x4d0   : > { %3518 = vmatpush3.msra.mxu1 %v752_v41 }
 0x4d1   : > { %3519 = vmatprep.subr.mxu1 %v751_v14 }
 0x4d2   : > { %3520 = vmatpush3.msra.mxu1 %v751_v14  ;;  %v3810_v14 = vld [vmem:[%s4058_s17 + $0x28] sm:$0xff] }
 0x4d3   : > { %3549 = vmatprep.subr.mxu1 %v3907_v2 }
 0x550   : > { %v3441_v26 = vpop.f32.mrf.mxu0 }
 0x552   : > { %v1146_v24 = vpop.f32.mrf.mxu0 }
 0x553   : > { %3537 = vmatprep.mubr.msk.f32.mxu0 %vm757_vm2, %v1146_v24 }
 0x554   : > { %v3444_v19 = vpop.f32.mrf.mxu0  ;;  %3538 = vmatmul.mubr.msk.f32.vlgmr.msra.gmra.mxu0 %vm757_vm2, %v3441_v26 }
 0x555   : > { %3557 = vmatpush3.msra.mxu0 %v754_v20 }
 0x556   : > { %v1156_v28 = vpop.f32.mrf.mxu0  ;;  %3558 = vmatprep.subr.mxu0 %v3907_v2 }
 0x557   : > { %3540 = vmatprep.mubr.msk.f32.mxu0 %vm757_vm2, %v1156_v28  ;;  %3559 = vmatpush3.msra.mxu0 %v753_v23 }
 0x558   : > { %v3447_v30 = vpop.f32.mrf.mxu0  ;;  %3541 = vmatmul.mubr.msk.f32.gmra.mxu0 %vm757_vm2, %v3444_v19 }
 0x55a   : > { %v1166_v32 = vpop.f32.mrf.mxu0 }
 0x55b   : > { %3543 = vmatprep.mubr.msk.f32.mxu0 %vm757_vm2, %v1166_v32 }
 0x55c   : > { %v3450_v51 = vpop.f32.mrf.mxu0  ;;  %3544 = vmatmul.mubr.msk.f32.gmra.mxu0 %vm757_vm2, %v3447_v30 }
 0x55e   : > { %v1176_v50 = vpop.f32.mrf.mxu0 }
 0x55f   : > { %3546 = vmatprep.mubr.msk.f32.mxu0 %vm757_vm2, %v1176_v50 }
 0x560   : > { %v3488_v55 = vpop.f32.mrf.mxu0  ;;  %3547 = vmatmul.mubr.msk.f32.gmra.mxu0 %vm757_vm2, %v3450_v51 }
 0x561   : > { %3560 = vmatprep.mubr.msk.f32.mxu0 %vm3908_vm0, %v3907_v2 }
 0x562   : > { %v1712_v59 = vpop.f32.mrf.mxu0 }
 0x563   : > { %3521 = vmatprep.mubr.msk.f32.mxu1 %vm757_vm2, %v1712_v59 }
 0x564   : > { %v3491_v36 = vpop.f32.mrf.mxu0  ;;  %3522 = vmatmul.mubr.msk.f32.vlgmr.msra.gmra.mxu1 %vm757_vm2, %v3488_v55  ;;  %3561 = vmatmul.mubr.msk.f32.vlgmr.msra.gmra.mxu0 %vm757_vm2, %v4236_v62 }
 0x565   : > { %3550 = vmatpush3.msra.mxu1 %v756_v35 }
 0x566   : > { %v1722_v40 = vpop.f32.mrf.mxu0  ;;  %3551 = vmatprep.subr.mxu1 %v3907_v2 }
 0x567   : > { %3524 = vmatprep.mubr.msk.f32.mxu1 %vm757_vm2, %v1722_v40  ;;  %3552 = vmatpush3.msra.mxu1 %v755_v37 }
 0x568   : > { %v3494_v42 = vpop.f32.mrf.mxu0  ;;  %3525 = vmatmul.mubr.msk.f32.gmra.mxu1 %vm757_vm2, %v3491_v36  ;;  %3563 = vmatprep.subr.mxu1 %v2540_v6 }
 0x56a   : > { %v1732_v1 = vpop.f32.mrf.mxu0 }
 0x56b   : > { %3527 = vmatprep.mubr.msk.f32.mxu1 %vm757_vm2, %v1732_v1  ;;  %v3811_v1 = vld [vmem:[%s4058_s17 + $0x20] sm:$0xff] }
 0x56c   : > { %v3497_v4 = vpop.f32.mrf.mxu0  ;;  %3528 = vmatmul.mubr.msk.f32.gmra.mxu1 %vm757_vm2, %v3494_v42 }
 0x56e   : > { %v1742_v62 = vpop.f32.mrf.mxu0 }
 0x56f   : > { %3530 = vmatprep.mubr.msk.f32.mxu1 %vm757_vm2, %v1742_v62 }
 0x570   : > { %3531 = vmatmul.mubr.msk.f32.gmra.mxu1 %vm757_vm2, %v3497_v4 }
 0x571   : > { %3553 = vmatprep.mubr.msk.f32.mxu1 %vm3908_vm0, %v3907_v2 }
 0x58f   : > { %v1876_v56 = vpop.f32.mrf.mxu1 }
 0x590   : > { %3554 = vmatmul.mubr.msk.f32.vlgmr.msra.gmra.mxu1 %vm757_vm2, %v1876_v56 }
 0x591   : > { %v3516_v48 = vpop.f32.mrf.mxu1  ;;  %3564 = vmatpush3.msra.mxu1 %v2540_v6 }
 0x614   : > { %v3539_v53 = vpop.f32.mrf.mxu0 }
 0x616   : > { %v2099_v3 = vpop.f32.mrf.mxu0 }
 0x618   : > { %v3542_v54 = vpop.f32.mrf.mxu0 }
 0x61a   : > { %v2109_v49 = vpop.f32.mrf.mxu0 }
 0x61c   : > { %v3545_v7 = vpop.f32.mrf.mxu0 }
 0x61e   : > { %v2119_v5 = vpop.f32.mrf.mxu0 }
 0x620   : > { %v4510_v10 = vpop.f32.mrf.mxu0 }
 0x622   : > { %v4512_v2 = vpop.f32.mrf.mxu0 }
 0x624   : > { %v3523_v61 = vpop.f32.mrf.mxu1  ;;  %v4514_v9 = vpop.f32.mrf.mxu0 }
 0x625   : > { %v2105_v52 = vadd.f32 %v3539_v53, %v3523_v61 }
 0x626   : > { %v1970_v31 = vpop.f32.mrf.mxu1  ;;  %v3562_v11 = vpop.f32.mrf.mxu0 }
 0x627   : > { %v4522_v18 = vadd.f32 %v3806_v12, %v2105_v52  ;;  %v2100_v16 = vadd.f32 %v2099_v3, %v1970_v31 }
 0x628   : > { %v3526_v21 = vpop.f32.mrf.mxu1 }
 0x629   : > { %v2302_v39 = vmul.f32 %v4519_v44, %v4522_v18  ;;  %v4532_v25 = vadd.f32 %v3807_v22, %v2100_v16  ;;  %v2115_v27 = vadd.f32 %v3542_v54, %v3526_v21  ;;  %v3812_v21 = vld [vmem:[%s4058_s17 + $0x38] sm:$0xff]  ;;  %v3813_v22 = vld [vmem:[%s4058_s17 + $0x30] sm:$0xff]  ;;  %s4635_s17 = sand.u32 1, %s3897_s19  }
 0x62a   : > { %v1980_v46 = vpop.f32.mrf.mxu1  ;;  %s3197_s16 = sshll.u32 %s4635_s17, 3  ;;  %s3060_s25 = scalar_lea.sflag [#allocation5], %s4635_s17 }
 0x62b   : > { %v4535_v38 = vadd.f32 %v4527_v15, %v2302_v39  ;;  %v2301_v8 = vmul.f32 %v4519_v44, %v4532_v25  ;;  %v4540_v57 = vadd.f32 %v3808_v29, %v2115_v27  ;;  %v2110_v43 = vadd.f32 %v2109_v49, %v1980_v46 }
 0x62c   : > { %v3529_v45 = vpop.f32.mrf.mxu1 }
 0x62d   : > { %v4543_v13 = vmul.f32 0.70710677, %v4535_v38  ;;  %v4546_v47 = vadd.f32 %v4527_v15, %v2301_v8  ;;  %v2304_v60 = vmul.f32 %v4519_v44, %v4540_v57  ;;  %v4551_v17 = vadd.f32 %v3809_v63, %v2110_v43 }
 0x62e   : > { %v2125_v34 = vadd.f32 %v3545_v7, %v3529_v45  ;;  %v1990_v24 = vpop.f32.mrf.mxu1 }
 0x62f   : > { %v2341_v0 = vand.u32 2147483647, %v4543_v13  ;;  %v4555_v33 = vmul.f32 0.70710677, %v4546_v47  ;;  %v4558_v58 = vadd.f32 %v4527_v15, %v2304_v60  ;;  %v2303_v41 = vmul.f32 %v4519_v44, %v4551_v17 }
 0x630   : > { %v4563_v26 = vadd.f32 %v3810_v14, %v2125_v34  ;;  %v2120_v50 = vadd.f32 %v2119_v5, %v1990_v24  ;;  %v3532_v36 = vpop.f32.mrf.mxu1  ;;  %vm2501_vm4 = vcmp.lt.f32.partialorder %v4543_v13, 0.0 }
 0x631   : > { %v2349_v20 = vmul.f32 0.3275911, %v2341_v0  ;;  %v2340_v19 = vand.u32 2147483647, %v4555_v33  ;;  %v4567_v23 = vmul.f32 0.70710677, %v4558_v58  ;;  %v4570_v28 = vadd.f32 %v4527_v15, %v2303_v41 }
 0x632   : > { %v2306_v51 = vmul.f32 %v4519_v44, %v4563_v26  ;;  %v4583_v4 = vadd.f32 %v3811_v1, %v2120_v50  ;;  %v2453_v48 = vsub.f32 0.0, %v2341_v0  ;;  %v2000_v53 = vpop.f32.mrf.mxu1  ;;  %v2135_v7 = vadd.f32 %v4510_v10, %v3532_v36 }
 0x633   : > { %v2357_v30 = vadd.f32 1.0, %v2349_v20  ;;  %v2348_v32 = vmul.f32 0.3275911, %v2340_v19  ;;  %v2343_v55 = vand.u32 2147483647, %v4567_v23  ;;  %v2452_v5 = vsub.f32 0.0, %v2340_v19 }
 0x634   : > { %v4576_v59 = vmul.f32 0.70710677, %v4570_v28  ;;  %v4580_v42 = vadd.f32 %v4527_v15, %v2306_v51  ;;  %v2305_v54 = vmul.f32 %v4519_v44, %v4583_v4  ;;  %v2130_v52 = vadd.f32 %v4512_v2, %v2000_v53 }
 0x635   : > { %3742 = vrcp.f32 %v2357_v30  ;;  %v2356_v35 = vadd.f32 1.0, %v2348_v32  ;;  %v2351_v37 = vmul.f32 0.3275911, %v2343_v55  ;;  %v2461_v31 = vmul.f32 %v2453_v48, %v2341_v0 }
 0x636   : > { %v2342_v40 = vand.u32 2147483647, %v4576_v59  ;;  %v4586_v6 = vmul.f32 0.70710677, %v4580_v42  ;;  %v4593_v61 = vadd.f32 %v4527_v15, %v2305_v54  ;;  %v2455_v11 = vsub.f32 0.0, %v2343_v55 }
 0x637   : > { %3744 = vrcp.f32 %v2356_v35  ;;  %v2359_v62 = vadd.f32 1.0, %v2351_v37  ;;  %v4600_v39 = vadd.f32 %v3812_v21, %v2135_v7  ;;  %v4603_v27 = vadd.f32 %v3813_v22, %v2130_v52 }
 0x638   : > { %v2350_v56 = vmul.f32 0.3275911, %v2342_v40  ;;  %v2345_v49 = vand.u32 2147483647, %v4586_v6  ;;  %v4597_v16 = vmul.f32 0.70710677, %v4593_v61  ;;  %v2460_v46 = vmul.f32 %v2452_v5, %v2340_v19 }
 0x639   : > { %3746 = vrcp.f32 %v2359_v62  ;;  %v2308_v2 = vmul.f32 %v4519_v44, %v4600_v39  ;;  %v2307_v29 = vmul.f32 %v4519_v44, %v4603_v27  ;;  %v2470_v43 = vmul.f32 1.442695, %v2461_v31 }
 0x63a   : > { %v2358_v3 = vadd.f32 1.0, %v2350_v56  ;;  %v2353_v12 = vmul.f32 0.3275911, %v2345_v49  ;;  %v2344_v8 = vand.u32 2147483647, %v4597_v16  ;;  %v2463_v45 = vmul.f32 %v2455_v11, %v2343_v55 }
 0x63b   : > { %v4613_v34 = vadd.f32 %v4527_v15, %v2308_v2  ;;  %v4616_v0 = vadd.f32 %v4527_v15, %v2307_v29  ;;  %v2454_v14 = vsub.f32 0.0, %v2342_v40  ;;  %v2468_v24 = vmul.f32 1.442695, %v2460_v46 }
 0x63c   : > { %3748 = vrcp.f32 %v2358_v3  ;;  %v2361_v10 = vadd.f32 1.0, %v2353_v12  ;;  %v2352_v63 = vmul.f32 0.3275911, %v2344_v8  ;;  %v2457_v20 = vsub.f32 0.0, %v2345_v49 }
 0x63d   : > { %v4620_v44 = vmul.f32 0.70710677, %v4613_v34  ;;  %v2474_v51 = vmul.f32 1.442695, %v2463_v45  ;;  %v4625_v50 = vmul.f32 0.70710677, %v4616_v0  ;;  %v2462_v36 = vmul.f32 %v2454_v14, %v2342_v40 }
 0x63e   : > { %3750 = vrcp.f32 %v2361_v10  ;;  %v2360_v19 = vadd.f32 1.0, %v2352_v63  ;;  %v2465_v62 = vmul.f32 %v2457_v20, %v2345_v49  ;;  %v2456_v7 = vsub.f32 0.0, %v2344_v8 }
 0x63f   : > { %3752 = vpow2.f32 %v2470_v43  ;;  %v2347_v15 = vand.u32 2147483647, %v4620_v44  ;;  %v2346_v37 = vand.u32 2147483647, %v4625_v50  ;;  %v2472_v11 = vmul.f32 1.442695, %v2462_v36 }
 0x640   : > { %3754 = vrcp.f32 %v2360_v19  ;;  %v2478_v21 = vmul.f32 1.442695, %v2465_v62  ;;  %v4644_v46 = vmul.f32 0.5, %v4535_v38  ;;  %v2464_v45 = vmul.f32 %v2456_v7, %v2344_v8 }
 0x641   : > { %3756 = vpow2.f32 %v2468_v24  ;;  %v2355_v56 = vmul.f32 0.3275911, %v2347_v15  ;;  %v2354_v3 = vmul.f32 0.3275911, %v2346_v37  ;;  %v2459_v63 = vsub.f32 0.0, %v2347_v15 }
 0x642   : > { %v4610_v60 = vpop.eup %3742  ;;  %3758 = vpow2.f32 %v2474_v51  ;;  %v2458_v38 = vsub.f32 0.0, %v2346_v37  ;;  %vm2500_vm5 = vcmp.lt.f32.partialorder %v4555_v33, 0.0  ;;  %vm2503_vm6 = vcmp.lt.f32.partialorder %v4567_v23, 0.0 }
 0x643   : > { %v2381_v41 = vmul.f32 1.0614054, %v4610_v60  ;;  %v2363_v5 = vadd.f32 1.0, %v2355_v56  ;;  %v2362_v12 = vadd.f32 1.0, %v2354_v3  ;;  %vm2502_vm7 = vcmp.lt.f32.partialorder %v4576_v59, 0.0 }
 0x644   : > { %v4622_v30 = vpop.eup %3744  ;;  %vm2505_vm8 = vcmp.lt.f32.partialorder %v4586_v6, 0.0  ;;  %vm2504_vm9 = vcmp.lt.f32.partialorder %v4597_v16, 0.0  ;;  %vm2507_vm10 = vcmp.lt.f32.partialorder %v4620_v44, 0.0  ;;  %vm2506_vm11 = vcmp.lt.f32.partialorder %v4625_v50, 0.0  ;;  %v2916_v44 = vld [vmem:[%s4978_s13] sm:$0xff] }
 0x645   : > { %v2389_v32 = vadd.f32 -1.4531521, %v2381_v41  ;;  %v2380_v1 = vmul.f32 1.0614054, %v4622_v30  ;;  %3760 = vrcp.f32 %v2363_v5  ;;  %3577 = vmatprep.subr.mxu0 %v2916_v44 }
 0x646   : > { %v4628_v55 = vpop.eup %3746  ;;  %3762 = vrcp.f32 %v2362_v12  ;;  %3578 = vmatpush3.msra.mxu0 %v2916_v44 }
 0x647   : > { %v2397_v35 = vmul.f32 %v4610_v60, %v2389_v32  ;;  %v2383_v48 = vmul.f32 1.0614054, %v4628_v55  ;;  %v2388_v40 = vadd.f32 -1.4531521, %v2380_v1  ;;  %3764 = vpow2.f32 %v2472_v11 }
 0x648   : > { %3766 = vpow2.f32 %v2478_v21 }
 0x649   : > { %v2405_v53 = vadd.f32 1.4214138, %v2397_v35  ;;  %v4637_v54 = vpop.eup %3748  ;;  %v2391_v52 = vadd.f32 -1.4531521, %v2383_v48  ;;  %v2396_v22 = vmul.f32 %v4622_v30, %v2388_v40  ;;  %v2476_v48 = vmul.f32 1.442695, %v2464_v45 }
 0x64a   : > { %v2382_v49 = vmul.f32 1.0614054, %v4637_v54 }
 0x64b   : > { %v2413_v31 = vmul.f32 %v4610_v60, %v2405_v53  ;;  %v2399_v10 = vmul.f32 %v4628_v55, %v2391_v52  ;;  %v4647_v43 = vpop.eup %3750  ;;  %v2404_v41 = vadd.f32 1.4214138, %v2396_v22  ;;  %v2467_v53 = vmul.f32 %v2459_v63, %v2347_v15 }
 0x64c   : > { %v2390_v29 = vadd.f32 -1.4531521, %v2382_v49  ;;  %v2385_v19 = vmul.f32 1.0614054, %v4647_v43  ;;  %v3753_v56 = vpop.eup %3752  ;;  %v2466_v49 = vmul.f32 %v2458_v38, %v2346_v37  ;;  %3768 = vpow2.f32 %v2476_v48 }
 0x64d   : > { %v2421_v2 = vadd.f32 -0.28449672, %v2413_v31  ;;  %v2407_v14 = vadd.f32 1.4214138, %v2399_v10  ;;  %v2412_v51 = vmul.f32 %v4622_v30, %v2404_v41  ;;  %v4656_v40 = vpop.eup %3754  ;;  %v3814_v31 = vld [vmem:[%s4063_s27] sm:$0xff]  ;;  %s4670_s27 = scalar_lea.vmem [#allocation4], %s3197_s16 }
 0x64e   : > { %v2398_v20 = vmul.f32 %v4637_v54, %v2390_v29  ;;  %v2393_v62 = vadd.f32 -1.4531521, %v2385_v19  ;;  %v2384_v15 = vmul.f32 1.0614054, %v4656_v40  ;;  %v3757_v10 = vpop.eup %3756  ;;  %v4666_v29 = vmul.f32 0.5, %v4546_v47  ;;  %s3089_s4 = sshll.u32 %s4670_s27, 4  ;;  %s3090_s4 = int_to_ptr.vmem [resolvable:$true] %s3089_s4 }
 0x64f   : > { %v2429_v24 = vmul.f32 %v4610_v60, %v2421_v2  ;;  %v2415_v35 = vmul.f32 %v4628_v55, %v2407_v14  ;;  %v2420_v3 = vadd.f32 -0.28449672, %v2412_v51  ;;  %v3759_v37 = vpop.eup %3758  ;;  %v2482_v47 = vmul.f32 1.442695, %v2467_v53  ;;  %s3815_s26 = scalar_lea.vmem %s3090_s4, 128  ;;  %p3822_p0 = scmp.lt.s32.totalorder %s3090_s4, %s3820_s1 }
 0x650   : > { %v2207_v32 = vpop.f32.mrf.mxu1  ;;  %v2406_v1 = vadd.f32 1.4214138, %v2398_v20  ;;  %v2392_v14 = vadd.f32 -1.4531521, %v2384_v15  ;;  %v2480_v38 = vmul.f32 1.442695, %v2466_v49  ;;  %p3816_p11 = scmp.ne.s32.totalorder %s3090_s4, %s3815_s26  ;;  %p3823_p1 = scmp.lt.s32.totalorder %s3821_s3, %s3815_s26 }
 0x651   : > { %v2437_v36 = vadd.f32 0.2548296, %v2429_v24  ;;  %v2281_v8 = vadd.f32 %v4514_v9, %v2207_v32  ;;  %v2423_v7 = vadd.f32 -0.28449672, %v2415_v35  ;;  %v2401_v9 = vmul.f32 %v4647_v43, %v2393_v62 }
 0x652   : > { %v3555_v5 = vpop.f32.mrf.mxu1  ;;  %v2414_v12 = vmul.f32 %v4637_v54, %v2406_v1  ;;  %v2428_v21 = vmul.f32 %v4622_v30, %v2420_v3  ;;  %v2400_v35 = vmul.f32 %v4656_v40, %v2392_v14  ;;  %v2326_v1 = vmul.f32 0.5, %v4570_v28  ;;  %p3817_p12 = pnand %p3816_p11, %p4034_p5  ;;  %p3824_p2 = por %p3823_p1, %p3822_p0 }
 0x653   : > { %v2445_v52 = vmul.f32 %v4610_v60, %v2437_v36  ;;  %v2284_v11 = vadd.f32 %v3814_v31, %v2281_v8  ;;  %v2431_v22 = vmul.f32 %v4628_v55, %v2423_v7  ;;  %v2409_v60 = vadd.f32 1.4214138, %v2401_v9  ;;  %v4681_v36 = vpop.eup %3760 }
 0x654   : > { %v2422_v45 = vadd.f32 -0.28449672, %v2414_v12  ;;  %v2436_v63 = vadd.f32 0.2548296, %v2428_v21  ;;  %v4684_v48 = vpop.eup %3762  ;;  %v2408_v7 = vadd.f32 1.4214138, %v2400_v35  ;;  %3770 = vpow2.f32 %v2482_v47  ;;  %p3818_p13 = pneg %p3817_p12 }
 0x655   : > { %v2485_v2 = vmul.f32 %v3753_v56, %v2445_v52  ;;  %2285 = vst.msk [vmem:[%s4670_s27] sm:$0xff] %vm538_vm1, %v2284_v11  ;;  %v2439_v41 = vadd.f32 0.2548296, %v2431_v22  ;;  %v2417_v19 = vmul.f32 %v4647_v43, %v2409_v60  ;;  %v2387_v5 = vmul.f32 1.0614054, %v4681_v36  ;;  %v3765_v11 = vpop.eup %3764 }
 0x656   : > { %v2430_v20 = vmul.f32 %v4637_v54, %v2422_v45  ;;  %v2444_v32 = vmul.f32 %v4622_v30, %v2436_v63  ;;  %v2386_v31 = vmul.f32 1.0614054, %v4684_v48  ;;  %v2416_v9 = vmul.f32 %v4656_v40, %v2408_v7  ;;  %v3767_v49 = vpop.eup %3766  ;;  %p3825_p3 = pnand %p3824_p2, %p3818_p13 }
 0x657   : > { %v2493_v24 = vsub.f32 1.0, %v2485_v2  ;;  %v2447_v51 = vmul.f32 %v4628_v55, %v2439_v41  ;;  %v2425_v56 = vadd.f32 -0.28449672, %v2417_v19  ;;  %3772 = vpow2.f32 %v2480_v38 }
 0x658   : > { %v2438_v62 = vadd.f32 0.2548296, %v2430_v20  ;;  %v2484_v53 = vmul.f32 %v3757_v10, %v2444_v32  ;;  %v2394_v15 = vadd.f32 -1.4531521, %v2386_v31  ;;  %v2395_v10 = vadd.f32 -1.4531521, %v2387_v5 }
 0x659   : > { %v2509_v8 = vsub.f32 0.0, %v2493_v24  ;;  %v2487_v3 = vmul.f32 %v3759_v37, %v2447_v51  ;;  %v2433_v52 = vmul.f32 %v4647_v43, %v2425_v56  ;;  %v2424_v60 = vadd.f32 -0.28449672, %v2416_v9 }
 0x65a   : > { %v2446_v55 = vmul.f32 %v4637_v54, %v2438_v62  ;;  %v2492_v28 = vsub.f32 1.0, %v2484_v53  ;;  %v2402_v63 = vmul.f32 %v4684_v48, %v2394_v15  ;;  %v2403_v41 = vmul.f32 %v4681_v36, %v2395_v10  ;;  %v3769_v62 = vpop.eup %3768 }
 0x65b   : > { %v2517_v30 = vsel %vm2501_vm4, %v2509_v8, %v2493_v24  ;;  %v2495_v12 = vsub.f32 1.0, %v2487_v3  ;;  %v2441_v22 = vadd.f32 0.2548296, %v2433_v52  ;;  %v2432_v47 = vmul.f32 %v4656_v40, %v2424_v60 }
 0x65c   : > { %v2486_v21 = vmul.f32 %v3765_v11, %v2446_v55  ;;  %v2525_v2 = vadd.f32 1.0, %v2517_v30  ;;  %v2508_v13 = vsub.f32 0.0, %v2492_v28  ;;  %v2410_v35 = vadd.f32 1.4214138, %v2402_v63 }
 0x65d   : > { %v2511_v45 = vsub.f32 0.0, %v2495_v12  ;;  %v2449_v37 = vmul.f32 %v4647_v43, %v2441_v22  ;;  %v2440_v51 = vadd.f32 0.2548296, %v2432_v47  ;;  %v2411_v8 = vadd.f32 1.4214138, %v2403_v41 }
 0x65e   : > { %v2494_v54 = vsub.f32 1.0, %v2486_v21  ;;  %v2516_v14 = vsel %vm2500_vm5, %v2508_v13, %v2492_v28  ;;  %v2533_v43 = vmul.f32 %v2525_v2, %v4644_v46  ;;  %v2418_v7 = vmul.f32 %v4684_v48, %v2410_v35 }
 0x65f   : > { %v2519_v24 = vsel %vm2503_vm6, %v2511_v45, %v2495_v12  ;;  %v2524_v20 = vadd.f32 1.0, %v2516_v14  ;;  %v2489_v32 = vmul.f32 %v3767_v49, %v2449_v37  ;;  %v2448_v3 = vmul.f32 %v4656_v40, %v2440_v51 }
 0x660   : > { %v2510_v19 = vsub.f32 0.0, %v2494_v54  ;;  %v2527_v56 = vadd.f32 1.0, %v2519_v24  ;;  %v2419_v59 = vmul.f32 %v4681_v36, %v2411_v8  ;;  %v2327_v5 = vmul.f32 0.5, %v4558_v58 }
 0x661   : > { %v2532_v38 = vmul.f32 %v2524_v20, %v4666_v29  ;;  %v2497_v53 = vsub.f32 1.0, %v2489_v32  ;;  %v2488_v55 = vmul.f32 %v3769_v62, %v2448_v3  ;;  %v2426_v29 = vadd.f32 -0.28449672, %v2418_v7  ;;  %v3771_v58 = vpop.eup %3770 }
 0x662   : > { %v2518_v33 = vsel %vm2502_vm7, %v2510_v19, %v2494_v54  ;;  %v2427_v52 = vadd.f32 -0.28449672, %v2419_v59  ;;  %v2535_v40 = vmul.f32 %v2527_v56, %v2327_v5  ;;  %v2328_v2 = vmul.f32 0.5, %v4593_v61 }
 0x663   : > { %v2526_v23 = vadd.f32 1.0, %v2518_v33  ;;  %3565 = vmatprep.mubr.msk.f32.mxu1 %vm538_vm1, %v2532_v38  ;;  %v2513_v46 = vsub.f32 0.0, %v2497_v53  ;;  %v2496_v31 = vsub.f32 1.0, %v2488_v55  ;;  %v2434_v11 = vmul.f32 %v4684_v48, %v2426_v29 }
 0x664   : > { %3566 = vmatmul.mubr.msk.f32.vlgmr.msra.gmra.mxu1 %vm538_vm1, %v2533_v43  ;;  %v2435_v28 = vmul.f32 %v4681_v36, %v2427_v52  ;;  %v3773_v10 = vpop.eup %3772  ;;  %v2329_v45 = vmul.f32 0.5, %v4580_v42  ;;  %v2330_v42 = vmul.f32 0.5, %v4616_v0  ;;  %v2331_v20 = vmul.f32 0.5, %v4613_v34  ;;  %v3276_v0 = vld [vmem:[%s4976_s11] ss:$0 sm:$0xff] }
 0x665   : > { %v2534_v30 = vmul.f32 %v2526_v23, %v2326_v1  ;;  %v2521_v12 = vsel %vm2505_vm8, %v2513_v46, %v2497_v53  ;;  %v2512_v9 = vsub.f32 0.0, %v2496_v31  ;;  %v2442_v49 = vadd.f32 0.2548296, %v2434_v11  ;;  %v3277_v34 = vld [vmem:[%s4977_s12] ss:$0 sm:$0xff] }
 0x666   : > { %v2443_v1 = vadd.f32 0.2548296, %v2435_v28  ;;  %v2529_v22 = vadd.f32 1.0, %v2521_v12 }
 0x667   : > { %3568 = vmatprep.mubr.msk.f32.mxu1 %vm538_vm1, %v2534_v30  ;;  %v2520_v21 = vsel %vm2504_vm9, %v2512_v9, %v2496_v31  ;;  %v2450_v6 = vmul.f32 %v4684_v48, %v2442_v49 }
 0x668   : > { %3569 = vmatmul.mubr.msk.f32.gmra.mxu1 %vm538_vm1, %v2535_v40  ;;  %v2451_v15 = vmul.f32 %v4681_v36, %v2443_v1  ;;  %v2528_v13 = vadd.f32 1.0, %v2520_v21  ;;  %v2537_v63 = vmul.f32 %v2529_v22, %v2329_v45 }
 0x669   : > { %v2490_v60 = vmul.f32 %v3773_v10, %v2450_v6 }
 0x66a   : > { %v2491_v54 = vmul.f32 %v3771_v58, %v2451_v15  ;;  %v2536_v37 = vmul.f32 %v2528_v13, %v2328_v2 }
 0x66b   : > { %v2498_v41 = vsub.f32 1.0, %v2490_v60 }
 0x66c   : > { %v2499_v14 = vsub.f32 1.0, %v2491_v54  ;;  %3571 = vmatprep.mubr.msk.f32.mxu1 %vm538_vm1, %v2536_v37 }
 0x66d   : > { %3572 = vmatmul.mubr.msk.f32.gmra.mxu1 %vm538_vm1, %v2537_v63  ;;  %v2514_v16 = vsub.f32 0.0, %v2498_v41 }
 0x66e   : > { %v2515_v48 = vsub.f32 0.0, %v2499_v14 }
 0x66f   : > { %v2522_v61 = vsel %vm2506_vm11, %v2514_v16, %v2498_v41 }
 0x670   : > { %v2523_v36 = vsel %vm2507_vm10, %v2515_v48, %v2499_v14  ;;  %v2530_v24 = vadd.f32 1.0, %v2522_v61 }
 0x671   : > { %v2531_v47 = vadd.f32 1.0, %v2523_v36 }
 0x672   : > { %v2538_v19 = vmul.f32 %v2530_v24, %v2330_v42 }
 0x673   : > { %v2539_v32 = vmul.f32 %v2531_v47, %v2331_v20 }
 0x674   : > { %3574 = vmatprep.mubr.msk.f32.mxu1 %vm538_vm1, %v2538_v19 }
 0x675   : > { %3575 = vmatmul.mubr.msk.f32.gmra.mxu1 %vm538_vm1, %v2539_v32 }
 0x724   : > { %v3567_v50 = vpop.f32.mrf.mxu1 }
 0x725   : > { %v2678_v43 = vmul.f32 %v3567_v50, %v3276_v0 }
 0x726   : > { %v2631_v51 = vpop.f32.mrf.mxu1 }
 0x727   : > { %v4737_v35 = vadd.f32 %v3277_v34, %v2678_v43  ;;  %v2677_v8 = vmul.f32 %v3276_v0, %v2631_v51 }
 0x728   : > { %v3570_v62 = vpop.f32.mrf.mxu1 }
 0x729   : > { %v4740_v38 = vmul.f32 0.70710677, %v4737_v35  ;;  %v4742_v33 = vadd.f32 %v3277_v34, %v2677_v8  ;;  %v2680_v56 = vmul.f32 %v3570_v62, %v3276_v0 }
 0x72a   : > { %v2641_v53 = vpop.f32.mrf.mxu1 }
 0x72b   : > { %v2717_v23 = vand.u32 2147483647, %v4740_v38  ;;  %v4746_v3 = vmul.f32 0.70710677, %v4742_v33  ;;  %v4748_v7 = vadd.f32 %v3277_v34, %v2680_v56  ;;  %v2679_v59 = vmul.f32 %v3276_v0, %v2641_v53 }
 0x72c   : > { %vm2877_vm12 = vcmp.lt.f32.partialorder %v4740_v38, 0.0 }
 0x72d   : > { %v2725_v5 = vmul.f32 0.3275911, %v2717_v23  ;;  %v2716_v46 = vand.u32 2147483647, %v4746_v3  ;;  %v4752_v30 = vmul.f32 0.70710677, %v4748_v7  ;;  %v4754_v55 = vadd.f32 %v3277_v34, %v2679_v59  ;;  %v3573_v11 = vpop.f32.mrf.mxu1 }
 0x72e   : > { %v2682_v49 = vmul.f32 %v3573_v11, %v3276_v0  ;;  %v2829_v10 = vsub.f32 0.0, %v2717_v23  ;;  %vm2876_vm13 = vcmp.lt.f32.partialorder %v4746_v3, 0.0 }
 0x72f   : > { %v2733_v29 = vadd.f32 1.0, %v2725_v5  ;;  %v2724_v52 = vmul.f32 0.3275911, %v2716_v46  ;;  %v2719_v40 = vand.u32 2147483647, %v4752_v30  ;;  %v2651_v9 = vpop.f32.mrf.mxu1  ;;  %v2828_v54 = vsub.f32 0.0, %v2716_v46 }
 0x730   : > { %v4758_v31 = vmul.f32 0.70710677, %v4754_v55  ;;  %v2681_v1 = vmul.f32 %v3276_v0, %v2651_v9  ;;  %v4761_v6 = vadd.f32 %v3277_v34, %v2682_v49  ;;  %v2837_v63 = vmul.f32 %v2829_v10, %v2717_v23 }
 0x731   : > { %3774 = vrcp.f32 %v2733_v29  ;;  %v2732_v28 = vadd.f32 1.0, %v2724_v52  ;;  %v2727_v58 = vmul.f32 0.3275911, %v2719_v40  ;;  %v2831_v48 = vsub.f32 0.0, %v2719_v40 }
 0x732   : > { %v2718_v12 = vand.u32 2147483647, %v4758_v31  ;;  %v4763_v15 = vadd.f32 %v3277_v34, %v2681_v1  ;;  %v4766_v13 = vmul.f32 0.70710677, %v4761_v6  ;;  %v2836_v47 = vmul.f32 %v2828_v54, %v2716_v46 }
 0x733   : > { %3776 = vrcp.f32 %v2732_v28  ;;  %v2735_v21 = vadd.f32 1.0, %v2727_v58  ;;  %v2846_v44 = vmul.f32 1.442695, %v2837_v63  ;;  %v2839_v8 = vmul.f32 %v2831_v48, %v2719_v40 }
 0x734   : > { %v2726_v22 = vmul.f32 0.3275911, %v2718_v12  ;;  %v4769_v45 = vmul.f32 0.70710677, %v4763_v15  ;;  %v2721_v37 = vand.u32 2147483647, %v4766_v13 }
 0x735   : > { %3778 = vrcp.f32 %v2735_v21  ;;  %v3576_v60 = vpop.f32.mrf.mxu1  ;;  %v2830_v62 = vsub.f32 0.0, %v2718_v12  ;;  %v2850_v52 = vmul.f32 1.442695, %v2839_v8  ;;  %vm2879_vm14 = vcmp.lt.f32.partialorder %v4752_v30, 0.0 }
 0x736   : > { %v2734_v2 = vadd.f32 1.0, %v2726_v22  ;;  %v2720_v41 = vand.u32 2147483647, %v4769_v45  ;;  %v2684_v14 = vmul.f32 %v3576_v60, %v3276_v0  ;;  %v2729_v61 = vmul.f32 0.3275911, %v2721_v37 }
 0x737   : > { %v2661_v16 = vpop.f32.mrf.mxu1  ;;  %v2838_v40 = vmul.f32 %v2830_v62, %v2718_v12  ;;  %v2833_v9 = vsub.f32 0.0, %v2721_v37  ;;  %vm2878_vm15 = vcmp.lt.f32.partialorder %v4758_v31, 0.0  ;;  %vm2881_vm0 = vcmp.lt.f32.partialorder %v4766_v13, 0.0 }
 0x738   : > { %3780 = vrcp.f32 %v2734_v2  ;;  %v2683_v36 = vmul.f32 %v3276_v0, %v2661_v16  ;;  %v2728_v42 = vmul.f32 0.3275911, %v2720_v41  ;;  %v4773_v24 = vadd.f32 %v3277_v34, %v2684_v14 }
 0x739   : > { %v2737_v20 = vadd.f32 1.0, %v2729_v61  ;;  %v2832_v60 = vsub.f32 0.0, %v2720_v41  ;;  %v2848_v63 = vmul.f32 1.442695, %v2838_v40  ;;  %v2841_v61 = vmul.f32 %v2833_v9, %v2721_v37 }
 0x73a   : > { %v4775_v19 = vadd.f32 %v3277_v34, %v2683_v36  ;;  %v2736_v50 = vadd.f32 1.0, %v2728_v42  ;;  %v4780_v43 = vmul.f32 0.70710677, %v4773_v24  ;;  %v2844_v34 = vmul.f32 1.442695, %v2836_v47 }
 0x73b   : > { %3782 = vrcp.f32 %v2737_v20  ;;  %v4813_v37 = vmul.f32 0.5, %v4742_v33  ;;  %vm2880_vm2 = vcmp.lt.f32.partialorder %v4769_v45, 0.0  ;;  %v2705_v13 = vmul.f32 0.5, %v4761_v6 }
 0x73c   : > { %3784 = vrcp.f32 %v2736_v50  ;;  %v2723_v0 = vand.u32 2147483647, %v4780_v43  ;;  %v4787_v23 = vmul.f32 0.70710677, %v4775_v19  ;;  %v2840_v50 = vmul.f32 %v2832_v60, %v2720_v41 }
 0x73d   : > { %3786 = vpow2.f32 %v2846_v44  ;;  %vm2883_vm3 = vcmp.lt.f32.partialorder %v4780_v43, 0.0 }
 0x73e   : > { %v4777_v32 = vpop.eup %3774  ;;  %v2731_v5 = vmul.f32 0.3275911, %v2723_v0  ;;  %v4794_v11 = vand.u32 2147483647, %v4787_v23  ;;  %3788 = vpow2.f32 %v2844_v34  ;;  %v2835_v47 = vsub.f32 0.0, %v2723_v0 }
 0x73f   : > { %v2757_v51 = vmul.f32 1.0614054, %v4777_v32  ;;  %v2852_v33 = vmul.f32 1.442695, %v2840_v50  ;;  %vm2882_vm4 = vcmp.lt.f32.partialorder %v4787_v23, 0.0 }
 0x740   : > { %v4784_v56 = vpop.eup %3776  ;;  %v2739_v49 = vadd.f32 1.0, %v2731_v5  ;;  %v2730_v21 = vmul.f32 0.3275911, %v4794_v11  ;;  %v2854_v5 = vmul.f32 1.442695, %v2841_v61  ;;  %v2843_v40 = vmul.f32 %v2835_v47, %v2723_v0 }
 0x741   : > { %v2765_v53 = vadd.f32 -1.4531521, %v2757_v51  ;;  %v2756_v59 = vmul.f32 1.0614054, %v4784_v56  ;;  %v4806_v51 = vmul.f32 0.5, %v4737_v35 }
 0x742   : > { %v4790_v46 = vpop.eup %3778  ;;  %3790 = vrcp.f32 %v2739_v49  ;;  %v2738_v14 = vadd.f32 1.0, %v2730_v21 }
 0x743   : > { %v2773_v29 = vmul.f32 %v4777_v32, %v2765_v53  ;;  %v2764_v28 = vadd.f32 -1.4531521, %v2756_v59  ;;  %v2759_v58 = vmul.f32 1.0614054, %v4790_v46  ;;  %3792 = vpow2.f32 %v2850_v52 }
 0x744   : > { %3794 = vrcp.f32 %v2738_v14 }
 0x745   : > { %v2781_v1 = vadd.f32 1.4214138, %v2773_v29  ;;  %v4798_v22 = vpop.eup %3780  ;;  %v2772_v10 = vmul.f32 %v4784_v56, %v2764_v28  ;;  %v2767_v2 = vadd.f32 -1.4531521, %v2759_v58  ;;  %3796 = vpow2.f32 %v2848_v63 }
 0x746   : > { %v2758_v54 = vmul.f32 1.0614054, %v4798_v22  ;;  %3798 = vpow2.f32 %v2854_v5 }
 0x747   : > { %v2789_v12 = vmul.f32 %v4777_v32, %v2781_v1  ;;  %v2780_v16 = vadd.f32 1.4214138, %v2772_v10  ;;  %v2775_v48 = vmul.f32 %v4790_v46, %v2767_v2  ;;  %v2834_v2 = vsub.f32 0.0, %v4794_v11 }
 0x748   : > { %v2766_v42 = vadd.f32 -1.4531521, %v2758_v54  ;;  %v4810_v53 = vpop.eup %3782  ;;  %3800 = vpow2.f32 %v2852_v33 }
 0x749   : > { %v2797_v36 = vadd.f32 -0.28449672, %v2789_v12  ;;  %v2788_v20 = vmul.f32 %v4784_v56, %v2780_v16  ;;  %v2783_v44 = vadd.f32 1.4214138, %v2775_v48  ;;  %v4816_v29 = vpop.eup %3784  ;;  %v2761_v35 = vmul.f32 1.0614054, %v4810_v53 }
 0x74a   : > { %v2774_v62 = vmul.f32 %v4798_v22, %v2766_v42  ;;  %v2760_v9 = vmul.f32 1.0614054, %v4816_v29  ;;  %v3787_v49 = vpop.eup %3786  ;;  %v2858_v16 = vmul.f32 1.442695, %v2843_v40  ;;  %v2842_v50 = vmul.f32 %v2834_v2, %v4794_v11 }
 0x74b   : > { %v2805_v8 = vmul.f32 %v4777_v32, %v2797_v36  ;;  %v2796_v34 = vadd.f32 -0.28449672, %v2788_v20  ;;  %v2791_v59 = vmul.f32 %v4790_v46, %v2783_v44  ;;  %v2769_v10 = vadd.f32 -1.4531521, %v2761_v35  ;;  %v3789_v48 = vpop.eup %3788 }
 0x74c   : > { %v2782_v52 = vadd.f32 1.4214138, %v2774_v62  ;;  %v2768_v0 = vadd.f32 -1.4531521, %v2760_v9  ;;  %3802 = vpow2.f32 %v2858_v16 }
 0x74d   : > { %v2813_v41 = vadd.f32 0.2548296, %v2805_v8  ;;  %v2804_v28 = vmul.f32 %v4784_v56, %v2796_v34  ;;  %v2799_v58 = vadd.f32 -0.28449672, %v2791_v59  ;;  %v2777_v14 = vmul.f32 %v4810_v53, %v2769_v10 }
 0x74e   : > { %v2790_v21 = vmul.f32 %v4798_v22, %v2782_v52  ;;  %v2776_v36 = vmul.f32 %v4816_v29, %v2768_v0 }
 0x74f   : > { %v2821_v1 = vmul.f32 %v4777_v32, %v2813_v41  ;;  %v2812_v60 = vadd.f32 0.2548296, %v2804_v28  ;;  %v2807_v12 = vmul.f32 %v4790_v46, %v2799_v58  ;;  %v4830_v42 = vpop.eup %3790  ;;  %v2785_v44 = vadd.f32 1.4214138, %v2777_v14 }
 0x750   : > { %v2798_v63 = vadd.f32 -0.28449672, %v2790_v21  ;;  %v2784_v34 = vadd.f32 1.4214138, %v2776_v36  ;;  %v3793_v59 = vpop.eup %3792 }
 0x751   : > { %v2861_v54 = vmul.f32 %v3787_v49, %v2821_v1  ;;  %v2820_v32 = vmul.f32 %v4784_v56, %v2812_v60  ;;  %v2815_v61 = vadd.f32 0.2548296, %v2807_v12  ;;  %v2763_v56 = vmul.f32 1.0614054, %v4830_v42  ;;  %v4838_v35 = vpop.eup %3794 }
 0x752   : > { %v2806_v20 = vmul.f32 %v4798_v22, %v2798_v63  ;;  %v2793_v52 = vmul.f32 %v4810_v53, %v2785_v44  ;;  %v2792_v58 = vmul.f32 %v4816_v29, %v2784_v34  ;;  %v2762_v49 = vmul.f32 1.0614054, %v4838_v35  ;;  %v3797_v1 = vpop.eup %3796 }
 0x753   : > { %v2869_v47 = vsub.f32 1.0, %v2861_v54  ;;  %v2860_v8 = vmul.f32 %v3789_v48, %v2820_v32  ;;  %v2823_v62 = vmul.f32 %v4790_v46, %v2815_v61  ;;  %v2771_v9 = vadd.f32 -1.4531521, %v2763_v56 }
 0x754   : > { %v2814_v41 = vadd.f32 0.2548296, %v2806_v20  ;;  %v2801_v33 = vadd.f32 -0.28449672, %v2793_v52  ;;  %v2800_v2 = vadd.f32 -0.28449672, %v2792_v58 }
 0x755   : > { %v2885_v5 = vsub.f32 0.0, %v2869_v47  ;;  %v2868_v40 = vsub.f32 1.0, %v2860_v8  ;;  %v2863_v28 = vmul.f32 %v3793_v59, %v2823_v62  ;;  %v2856_v60 = vmul.f32 1.442695, %v2842_v50  ;;  %v3799_v50 = vpop.eup %3798 }
 0x756   : > { %v2822_v46 = vmul.f32 %v4798_v22, %v2814_v41  ;;  %v2809_v0 = vmul.f32 %v4810_v53, %v2801_v33  ;;  %v2779_v54 = vmul.f32 %v4830_v42, %v2771_v9  ;;  %v2770_v63 = vadd.f32 -1.4531521, %v2762_v49 }
 0x757   : > { %v2893_v11 = vsel %vm2877_vm12, %v2885_v5, %v2869_v47  ;;  %v2884_v21 = vsub.f32 0.0, %v2868_v40  ;;  %v2871_v10 = vsub.f32 1.0, %v2863_v28  ;;  %v2808_v22 = vmul.f32 %v4816_v29, %v2800_v2  ;;  %v3801_v5 = vpop.eup %3800 }
 0x758   : > { %v2862_v12 = vmul.f32 %v3797_v1, %v2822_v46  ;;  %v2901_v14 = vadd.f32 1.0, %v2893_v11  ;;  %v2817_v61 = vadd.f32 0.2548296, %v2809_v0  ;;  %v2787_v36 = vadd.f32 1.4214138, %v2779_v54 }
 0x759   : > { %v2892_v38 = vsel %vm2876_vm13, %v2884_v21, %v2868_v40  ;;  %v2887_v16 = vsub.f32 0.0, %v2871_v10  ;;  %v2816_v20 = vadd.f32 0.2548296, %v2808_v22  ;;  %v2778_v44 = vmul.f32 %v4838_v35, %v2770_v63  ;;  %v3803_v9 = vpop.eup %3802 }
 0x75a   : > { %v2900_v48 = vadd.f32 1.0, %v2892_v38  ;;  %v2870_v32 = vsub.f32 1.0, %v2862_v12  ;;  %3804 = vpow2.f32 %v2856_v60  ;;  %v2825_v62 = vmul.f32 %v4810_v53, %v2817_v61 }
 0x75b   : > { %v2895_v47 = vsel %vm2879_vm14, %v2887_v16, %v2871_v10  ;;  %v2909_v34 = vmul.f32 %v2901_v14, %v4806_v51  ;;  %v2824_v56 = vmul.f32 %v4816_v29, %v2816_v20  ;;  %v2795_v59 = vmul.f32 %v4830_v42, %v2787_v36 }
 0x75c   : > { %v2908_v8 = vmul.f32 %v2900_v48, %v4813_v37  ;;  %v2886_v3 = vsub.f32 0.0, %v2870_v32  ;;  %v2786_v30 = vadd.f32 1.4214138, %v2778_v44  ;;  %v2903_v41 = vadd.f32 1.0, %v2895_v47 }
 0x75d   : > { %v2702_v52 = vmul.f32 0.5, %v4754_v55  ;;  %v2865_v28 = vmul.f32 %v3799_v50, %v2825_v62  ;;  %v2864_v31 = vmul.f32 %v3801_v5, %v2824_v56  ;;  %v2803_v58 = vadd.f32 -0.28449672, %v2795_v59 }
 0x75e   : > { %v2894_v40 = vsel %vm2878_vm15, %v2886_v3, %v2870_v32  ;;  %3579 = vmatprep.mubr.msk.f32.mxu0 %vm538_vm1, %v2908_v8  ;;  %v2794_v53 = vmul.f32 %v4838_v35, %v2786_v30  ;;  %v2703_v51 = vmul.f32 0.5, %v4748_v7  ;;  %v2704_v63 = vmul.f32 0.5, %v4763_v15 }
 0x75f   : > { %v2902_v37 = vadd.f32 1.0, %v2894_v40  ;;  %3580 = vmatmul.mubr.msk.f32.vlgmr.msra.gmra.mxu0 %vm538_vm1, %v2909_v34  ;;  %v2873_v29 = vsub.f32 1.0, %v2865_v28  ;;  %v2872_v46 = vsub.f32 1.0, %v2864_v31  ;;  %v2811_v33 = vmul.f32 %v4830_v42, %v2803_v58 }
 0x760   : > { %v2802_v55 = vadd.f32 -0.28449672, %v2794_v53  ;;  %v2911_v49 = vmul.f32 %v2903_v41, %v2703_v51  ;;  %v2706_v20 = vmul.f32 0.5, %v4775_v19  ;;  %v2707_v50 = vmul.f32 0.5, %v4773_v24 }
 0x761   : > { %v2910_v11 = vmul.f32 %v2902_v37, %v2702_v52  ;;  %v2889_v1 = vsub.f32 0.0, %v2873_v29  ;;  %v2888_v21 = vsub.f32 0.0, %v2872_v46  ;;  %v2819_v10 = vadd.f32 0.2548296, %v2811_v33 }
 0x762   : > { %v2810_v2 = vmul.f32 %v4838_v35, %v2802_v55 }
 0x763   : > { %3582 = vmatprep.mubr.msk.f32.mxu0 %vm538_vm1, %v2910_v11  ;;  %v2897_v60 = vsel %vm2881_vm0, %v2889_v1, %v2873_v29  ;;  %v2896_v12 = vsel %vm2880_vm2, %v2888_v21, %v2872_v46  ;;  %v2827_v0 = vmul.f32 %v4830_v42, %v2819_v10 }
 0x764   : > { %3583 = vmatmul.mubr.msk.f32.gmra.mxu0 %vm538_vm1, %v2911_v49  ;;  %v2905_v7 = vadd.f32 1.0, %v2897_v60  ;;  %v2818_v54 = vadd.f32 0.2548296, %v2810_v2  ;;  %v2904_v14 = vadd.f32 1.0, %v2896_v12 }
 0x765   : > { %v2867_v38 = vmul.f32 %v3803_v9, %v2827_v0 }
 0x766   : > { %v2826_v16 = vmul.f32 %v4838_v35, %v2818_v54  ;;  %v2912_v48 = vmul.f32 %v2904_v14, %v2704_v63  ;;  %v2913_v32 = vmul.f32 %v2905_v7, %v2705_v13 }
 0x767   : > { %v3805_v22 = vpop.eup %3804  ;;  %v2875_v61 = vsub.f32 1.0, %v2867_v38 }
 0x768   : > { %v2866_v45 = vmul.f32 %v3805_v22, %v2826_v16  ;;  %3585 = vmatprep.mubr.msk.f32.mxu0 %vm538_vm1, %v2912_v48 }
 0x769   : > { %v2891_v36 = vsub.f32 0.0, %v2875_v61  ;;  %3586 = vmatmul.mubr.msk.f32.gmra.mxu0 %vm538_vm1, %v2913_v32 }
 0x76a   : > { %v2874_v47 = vsub.f32 1.0, %v2866_v45 }
 0x76b   : > { %v2899_v15 = vsel %vm2883_vm3, %v2891_v36, %v2875_v61 }
 0x76c   : > { %v2890_v6 = vsub.f32 0.0, %v2874_v47  ;;  %v2907_v42 = vadd.f32 1.0, %v2899_v15 }
 0x76e   : > { %v2898_v35 = vsel %vm2882_vm4, %v2890_v6, %v2874_v47  ;;  %v2915_v3 = vmul.f32 %v2907_v42, %v2707_v50 }
 0x76f   : > { %v2906_v44 = vadd.f32 1.0, %v2898_v35 }
 0x771   : > { %v2914_v8 = vmul.f32 %v2906_v44, %v2706_v20 }
 0x773   : > { %3588 = vmatprep.mubr.msk.f32.mxu0 %vm538_vm1, %v2914_v8 }
 0x774   : > { %3589 = vmatmul.mubr.msk.f32.gmra.mxu0 %vm538_vm1, %v2915_v3 }
 0x775   : > { %3828 = shalt.err (!%p3825_p3)
}
 0x776   : > { %s3829_s5 = scalar_lea.hbm %s3087_s2, 128  ;;  %s3833_s16 = scalar_lea.hbm %s4980_s15, 256 }
 0x777   : > { %p3830_p4 = scmp.ne.s32.totalorder %s3087_s2, %s3829_s5  ;;  %p3834_p9 = scmp.lt.s32.totalorder %s3087_s2, %s4980_s15 }
 0x778   : > { %p3835_p10 = scmp.lt.s32.totalorder %s3833_s16, %s3829_s5 }
 0x779   : > { %p3831_p7 = pnand %p3830_p4, %p4034_p5 }
 0x77a   : > { %p3836_p11 = por %p3835_p10, %p3834_p9 }
 0x77b   : > { %p3832_p8 = pneg %p3831_p7 }
 0x77d   : > { %p3837_p12 = pnand %p3836_p11, %p3832_p8 }
 0x77f   : > { %3840 = shalt.err (!%p3837_p12)
}
 0x780   : > { %3592 = dma.vmem_to_hbm [thread:$0]  (%p4034_p5), %s3090_s4, 128, %s3087_s2, %s3060_s25  }
 0x781   : > { %s3196_s1 = sshll.u32 %s4635_s17, 6  ;;  %s3294_s5 = sshll.u32 %s4017_s22, 10 }
 0x782   : > { %s504_s3 = scalar_lea.vmem [#allocation2], %s3196_s1  ;;  %s4918_s25 = scalar_lea.hbm %s4979_s14, %s3294_s5 }
 0x783   : > { %s3073_s6 = sshll.u32 %s504_s3, 4  ;;  %s3055_s22 = scalar_lea.sflag [#allocation3], %s4635_s17  ;;  %s4920_s6 = int_to_ptr.vmem [resolvable:$true] %s3073_s6 }
 0x784   : > { %s3841_s26 = scalar_lea.vmem %s4920_s6, 1024  ;;  %s3913_s0 = smov [#allocation2]  }
 0x785   : > { %p3842_p13 = scmp.ne.s32.totalorder %s4920_s6, %s3841_s26  ;;  %s3845_s27 = sshll.u32 %s3913_s0, 4  ;;  %s3846_s27 = int_to_ptr.vmem [resolvable:$false] %s3845_s27 }
 0x786   : > { %s3847_s30 = scalar_lea.vmem %s3846_s27, 2048  ;;  %p3848_p2 = scmp.lt.s32.totalorder %s4920_s6, %s3846_s27 }
 0x787   : > { %p3843_p0 = pnand %p3842_p13, %p4034_p5  ;;  %p3849_p3 = scmp.lt.s32.totalorder %s3847_s30, %s3841_s26 }
 0x789   : > { %p3844_p1 = pneg %p3843_p0  ;;  %p3850_p4 = por %p3849_p3, %p3848_p2 }
 0x78b   : > { %p3851_p7 = pnand %p3850_p4, %p3844_p1 }
 0x81f   : > { %v3581_v24 = vpop.f32.mrf.mxu0 }
 0x820   : > { %v3013_v19 = vadd.f32 %v3581_v24, %v4522_v18 }
 0x821   : > { %v3007_v43 = vpop.f32.mrf.mxu0 }
 0x822   : > { %3047 = vst.msk [vmem:[%s504_s3 + $0x8] sm:$0xff] %vm538_vm1, %v3013_v19  ;;  %v3008_v23 = vadd.f32 %v3007_v43, %v4532_v25 }
 0x824   : > { %3046 = vst.msk [vmem:[%s504_s3] sm:$0xff] %vm538_vm1, %v3008_v23  ;;  %v3584_v62 = vpop.f32.mrf.mxu0 }
 0x825   : > { %v3023_v34 = vadd.f32 %v3584_v62, %v4540_v57 }
 0x826   : > { %v3017_v56 = vpop.f32.mrf.mxu0 }
 0x827   : > { %3049 = vst.msk [vmem:[%s504_s3 + $0x18] sm:$0xff] %vm538_vm1, %v3023_v34  ;;  %v3018_v59 = vadd.f32 %v3017_v56, %v4551_v17 }
 0x829   : > { %3048 = vst.msk [vmem:[%s504_s3 + $0x10] sm:$0xff] %vm538_vm1, %v3018_v59  ;;  %v3587_v18 = vpop.f32.mrf.mxu0 }
 0x82a   : > { %v3033_v30 = vadd.f32 %v3587_v18, %v4563_v26 }
 0x82b   : > { %v3027_v5 = vpop.f32.mrf.mxu0 }
 0x82c   : > { %3051 = vst.msk [vmem:[%s504_s3 + $0x28] sm:$0xff] %vm538_vm1, %v3033_v30  ;;  %v3028_v25 = vadd.f32 %v3027_v5, %v4583_v4 }
 0x82e   : > { %3050 = vst.msk [vmem:[%s504_s3 + $0x20] sm:$0xff] %vm538_vm1, %v3028_v25 }
 0x834   : > { %v3590_v57 = vpop.f32.mrf.mxu0 }
 0x835   : > { %v3043_v41 = vadd.f32 %v3590_v57, %v4600_v39 }
 0x836   : > { %v3037_v17 = vpop.f32.mrf.mxu0 }
 0x837   : > { %3053 = vst.msk [vmem:[%s504_s3 + $0x38] sm:$0xff] %vm538_vm1, %v3043_v41  ;;  %v3038_v26 = vadd.f32 %v3037_v17, %v4603_v27 }
 0x839   : > { %3052 = vst.msk [vmem:[%s504_s3 + $0x30] sm:$0xff] %vm538_vm1, %v3038_v26 }
 0x83a   : > { %3854 = shalt.err (!%p3851_p7)
}
 0x83b   : > { %s3855_s16 = scalar_lea.hbm %s4918_s25, 1024  ;;  %s3859_s3 = scalar_lea.hbm %s4979_s14, 2048 }
 0x83c   : > { %p3856_p8 = scmp.ne.s32.totalorder %s4918_s25, %s3855_s16  ;;  %p3860_p11 = scmp.lt.s32.totalorder %s4918_s25, %s4979_s14 }
 0x83d   : > { %p3861_p12 = scmp.lt.s32.totalorder %s3859_s3, %s3855_s16 }
 0x83e   : > { %p3857_p9 = pnand %p3856_p8, %p4034_p5 }
 0x83f   : > { %p3862_p13 = por %p3861_p12, %p3860_p11 }
 0x840   : > { %p3858_p10 = pneg %p3857_p9 }
 0x842   : > { %p3863_p0 = pnand %p3862_p13, %p3858_p10 }
 0x844   : > { %3866 = shalt.err (!%p3863_p0)
}
 0x845   : > { %s3914_s4 = smov 128   ;;  %s3915_s26 = smov 8  }
 0x846   : > { %3591 = dma.vmem_to_hbm [thread:$0]  (%p4034_p5), %s4920_s6, 1024, %s4918_s25, %s3055_s22, %s3914_s4, %s3914_s4, %s3915_s26  }
 0x847 PF: > { %p3602_p1 = scmp.ge.s32.totalorder %s3905_s21, 2  ;;  %s3101_s0 = sand.u32 1, %s3893_s18  }
 0x848   : > { %s3102_s27 = scalar_lea.sflag [#allocation3], %s3101_s0 }
 0x849   : > { %p3596_p2 = pnand %p3602_p1, %p4038_p6 }
 0x84b   : > { %p3597_p3 = pneg %p3596_p2 }
 0x84d   : > { %3884 = dma.done.wait (%p3597_p3), %s3102_s27, 1024  }
 0x84e   : > { %3886 = vsyncadd (%p3597_p3), %s3102_s27, 4294966272  ;;  %s3111_s30 = scalar_lea.sflag [#allocation5], %s3101_s0 }
 0x84f   : > { %3888 = dma.done.wait (%p3597_p3), %s3111_s30, 128  }
 0x850   : > { %3890 = vsyncadd (%p3597_p3), %s3111_s30, 4294967168  ;;  %s4998_s28 = sld [smem:[#allocation8_spill]]  ;;  %p29_p5 = scmp.ge.s32.totalorder %s4021_s24, 4  }
 0x851   : > { %s4999_s18 = smov %s3897_s19  ;;  %s5000_s19 = smov %s3901_s20 }
 0x852   : > { %s5002_s21 = smov %s4021_s24  ;;  %31 = sbr.rel (!%p29_p5) target bundleno = 13 (0xd), region = 131 }
 0x856   : > { %s5001_s20 = smov %s4998_s28 }
 0x857   :  { %3116 = vsyncpa [#allocation3], 1 }
 0x858   :  { %3118 = vsyncpa [#allocation3 + $0x1], 1 }
 0x859   :  { %3119 = vsyncpa [#allocation5], 1 }
 0x85a   :  { %3121 = vsyncpa [#allocation5 + $0x1], 1 }

</bundles_post_ra>
